<compile_context>
chip_gen: v5e
topology: v5e:2x2
jax: 0.10.0
libtpu: 0.0.40
codegen_flags: <defaults>
</compile_context>

<pallas_src>
import functools

import jax
import jax.numpy as jnp
from jax import lax
from jax.experimental import pallas as pl
from jax.experimental.pallas import tpu as pltpu


def _round_up(n, m):
    return ((n + m - 1) // m) * m


# -----------------------------------------------------------------------------
# Kernel
# -----------------------------------------------------------------------------
def _gru_net_kernel(x_ref,                                    # (S*Bt, D) slab
                    wx0_ref, wh0_ref, bx0_ref, bhn0_ref,      # layer 0 (packed)
                    wx1_ref, wh1_ref, bx1_ref, bhn1_ref,      # layer 1 (packed)
                    wfc_ref, bfc_ref,                         # final Linear
                    out_ref,                                  # (Bt, out_dim)
                    gx0_ref,                                  # VMEM scratch (S, Bt, 3G)
                    *, hidden_pad, seq_len, batch_tile):
    G = hidden_pad
    Bt = batch_tile
    S = seq_len

    # ---- Hoist loop-invariant loads / broadcasts out of the time loop -------
    wh0 = wh0_ref[...]
    wh1 = wh1_ref[...]
    wx1 = wx1_ref[...]
    bx1 = jnp.broadcast_to(bx1_ref[...], (Bt, 3 * G))
    bhn0 = jnp.broadcast_to(bhn0_ref[...], (Bt, G))
    bhn1 = jnp.broadcast_to(bhn1_ref[...], (Bt, G))

    # ---- Layer-0 x-side matmul for ALL timesteps (no recurrence dependence) -
    x_all = x_ref[...].astype(jnp.float32)                              # (S*Bt, D)
    gx0_all = (jnp.dot(x_all, wx0_ref[...],
                       preferred_element_type=jnp.float32)
               + jnp.broadcast_to(bx0_ref[...], (S * Bt, 3 * G)))        # (S*Bt, 3G)
    gx0_ref[...] = gx0_all.reshape(S, Bt, 3 * G)

    def gates(gx, gh, h_prev, bhn):
        """PyTorch-convention GRU cell tail (gate order r, z, n), lane-aligned."""
        rz = jax.nn.sigmoid(gx[:, :2 * G] + gh[:, :2 * G])   # slices at 128-lane bounds
        r = rz[:, :G]
        z = rz[:, G:]
        n = jnp.tanh(gx[:, 2 * G:] + r * (gh[:, 2 * G:] + bhn))
        return (1.0 - z) * n + z * h_prev

    def step(t, carry):
        h0, h1 = carry
        # Issue BOTH h-side matmuls back-to-back first; gh1's MXU latency
        # hides under layer-0's EUP/VPU work.
        gh0 = jnp.dot(h0, wh0, preferred_element_type=jnp.float32)       # (Bt, 3G)
        gh1 = jnp.dot(h1, wh1, preferred_element_type=jnp.float32)       # (Bt, 3G)
        gx0 = gx0_ref[t]                                                  # precomputed
        h0n = gates(gx0, gh0, h0, bhn0)                                   # layer 0
        gx1 = jnp.dot(h0n, wx1, preferred_element_type=jnp.float32) + bx1
        h1n = gates(gx1, gh1, h1, bhn1)                                   # layer 1
        return (h0n, h1n)

    h0_init = jnp.zeros((Bt, G), jnp.float32)
    h1_init = jnp.zeros((Bt, G), jnp.float32)
    # Bounded unroll: full unroll only for short sequences.
    unroll = True if S <= 16 else 2
    _, h1 = lax.fori_loop(0, S, step, (h0_init, h1_init), unroll=unroll)

    # Final FC on the last time step's top-layer hidden state.
    y = jnp.dot(h1, wfc_ref[...], preferred_element_type=jnp.float32) + bfc_ref[...]
    out_ref[...] = y.astype(out_ref.dtype)


# -----------------------------------------------------------------------------
# Host-side weight packing (done once, outside the kernel)
# -----------------------------------------------------------------------------
def _prepack_params(params, input_dim, hidden_dim, output_dim):
    """Transpose / fuse / lane-pad PyTorch-shaped GRU params for the kernel.

    Gate layout: each gate's columns start at a 128-lane boundary (stride G),
    padded lanes / rows are zero, so the padded hidden-state lanes stay exactly
    zero through the recurrence and all in-kernel slices are vreg-aligned.
    """
    (wih0, whh0, bih0, bhh0, wih1, whh1, bih1, bhh1, wfc, bfc) = params
    H = hidden_dim
    G = _round_up(H, 128)

    def pack_w(w, in_rows):
        # w: PyTorch (3H, in_dim).  -> (in_rows, 3G), gate g at cols [g*G, g*G+H).
        out = jnp.zeros((in_rows, 3 * G), jnp.float32)
        in_dim = w.shape[1]
        for g in range(3):
            out = out.at[:in_dim, g * G:g * G + H].set(w[g * H:(g + 1) * H, :].T)
        return out

    def pack_bx(bih, bhh):
        # r,z biases pre-summed; n keeps only the input-side bias.
        out = jnp.zeros((1, 3 * G), jnp.float32)
        out = out.at[0, 0 * G:0 * G + H].set(bih[:H] + bhh[:H])
        out = out.at[0, 1 * G:1 * G + H].set(bih[H:2 * H] + bhh[H:2 * H])
        out = out.at[0, 2 * G:2 * G + H].set(bih[2 * H:])
        return out

    def pack_bhn(bhh):
        return jnp.zeros((1, G), jnp.float32).at[0, :H].set(bhh[2 * H:])

    wx0 = pack_w(wih0, input_dim)        # (D, 3G)
    wh0 = pack_w(whh0, G)                # (G, 3G)
    wx1 = pack_w(wih1, G)                # (G, 3G)  (layer-1 input is padded h0)
    wh1 = pack_w(whh1, G)                # (G, 3G)
    bx0 = pack_bx(bih0, bhh0)
    bx1 = pack_bx(bih1, bhh1)
    bhn0 = pack_bhn(bhh0)
    bhn1 = pack_bhn(bhh1)
    wfc_p = jnp.zeros((G, output_dim), jnp.float32).at[:H, :].set(wfc.T)
    bfc_p = bfc.reshape(1, output_dim).astype(jnp.float32)
    return (wx0, wh0, bx0, bhn0, wx1, wh1, bx1, bhn1, wfc_p, bfc_p)


# -----------------------------------------------------------------------------
# Public wrapper
# -----------------------------------------------------------------------------
def gru_net_forward(x, params, hidden_dim, output_dim):
    """x: (batch, seq, input_dim) float32. Returns (batch, output_dim)."""
    B, S, D = x.shape
    H = hidden_dim
    G = _round_up(H, 128)

    # Batch blocks: 2 when evenly splittable so v7x's 2 TensorCores each get an
    # independent recurrence ("parallel" grid axis); harmless elsewhere.
    nb = 2 if (B >= 2 and B % 2 == 0) else 1
    Bt = B // nb

    # Per-block time-major 2-D slab: row = t*Bt + b_local  ->  (nb, S*Bt, D).
    x_blk = (x.reshape(nb, Bt, S, D)
              .transpose(0, 2, 1, 3)
              .reshape(nb, S * Bt, D))

    packed = _prepack_params(params, D, H, output_dim)

    kernel = functools.partial(_gru_net_kernel,
                               hidden_pad=G, seq_len=S, batch_tile=Bt)

    def full_spec(a):
        # Whole-array block, same block for every grid point (loop-invariant).
        return pl.BlockSpec(a.shape, lambda i: (0,) * a.ndim)

    out = pl.pallas_call(
        kernel,
        out_shape=jax.ShapeDtypeStruct((nb, Bt, output_dim), jnp.float32),
        grid=(nb,),
        in_specs=[pl.BlockSpec((None, S * Bt, D), lambda i: (i, 0, 0))]
                 + [full_spec(a) for a in packed],
        out_specs=pl.BlockSpec((None, Bt, output_dim), lambda i: (i, 0, 0)),
        scratch_shapes=[pltpu.VMEM((S, Bt, 3 * G), jnp.float32)],
        compiler_params=pltpu.CompilerParams(
            dimension_semantics=("parallel",),
            vmem_limit_bytes=32 * 1024 * 1024),
    )(x_blk, *packed)
    return out.reshape(B, output_dim)


# -----------------------------------------------------------------------------
# Parameter init + pure-JAX reference (for validation)
# -----------------------------------------------------------------------------
def init_params(key, input_dim, hidden_dim, output_dim):
    """PyTorch parameter shapes, uniform(-1/sqrt(H), 1/sqrt(H)) init."""
    H = hidden_dim
    bound = 1.0 / jnp.sqrt(jnp.float32(H))
    shapes = [
        (3 * H, input_dim), (3 * H, H), (3 * H,), (3 * H,),   # layer 0
        (3 * H, H),         (3 * H, H), (3 * H,), (3 * H,),   # layer 1
        (output_dim, H), (output_dim,),                        # fc
    ]
    keys = jax.random.split(key, len(shapes))
    return tuple(
        jax.random.uniform(k, s, jnp.float32, -bound, bound)
        for k, s in zip(keys, shapes)
    )


def _gru_cell_ref(x, h, w_ih, w_hh, b_ih, b_hh, hidden_dim):
    """One PyTorch-convention GRU cell step (gate order r, z, n)."""
    gi = x @ w_ih.T + b_ih[None, :]
    gh = h @ w_hh.T + b_hh[None, :]
    H = hidden_dim
    i_r, i_z, i_n = gi[:, :H], gi[:, H:2 * H], gi[:, 2 * H:]
    h_r, h_z, h_n = gh[:, :H], gh[:, H:2 * H], gh[:, 2 * H:]
    r = jax.nn.sigmoid(i_r + h_r)
    z = jax.nn.sigmoid(i_z + h_z)
    n = jnp.tanh(i_n + r * h_n)
    return (1.0 - z) * n + z * h


def gru_net_reference(x, params, hidden_dim):
    (wih0, whh0, bih0, bhh0, wih1, whh1, bih1, bhh1, wfc, bfc) = params
    B, S, D = x.shape
    H = hidden_dim
    h0 = jnp.zeros((B, H), jnp.float32)
    h1 = jnp.zeros((B, H), jnp.float32)
    for t in range(S):
        xt = x[:, t, :]
        h0 = _gru_cell_ref(xt, h0, wih0, whh0, bih0, bhh0, H)
        h1 = _gru_cell_ref(h0, h1, wih1, whh1, bih1, bhh1, H)
    return h1 @ wfc.T + bfc[None, :]


# -----------------------------------------------------------------------------
if __name__ == "__main__":
    batch, seq, input_dim, hidden_dim, output_dim = 2, 8, 4, 32, 1

    key = jax.random.PRNGKey(0)
    kx, kp = jax.random.split(key)
    x = jax.random.normal(kx, (batch, seq, input_dim), jnp.float32)
    params = init_params(kp, input_dim, hidden_dim, output_dim)

    out = gru_net_forward(x, params, hidden_dim, output_dim)
    out = jax.block_until_ready(out)

    ref = gru_net_reference(x, params, hidden_dim)
    assert out.shape == (batch, output_dim)
    assert jnp.allclose(out, ref, atol=1e-5, rtol=1e-5), (out, ref)

    print("KERNEL_OK")
</pallas_src>

<mosaic_0001>
module attributes {stable_mosaic.version = 11 : i64} {
  func.func @_gru_net_kernel(%arg0: i32, %arg1: memref<1x8x4xf32, #tpu.memory_space<vmem>>, %arg2: memref<4x384xf32, #tpu.memory_space<vmem>>, %arg3: memref<128x384xf32, #tpu.memory_space<vmem>>, %arg4: memref<1x384xf32, #tpu.memory_space<vmem>>, %arg5: memref<1x128xf32, #tpu.memory_space<vmem>>, %arg6: memref<128x384xf32, #tpu.memory_space<vmem>>, %arg7: memref<128x384xf32, #tpu.memory_space<vmem>>, %arg8: memref<1x384xf32, #tpu.memory_space<vmem>>, %arg9: memref<1x128xf32, #tpu.memory_space<vmem>>, %arg10: memref<128x1xf32, #tpu.memory_space<vmem>>, %arg11: memref<1x1xf32, #tpu.memory_space<vmem>>, %arg12: memref<1x1x1xf32, #tpu.memory_space<vmem>>, %arg13: memref<8x1x384xf32, #tpu.memory_space<vmem>>) attributes {dimension_semantics = [#tpu.dimension_semantics<parallel>], iteration_bounds = array<i64: 2>, scalar_prefetch = 0 : i64, scratch_operands = 1 : i64, tpu.core_type = #tpu.core_type<tc>, window_params = [{transform_indices = @transform_0, window_bounds = array<i64: 1, 8, 4>}, {pipeline_mode = #tpu.pipeline_mode<synchronous>, transform_indices = @transform_1, window_bounds = array<i64: 4, 384>}, {pipeline_mode = #tpu.pipeline_mode<synchronous>, transform_indices = @transform_2, window_bounds = array<i64: 128, 384>}, {pipeline_mode = #tpu.pipeline_mode<synchronous>, transform_indices = @transform_3, window_bounds = array<i64: 1, 384>}, {pipeline_mode = #tpu.pipeline_mode<synchronous>, transform_indices = @transform_4, window_bounds = array<i64: 1, 128>}, {pipeline_mode = #tpu.pipeline_mode<synchronous>, transform_indices = @transform_5, window_bounds = array<i64: 128, 384>}, {pipeline_mode = #tpu.pipeline_mode<synchronous>, transform_indices = @transform_6, window_bounds = array<i64: 128, 384>}, {pipeline_mode = #tpu.pipeline_mode<synchronous>, transform_indices = @transform_7, window_bounds = array<i64: 1, 384>}, {pipeline_mode = #tpu.pipeline_mode<synchronous>, transform_indices = @transform_8, window_bounds = array<i64: 1, 128>}, {pipeline_mode = #tpu.pipeline_mode<synchronous>, transform_indices = @transform_9, window_bounds = array<i64: 128, 1>}, {pipeline_mode = #tpu.pipeline_mode<synchronous>, transform_indices = @transform_10, window_bounds = array<i64: 1, 1>}, {transform_indices = @transform_11, window_bounds = array<i64: 1, 1, 1>}]} {
    %c0 = arith.constant 0 : index
    %c0_0 = arith.constant 0 : index
    %0 = vector.load %arg3[%c0, %c0_0] : memref<128x384xf32, #tpu.memory_space<vmem>>, vector<128x384xf32>
    %c0_1 = arith.constant 0 : index
    %c0_2 = arith.constant 0 : index
    %1 = vector.load %arg7[%c0_1, %c0_2] : memref<128x384xf32, #tpu.memory_space<vmem>>, vector<128x384xf32>
    %c0_3 = arith.constant 0 : index
    %c0_4 = arith.constant 0 : index
    %2 = vector.load %arg6[%c0_3, %c0_4] : memref<128x384xf32, #tpu.memory_space<vmem>>, vector<128x384xf32>
    %c0_5 = arith.constant 0 : index
    %c0_6 = arith.constant 0 : index
    %3 = vector.load %arg8[%c0_5, %c0_6] : memref<1x384xf32, #tpu.memory_space<vmem>>, vector<1x384xf32>
    %c0_7 = arith.constant 0 : index
    %c0_8 = arith.constant 0 : index
    %4 = vector.load %arg5[%c0_7, %c0_8] : memref<1x128xf32, #tpu.memory_space<vmem>>, vector<1x128xf32>
    %c0_9 = arith.constant 0 : index
    %c0_10 = arith.constant 0 : index
    %5 = vector.load %arg9[%c0_9, %c0_10] : memref<1x128xf32, #tpu.memory_space<vmem>>, vector<1x128xf32>
    %c0_11 = arith.constant 0 : index
    %c0_12 = arith.constant 0 : index
    %c0_13 = arith.constant 0 : index
    %6 = vector.load %arg1[%c0_11, %c0_12, %c0_13] : memref<1x8x4xf32, #tpu.memory_space<vmem>>, vector<1x8x4xf32>
    %7 = vector.shape_cast %6 : vector<1x8x4xf32> to vector<8x4xf32>
    %c0_14 = arith.constant 0 : index
    %c0_15 = arith.constant 0 : index
    %8 = vector.load %arg2[%c0_14, %c0_15] : memref<4x384xf32, #tpu.memory_space<vmem>>, vector<4x384xf32>
    %cst = arith.constant dense<0.000000e+00> : vector<8x384xf32>
    %9 = tpu.matmul %7, %8, %cst {dimension_numbers = #tpu.dot_dimension_numbers<[1], [0], [0], [1], [0, 0, 1, 1], [], []>} : vector<8x4xf32>, vector<4x384xf32>, vector<8x384xf32> -> vector<8x384xf32>
    %c0_16 = arith.constant 0 : index
    %c0_17 = arith.constant 0 : index
    %10 = vector.load %arg4[%c0_16, %c0_17] : memref<1x384xf32, #tpu.memory_space<vmem>>, vector<1x384xf32>
    %11 = vector.shape_cast %10 : vector<1x384xf32> to vector<1x384xf32>
    %12 = vector.broadcast %11 : vector<1x384xf32> to vector<8x384xf32>
    %13 = arith.addf %9, %12 : vector<8x384xf32>
    %14 = vector.shape_cast %13 : vector<8x384xf32> to vector<8x1x384xf32>
    %c0_18 = arith.constant 0 : index
    %c0_19 = arith.constant 0 : index
    %c0_20 = arith.constant 0 : index
    %15 = vector.load %arg13[%c0_18, %c0_19, %c0_20] : memref<8x1x384xf32, #tpu.memory_space<vmem>>, vector<8x1x384xf32>
    tpu.vector_store %arg13[%c0_18, %c0_19, %c0_20], %14 {strides = array<i32>} : memref<8x1x384xf32, #tpu.memory_space<vmem>>, vector<8x1x384xf32>,
    %cst_21 = arith.constant 0.000000e+00 : f32
    %16 = vector.broadcast %cst_21 : f32 to vector<1x128xf32>
    %cst_22 = arith.constant 0.000000e+00 : f32
    %17 = vector.broadcast %cst_22 : f32 to vector<1x128xf32>
    %c0_i32 = arith.constant 0 : i32
    %cst_23 = arith.constant dense<0.000000e+00> : vector<1x384xf32>
    %18 = tpu.matmul %16, %0, %cst_23 {dimension_numbers = #tpu.dot_dimension_numbers<[1], [0], [0], [1], [0, 0, 1, 1], [], []>} : vector<1x128xf32>, vector<128x384xf32>, vector<1x384xf32> -> vector<1x384xf32>
    %cst_24 = arith.constant dense<0.000000e+00> : vector<1x384xf32>
    %19 = tpu.matmul %17, %1, %cst_24 {dimension_numbers = #tpu.dot_dimension_numbers<[1], [0], [0], [1], [0, 0, 1, 1], [], []>} : vector<1x128xf32>, vector<128x384xf32>, vector<1x384xf32> -> vector<1x384xf32>
    %20 = arith.index_cast %c0_i32 : i32 to index
    %c0_25 = arith.constant 0 : index
    %c0_26 = arith.constant 0 : index
    %21 = vector.load %arg13[%20, %c0_25, %c0_26] : memref<8x1x384xf32, #tpu.memory_space<vmem>>, vector<1x1x384xf32>
    %22 = vector.shape_cast %21 : vector<1x1x384xf32> to vector<1x384xf32>
    %23 = vector.extract_strided_slice %22 {offsets = [0, 0], sizes = [1, 256], strides = [1, 1]} : vector<1x384xf32> to vector<1x256xf32>
    %24 = vector.extract_strided_slice %18 {offsets = [0, 0], sizes = [1, 256], strides = [1, 1]} : vector<1x384xf32> to vector<1x256xf32>
    %25 = arith.addf %23, %24 : vector<1x256xf32>
    %26 = arith.negf %25 : vector<1x256xf32>
    %27 = math.exp %26 : vector<1x256xf32>
    %cst_27 = arith.constant 1.000000e+00 : f32
    %28 = vector.broadcast %cst_27 : f32 to vector<1x256xf32>
    %29 = arith.addf %28, %27 : vector<1x256xf32>
    %30 = arith.divf %28, %29 : vector<1x256xf32>
    %31 = vector.extract_strided_slice %30 {offsets = [0, 0], sizes = [1, 128], strides = [1, 1]} : vector<1x256xf32> to vector<1x128xf32>
    %32 = vector.extract_strided_slice %30 {offsets = [0, 128], sizes = [1, 128], strides = [1, 1]} : vector<1x256xf32> to vector<1x128xf32>
    %33 = vector.extract_strided_slice %22 {offsets = [0, 256], sizes = [1, 128], strides = [1, 1]} : vector<1x384xf32> to vector<1x128xf32>
    %34 = vector.extract_strided_slice %18 {offsets = [0, 256], sizes = [1, 128], strides = [1, 1]} : vector<1x384xf32> to vector<1x128xf32>
    %35 = arith.addf %34, %4 : vector<1x128xf32>
    %36 = arith.mulf %31, %35 : vector<1x128xf32>
    %37 = arith.addf %33, %36 : vector<1x128xf32>
    %38 = math.tanh %37 : vector<1x128xf32>
    %cst_28 = arith.constant 1.000000e+00 : f32
    %39 = vector.broadcast %cst_28 : f32 to vector<1x128xf32>
    %40 = arith.subf %39, %32 : vector<1x128xf32>
    %41 = arith.mulf %40, %38 : vector<1x128xf32>
    %42 = arith.mulf %32, %16 : vector<1x128xf32>
    %43 = arith.addf %41, %42 : vector<1x128xf32>
    %cst_29 = arith.constant dense<0.000000e+00> : vector<1x384xf32>
    %44 = tpu.matmul %43, %2, %cst_29 {dimension_numbers = #tpu.dot_dimension_numbers<[1], [0], [0], [1], [0, 0, 1, 1], [], []>} : vector<1x128xf32>, vector<128x384xf32>, vector<1x384xf32> -> vector<1x384xf32>
    %45 = arith.addf %44, %3 : vector<1x384xf32>
    %46 = vector.extract_strided_slice %45 {offsets = [0, 0], sizes = [1, 256], strides = [1, 1]} : vector<1x384xf32> to vector<1x256xf32>
    %47 = vector.extract_strided_slice %19 {offsets = [0, 0], sizes = [1, 256], strides = [1, 1]} : vector<1x384xf32> to vector<1x256xf32>
    %48 = arith.addf %46, %47 : vector<1x256xf32>
    %49 = arith.negf %48 : vector<1x256xf32>
    %50 = math.exp %49 : vector<1x256xf32>
    %cst_30 = arith.constant 1.000000e+00 : f32
    %51 = vector.broadcast %cst_30 : f32 to vector<1x256xf32>
    %52 = arith.addf %51, %50 : vector<1x256xf32>
    %53 = arith.divf %51, %52 : vector<1x256xf32>
    %54 = vector.extract_strided_slice %53 {offsets = [0, 0], sizes = [1, 128], strides = [1, 1]} : vector<1x256xf32> to vector<1x128xf32>
    %55 = vector.extract_strided_slice %53 {offsets = [0, 128], sizes = [1, 128], strides = [1, 1]} : vector<1x256xf32> to vector<1x128xf32>
    %56 = vector.extract_strided_slice %45 {offsets = [0, 256], sizes = [1, 128], strides = [1, 1]} : vector<1x384xf32> to vector<1x128xf32>
    %57 = vector.extract_strided_slice %19 {offsets = [0, 256], sizes = [1, 128], strides = [1, 1]} : vector<1x384xf32> to vector<1x128xf32>
    %58 = arith.addf %57, %5 : vector<1x128xf32>
    %59 = arith.mulf %54, %58 : vector<1x128xf32>
    %60 = arith.addf %56, %59 : vector<1x128xf32>
    %61 = math.tanh %60 : vector<1x128xf32>
    %cst_31 = arith.constant 1.000000e+00 : f32
    %62 = vector.broadcast %cst_31 : f32 to vector<1x128xf32>
    %63 = arith.subf %62, %55 : vector<1x128xf32>
    %64 = arith.mulf %63, %61 : vector<1x128xf32>
    %65 = arith.mulf %55, %17 : vector<1x128xf32>
    %66 = arith.addf %64, %65 : vector<1x128xf32>
    %c1_i32 = arith.constant 1 : i32
    %cst_32 = arith.constant dense<0.000000e+00> : vector<1x384xf32>
    %67 = tpu.matmul %43, %0, %cst_32 {dimension_numbers = #tpu.dot_dimension_numbers<[1], [0], [0], [1], [0, 0, 1, 1], [], []>} : vector<1x128xf32>, vector<128x384xf32>, vector<1x384xf32> -> vector<1x384xf32>
    %cst_33 = arith.constant dense<0.000000e+00> : vector<1x384xf32>
    %68 = tpu.matmul %66, %1, %cst_33 {dimension_numbers = #tpu.dot_dimension_numbers<[1], [0], [0], [1], [0, 0, 1, 1], [], []>} : vector<1x128xf32>, vector<128x384xf32>, vector<1x384xf32> -> vector<1x384xf32>
    %69 = arith.index_cast %c1_i32 : i32 to index
    %c0_34 = arith.constant 0 : index
    %c0_35 = arith.constant 0 : index
    %70 = vector.load %arg13[%69, %c0_34, %c0_35] : memref<8x1x384xf32, #tpu.memory_space<vmem>>, vector<1x1x384xf32>
    %71 = vector.shape_cast %70 : vector<1x1x384xf32> to vector<1x384xf32>
    %72 = vector.extract_strided_slice %71 {offsets = [0, 0], sizes = [1, 256], strides = [1, 1]} : vector<1x384xf32> to vector<1x256xf32>
    %73 = vector.extract_strided_slice %67 {offsets = [0, 0], sizes = [1, 256], strides = [1, 1]} : vector<1x384xf32> to vector<1x256xf32>
    %74 = arith.addf %72, %73 : vector<1x256xf32>
    %75 = arith.negf %74 : vector<1x256xf32>
    %76 = math.exp %75 : vector<1x256xf32>
    %cst_36 = arith.constant 1.000000e+00 : f32
    %77 = vector.broadcast %cst_36 : f32 to vector<1x256xf32>
    %78 = arith.addf %77, %76 : vector<1x256xf32>
    %79 = arith.divf %77, %78 : vector<1x256xf32>
    %80 = vector.extract_strided_slice %79 {offsets = [0, 0], sizes = [1, 128], strides = [1, 1]} : vector<1x256xf32> to vector<1x128xf32>
    %81 = vector.extract_strided_slice %79 {offsets = [0, 128], sizes = [1, 128], strides = [1, 1]} : vector<1x256xf32> to vector<1x128xf32>
    %82 = vector.extract_strided_slice %71 {offsets = [0, 256], sizes = [1, 128], strides = [1, 1]} : vector<1x384xf32> to vector<1x128xf32>
    %83 = vector.extract_strided_slice %67 {offsets = [0, 256], sizes = [1, 128], strides = [1, 1]} : vector<1x384xf32> to vector<1x128xf32>
    %84 = arith.addf %83, %4 : vector<1x128xf32>
    %85 = arith.mulf %80, %84 : vector<1x128xf32>
    %86 = arith.addf %82, %85 : vector<1x128xf32>
    %87 = math.tanh %86 : vector<1x128xf32>
    %cst_37 = arith.constant 1.000000e+00 : f32
    %88 = vector.broadcast %cst_37 : f32 to vector<1x128xf32>
    %89 = arith.subf %88, %81 : vector<1x128xf32>
    %90 = arith.mulf %89, %87 : vector<1x128xf32>
    %91 = arith.mulf %81, %43 : vector<1x128xf32>
    %92 = arith.addf %90, %91 : vector<1x128xf32>
    %cst_38 = arith.constant dense<0.000000e+00> : vector<1x384xf32>
    %93 = tpu.matmul %92, %2, %cst_38 {dimension_numbers = #tpu.dot_dimension_numbers<[1], [0], [0], [1], [0, 0, 1, 1], [], []>} : vector<1x128xf32>, vector<128x384xf32>, vector<1x384xf32> -> vector<1x384xf32>
    %94 = arith.addf %93, %3 : vector<1x384xf32>
    %95 = vector.extract_strided_slice %94 {offsets = [0, 0], sizes = [1, 256], strides = [1, 1]} : vector<1x384xf32> to vector<1x256xf32>
    %96 = vector.extract_strided_slice %68 {offsets = [0, 0], sizes = [1, 256], strides = [1, 1]} : vector<1x384xf32> to vector<1x256xf32>
    %97 = arith.addf %95, %96 : vector<1x256xf32>
    %98 = arith.negf %97 : vector<1x256xf32>
    %99 = math.exp %98 : vector<1x256xf32>
    %cst_39 = arith.constant 1.000000e+00 : f32
    %100 = vector.broadcast %cst_39 : f32 to vector<1x256xf32>
    %101 = arith.addf %100, %99 : vector<1x256xf32>
    %102 = arith.divf %100, %101 : vector<1x256xf32>
    %103 = vector.extract_strided_slice %102 {offsets = [0, 0], sizes = [1, 128], strides = [1, 1]} : vector<1x256xf32> to vector<1x128xf32>
    %104 = vector.extract_strided_slice %102 {offsets = [0, 128], sizes = [1, 128], strides = [1, 1]} : vector<1x256xf32> to vector<1x128xf32>
    %105 = vector.extract_strided_slice %94 {offsets = [0, 256], sizes = [1, 128], strides = [1, 1]} : vector<1x384xf32> to vector<1x128xf32>
    %106 = vector.extract_strided_slice %68 {offsets = [0, 256], sizes = [1, 128], strides = [1, 1]} : vector<1x384xf32> to vector<1x128xf32>
    %107 = arith.addf %106, %5 : vector<1x128xf32>
    %108 = arith.mulf %103, %107 : vector<1x128xf32>
    %109 = arith.addf %105, %108 : vector<1x128xf32>
    %110 = math.tanh %109 : vector<1x128xf32>
    %cst_40 = arith.constant 1.000000e+00 : f32
    %111 = vector.broadcast %cst_40 : f32 to vector<1x128xf32>
    %112 = arith.subf %111, %104 : vector<1x128xf32>
    %113 = arith.mulf %112, %110 : vector<1x128xf32>
    %114 = arith.mulf %104, %66 : vector<1x128xf32>
    %115 = arith.addf %113, %114 : vector<1x128xf32>
    %c2_i32 = arith.constant 2 : i32
    %cst_41 = arith.constant dense<0.000000e+00> : vector<1x384xf32>
    %116 = tpu.matmul %92, %0, %cst_41 {dimension_numbers = #tpu.dot_dimension_numbers<[1], [0], [0], [1], [0, 0, 1, 1], [], []>} : vector<1x128xf32>, vector<128x384xf32>, vector<1x384xf32> -> vector<1x384xf32>
    %cst_42 = arith.constant dense<0.000000e+00> : vector<1x384xf32>
    %117 = tpu.matmul %115, %1, %cst_42 {dimension_numbers = #tpu.dot_dimension_numbers<[1], [0], [0], [1], [0, 0, 1, 1], [], []>} : vector<1x128xf32>, vector<128x384xf32>, vector<1x384xf32> -> vector<1x384xf32>
    %118 = arith.index_cast %c2_i32 : i32 to index
    %c0_43 = arith.constant 0 : index
    %c0_44 = arith.constant 0 : index
    %119 = vector.load %arg13[%118, %c0_43, %c0_44] : memref<8x1x384xf32, #tpu.memory_space<vmem>>, vector<1x1x384xf32>
    %120 = vector.shape_cast %119 : vector<1x1x384xf32> to vector<1x384xf32>
    %121 = vector.extract_strided_slice %120 {offsets = [0, 0], sizes = [1, 256], strides = [1, 1]} : vector<1x384xf32> to vector<1x256xf32>
    %122 = vector.extract_strided_slice %116 {offsets = [0, 0], sizes = [1, 256], strides = [1, 1]} : vector<1x384xf32> to vector<1x256xf32>
    %123 = arith.addf %121, %122 : vector<1x256xf32>
    %124 = arith.negf %123 : vector<1x256xf32>
    %125 = math.exp %124 : vector<1x256xf32>
    %cst_45 = arith.constant 1.000000e+00 : f32
    %126 = vector.broadcast %cst_45 : f32 to vector<1x256xf32>
    %127 = arith.addf %126, %125 : vector<1x256xf32>
    %128 = arith.divf %126, %127 : vector<1x256xf32>
    %129 = vector.extract_strided_slice %128 {offsets = [0, 0], sizes = [1, 128], strides = [1, 1]} : vector<1x256xf32> to vector<1x128xf32>
    %130 = vector.extract_strided_slice %128 {offsets = [0, 128], sizes = [1, 128], strides = [1, 1]} : vector<1x256xf32> to vector<1x128xf32>
    %131 = vector.extract_strided_slice %120 {offsets = [0, 256], sizes = [1, 128], strides = [1, 1]} : vector<1x384xf32> to vector<1x128xf32>
    %132 = vector.extract_strided_slice %116 {offsets = [0, 256], sizes = [1, 128], strides = [1, 1]} : vector<1x384xf32> to vector<1x128xf32>
    %133 = arith.addf %132, %4 : vector<1x128xf32>
    %134 = arith.mulf %129, %133 : vector<1x128xf32>
    %135 = arith.addf %131, %134 : vector<1x128xf32>
    %136 = math.tanh %135 : vector<1x128xf32>
    %cst_46 = arith.constant 1.000000e+00 : f32
    %137 = vector.broadcast %cst_46 : f32 to vector<1x128xf32>
    %138 = arith.subf %137, %130 : vector<1x128xf32>
    %139 = arith.mulf %138, %136 : vector<1x128xf32>
    %140 = arith.mulf %130, %92 : vector<1x128xf32>
    %141 = arith.addf %139, %140 : vector<1x128xf32>
    %cst_47 = arith.constant dense<0.000000e+00> : vector<1x384xf32>
    %142 = tpu.matmul %141, %2, %cst_47 {dimension_numbers = #tpu.dot_dimension_numbers<[1], [0], [0], [1], [0, 0, 1, 1], [], []>} : vector<1x128xf32>, vector<128x384xf32>, vector<1x384xf32> -> vector<1x384xf32>
    %143 = arith.addf %142, %3 : vector<1x384xf32>
    %144 = vector.extract_strided_slice %143 {offsets = [0, 0], sizes = [1, 256], strides = [1, 1]} : vector<1x384xf32> to vector<1x256xf32>
    %145 = vector.extract_strided_slice %117 {offsets = [0, 0], sizes = [1, 256], strides = [1, 1]} : vector<1x384xf32> to vector<1x256xf32>
    %146 = arith.addf %144, %145 : vector<1x256xf32>
    %147 = arith.negf %146 : vector<1x256xf32>
    %148 = math.exp %147 : vector<1x256xf32>
    %cst_48 = arith.constant 1.000000e+00 : f32
    %149 = vector.broadcast %cst_48 : f32 to vector<1x256xf32>
    %150 = arith.addf %149, %148 : vector<1x256xf32>
    %151 = arith.divf %149, %150 : vector<1x256xf32>
    %152 = vector.extract_strided_slice %151 {offsets = [0, 0], sizes = [1, 128], strides = [1, 1]} : vector<1x256xf32> to vector<1x128xf32>
    %153 = vector.extract_strided_slice %151 {offsets = [0, 128], sizes = [1, 128], strides = [1, 1]} : vector<1x256xf32> to vector<1x128xf32>
    %154 = vector.extract_strided_slice %143 {offsets = [0, 256], sizes = [1, 128], strides = [1, 1]} : vector<1x384xf32> to vector<1x128xf32>
    %155 = vector.extract_strided_slice %117 {offsets = [0, 256], sizes = [1, 128], strides = [1, 1]} : vector<1x384xf32> to vector<1x128xf32>
    %156 = arith.addf %155, %5 : vector<1x128xf32>
    %157 = arith.mulf %152, %156 : vector<1x128xf32>
    %158 = arith.addf %154, %157 : vector<1x128xf32>
    %159 = math.tanh %158 : vector<1x128xf32>
    %cst_49 = arith.constant 1.000000e+00 : f32
    %160 = vector.broadcast %cst_49 : f32 to vector<1x128xf32>
    %161 = arith.subf %160, %153 : vector<1x128xf32>
    %162 = arith.mulf %161, %159 : vector<1x128xf32>
    %163 = arith.mulf %153, %115 : vector<1x128xf32>
    %164 = arith.addf %162, %163 : vector<1x128xf32>
    %c3_i32 = arith.constant 3 : i32
    %cst_50 = arith.constant dense<0.000000e+00> : vector<1x384xf32>
    %165 = tpu.matmul %141, %0, %cst_50 {dimension_numbers = #tpu.dot_dimension_numbers<[1], [0], [0], [1], [0, 0, 1, 1], [], []>} : vector<1x128xf32>, vector<128x384xf32>, vector<1x384xf32> -> vector<1x384xf32>
    %cst_51 = arith.constant dense<0.000000e+00> : vector<1x384xf32>
    %166 = tpu.matmul %164, %1, %cst_51 {dimension_numbers = #tpu.dot_dimension_numbers<[1], [0], [0], [1], [0, 0, 1, 1], [], []>} : vector<1x128xf32>, vector<128x384xf32>, vector<1x384xf32> -> vector<1x384xf32>
    %167 = arith.index_cast %c3_i32 : i32 to index
    %c0_52 = arith.constant 0 : index
    %c0_53 = arith.constant 0 : index
    %168 = vector.load %arg13[%167, %c0_52, %c0_53] : memref<8x1x384xf32, #tpu.memory_space<vmem>>, vector<1x1x384xf32>
    %169 = vector.shape_cast %168 : vector<1x1x384xf32> to vector<1x384xf32>
    %170 = vector.extract_strided_slice %169 {offsets = [0, 0], sizes = [1, 256], strides = [1, 1]} : vector<1x384xf32> to vector<1x256xf32>
    %171 = vector.extract_strided_slice %165 {offsets = [0, 0], sizes = [1, 256], strides = [1, 1]} : vector<1x384xf32> to vector<1x256xf32>
    %172 = arith.addf %170, %171 : vector<1x256xf32>
    %173 = arith.negf %172 : vector<1x256xf32>
    %174 = math.exp %173 : vector<1x256xf32>
    %cst_54 = arith.constant 1.000000e+00 : f32
    %175 = vector.broadcast %cst_54 : f32 to vector<1x256xf32>
    %176 = arith.addf %175, %174 : vector<1x256xf32>
    %177 = arith.divf %175, %176 : vector<1x256xf32>
    %178 = vector.extract_strided_slice %177 {offsets = [0, 0], sizes = [1, 128], strides = [1, 1]} : vector<1x256xf32> to vector<1x128xf32>
    %179 = vector.extract_strided_slice %177 {offsets = [0, 128], sizes = [1, 128], strides = [1, 1]} : vector<1x256xf32> to vector<1x128xf32>
    %180 = vector.extract_strided_slice %169 {offsets = [0, 256], sizes = [1, 128], strides = [1, 1]} : vector<1x384xf32> to vector<1x128xf32>
    %181 = vector.extract_strided_slice %165 {offsets = [0, 256], sizes = [1, 128], strides = [1, 1]} : vector<1x384xf32> to vector<1x128xf32>
    %182 = arith.addf %181, %4 : vector<1x128xf32>
    %183 = arith.mulf %178, %182 : vector<1x128xf32>
    %184 = arith.addf %180, %183 : vector<1x128xf32>
    %185 = math.tanh %184 : vector<1x128xf32>
    %cst_55 = arith.constant 1.000000e+00 : f32
    %186 = vector.broadcast %cst_55 : f32 to vector<1x128xf32>
    %187 = arith.subf %186, %179 : vector<1x128xf32>
    %188 = arith.mulf %187, %185 : vector<1x128xf32>
    %189 = arith.mulf %179, %141 : vector<1x128xf32>
    %190 = arith.addf %188, %189 : vector<1x128xf32>
    %cst_56 = arith.constant dense<0.000000e+00> : vector<1x384xf32>
    %191 = tpu.matmul %190, %2, %cst_56 {dimension_numbers = #tpu.dot_dimension_numbers<[1], [0], [0], [1], [0, 0, 1, 1], [], []>} : vector<1x128xf32>, vector<128x384xf32>, vector<1x384xf32> -> vector<1x384xf32>
    %192 = arith.addf %191, %3 : vector<1x384xf32>
    %193 = vector.extract_strided_slice %192 {offsets = [0, 0], sizes = [1, 256], strides = [1, 1]} : vector<1x384xf32> to vector<1x256xf32>
    %194 = vector.extract_strided_slice %166 {offsets = [0, 0], sizes = [1, 256], strides = [1, 1]} : vector<1x384xf32> to vector<1x256xf32>
    %195 = arith.addf %193, %194 : vector<1x256xf32>
    %196 = arith.negf %195 : vector<1x256xf32>
    %197 = math.exp %196 : vector<1x256xf32>
    %cst_57 = arith.constant 1.000000e+00 : f32
    %198 = vector.broadcast %cst_57 : f32 to vector<1x256xf32>
    %199 = arith.addf %198, %197 : vector<1x256xf32>
    %200 = arith.divf %198, %199 : vector<1x256xf32>
    %201 = vector.extract_strided_slice %200 {offsets = [0, 0], sizes = [1, 128], strides = [1, 1]} : vector<1x256xf32> to vector<1x128xf32>
    %202 = vector.extract_strided_slice %200 {offsets = [0, 128], sizes = [1, 128], strides = [1, 1]} : vector<1x256xf32> to vector<1x128xf32>
    %203 = vector.extract_strided_slice %192 {offsets = [0, 256], sizes = [1, 128], strides = [1, 1]} : vector<1x384xf32> to vector<1x128xf32>
    %204 = vector.extract_strided_slice %166 {offsets = [0, 256], sizes = [1, 128], strides = [1, 1]} : vector<1x384xf32> to vector<1x128xf32>
    %205 = arith.addf %204, %5 : vector<1x128xf32>
    %206 = arith.mulf %201, %205 : vector<1x128xf32>
    %207 = arith.addf %203, %206 : vector<1x128xf32>
    %208 = math.tanh %207 : vector<1x128xf32>
    %cst_58 = arith.constant 1.000000e+00 : f32
    %209 = vector.broadcast %cst_58 : f32 to vector<1x128xf32>
    %210 = arith.subf %209, %202 : vector<1x128xf32>
    %211 = arith.mulf %210, %208 : vector<1x128xf32>
    %212 = arith.mulf %202, %164 : vector<1x128xf32>
    %213 = arith.addf %211, %212 : vector<1x128xf32>
    %c4_i32 = arith.constant 4 : i32
    %cst_59 = arith.constant dense<0.000000e+00> : vector<1x384xf32>
    %214 = tpu.matmul %190, %0, %cst_59 {dimension_numbers = #tpu.dot_dimension_numbers<[1], [0], [0], [1], [0, 0, 1, 1], [], []>} : vector<1x128xf32>, vector<128x384xf32>, vector<1x384xf32> -> vector<1x384xf32>
    %cst_60 = arith.constant dense<0.000000e+00> : vector<1x384xf32>
    %215 = tpu.matmul %213, %1, %cst_60 {dimension_numbers = #tpu.dot_dimension_numbers<[1], [0], [0], [1], [0, 0, 1, 1], [], []>} : vector<1x128xf32>, vector<128x384xf32>, vector<1x384xf32> -> vector<1x384xf32>
    %216 = arith.index_cast %c4_i32 : i32 to index
    %c0_61 = arith.constant 0 : index
    %c0_62 = arith.constant 0 : index
    %217 = vector.load %arg13[%216, %c0_61, %c0_62] : memref<8x1x384xf32, #tpu.memory_space<vmem>>, vector<1x1x384xf32>
    %218 = vector.shape_cast %217 : vector<1x1x384xf32> to vector<1x384xf32>
    %219 = vector.extract_strided_slice %218 {offsets = [0, 0], sizes = [1, 256], strides = [1, 1]} : vector<1x384xf32> to vector<1x256xf32>
    %220 = vector.extract_strided_slice %214 {offsets = [0, 0], sizes = [1, 256], strides = [1, 1]} : vector<1x384xf32> to vector<1x256xf32>
    %221 = arith.addf %219, %220 : vector<1x256xf32>
    %222 = arith.negf %221 : vector<1x256xf32>
    %223 = math.exp %222 : vector<1x256xf32>
    %cst_63 = arith.constant 1.000000e+00 : f32
    %224 = vector.broadcast %cst_63 : f32 to vector<1x256xf32>
    %225 = arith.addf %224, %223 : vector<1x256xf32>
    %226 = arith.divf %224, %225 : vector<1x256xf32>
    %227 = vector.extract_strided_slice %226 {offsets = [0, 0], sizes = [1, 128], strides = [1, 1]} : vector<1x256xf32> to vector<1x128xf32>
    %228 = vector.extract_strided_slice %226 {offsets = [0, 128], sizes = [1, 128], strides = [1, 1]} : vector<1x256xf32> to vector<1x128xf32>
    %229 = vector.extract_strided_slice %218 {offsets = [0, 256], sizes = [1, 128], strides = [1, 1]} : vector<1x384xf32> to vector<1x128xf32>
    %230 = vector.extract_strided_slice %214 {offsets = [0, 256], sizes = [1, 128], strides = [1, 1]} : vector<1x384xf32> to vector<1x128xf32>
    %231 = arith.addf %230, %4 : vector<1x128xf32>
    %232 = arith.mulf %227, %231 : vector<1x128xf32>
    %233 = arith.addf %229, %232 : vector<1x128xf32>
    %234 = math.tanh %233 : vector<1x128xf32>
    %cst_64 = arith.constant 1.000000e+00 : f32
    %235 = vector.broadcast %cst_64 : f32 to vector<1x128xf32>
    %236 = arith.subf %235, %228 : vector<1x128xf32>
    %237 = arith.mulf %236, %234 : vector<1x128xf32>
    %238 = arith.mulf %228, %190 : vector<1x128xf32>
    %239 = arith.addf %237, %238 : vector<1x128xf32>
    %cst_65 = arith.constant dense<0.000000e+00> : vector<1x384xf32>
    %240 = tpu.matmul %239, %2, %cst_65 {dimension_numbers = #tpu.dot_dimension_numbers<[1], [0], [0], [1], [0, 0, 1, 1], [], []>} : vector<1x128xf32>, vector<128x384xf32>, vector<1x384xf32> -> vector<1x384xf32>
    %241 = arith.addf %240, %3 : vector<1x384xf32>
    %242 = vector.extract_strided_slice %241 {offsets = [0, 0], sizes = [1, 256], strides = [1, 1]} : vector<1x384xf32> to vector<1x256xf32>
    %243 = vector.extract_strided_slice %215 {offsets = [0, 0], sizes = [1, 256], strides = [1, 1]} : vector<1x384xf32> to vector<1x256xf32>
    %244 = arith.addf %242, %243 : vector<1x256xf32>
    %245 = arith.negf %244 : vector<1x256xf32>
    %246 = math.exp %245 : vector<1x256xf32>
    %cst_66 = arith.constant 1.000000e+00 : f32
    %247 = vector.broadcast %cst_66 : f32 to vector<1x256xf32>
    %248 = arith.addf %247, %246 : vector<1x256xf32>
    %249 = arith.divf %247, %248 : vector<1x256xf32>
    %250 = vector.extract_strided_slice %249 {offsets = [0, 0], sizes = [1, 128], strides = [1, 1]} : vector<1x256xf32> to vector<1x128xf32>
    %251 = vector.extract_strided_slice %249 {offsets = [0, 128], sizes = [1, 128], strides = [1, 1]} : vector<1x256xf32> to vector<1x128xf32>
    %252 = vector.extract_strided_slice %241 {offsets = [0, 256], sizes = [1, 128], strides = [1, 1]} : vector<1x384xf32> to vector<1x128xf32>
    %253 = vector.extract_strided_slice %215 {offsets = [0, 256], sizes = [1, 128], strides = [1, 1]} : vector<1x384xf32> to vector<1x128xf32>
    %254 = arith.addf %253, %5 : vector<1x128xf32>
    %255 = arith.mulf %250, %254 : vector<1x128xf32>
    %256 = arith.addf %252, %255 : vector<1x128xf32>
    %257 = math.tanh %256 : vector<1x128xf32>
    %cst_67 = arith.constant 1.000000e+00 : f32
    %258 = vector.broadcast %cst_67 : f32 to vector<1x128xf32>
    %259 = arith.subf %258, %251 : vector<1x128xf32>
    %260 = arith.mulf %259, %257 : vector<1x128xf32>
    %261 = arith.mulf %251, %213 : vector<1x128xf32>
    %262 = arith.addf %260, %261 : vector<1x128xf32>
    %c5_i32 = arith.constant 5 : i32
    %cst_68 = arith.constant dense<0.000000e+00> : vector<1x384xf32>
    %263 = tpu.matmul %239, %0, %cst_68 {dimension_numbers = #tpu.dot_dimension_numbers<[1], [0], [0], [1], [0, 0, 1, 1], [], []>} : vector<1x128xf32>, vector<128x384xf32>, vector<1x384xf32> -> vector<1x384xf32>
    %cst_69 = arith.constant dense<0.000000e+00> : vector<1x384xf32>
    %264 = tpu.matmul %262, %1, %cst_69 {dimension_numbers = #tpu.dot_dimension_numbers<[1], [0], [0], [1], [0, 0, 1, 1], [], []>} : vector<1x128xf32>, vector<128x384xf32>, vector<1x384xf32> -> vector<1x384xf32>
    %265 = arith.index_cast %c5_i32 : i32 to index
    %c0_70 = arith.constant 0 : index
    %c0_71 = arith.constant 0 : index
    %266 = vector.load %arg13[%265, %c0_70, %c0_71] : memref<8x1x384xf32, #tpu.memory_space<vmem>>, vector<1x1x384xf32>
    %267 = vector.shape_cast %266 : vector<1x1x384xf32> to vector<1x384xf32>
    %268 = vector.extract_strided_slice %267 {offsets = [0, 0], sizes = [1, 256], strides = [1, 1]} : vector<1x384xf32> to vector<1x256xf32>
    %269 = vector.extract_strided_slice %263 {offsets = [0, 0], sizes = [1, 256], strides = [1, 1]} : vector<1x384xf32> to vector<1x256xf32>
    %270 = arith.addf %268, %269 : vector<1x256xf32>
    %271 = arith.negf %270 : vector<1x256xf32>
    %272 = math.exp %271 : vector<1x256xf32>
    %cst_72 = arith.constant 1.000000e+00 : f32
    %273 = vector.broadcast %cst_72 : f32 to vector<1x256xf32>
    %274 = arith.addf %273, %272 : vector<1x256xf32>
    %275 = arith.divf %273, %274 : vector<1x256xf32>
    %276 = vector.extract_strided_slice %275 {offsets = [0, 0], sizes = [1, 128], strides = [1, 1]} : vector<1x256xf32> to vector<1x128xf32>
    %277 = vector.extract_strided_slice %275 {offsets = [0, 128], sizes = [1, 128], strides = [1, 1]} : vector<1x256xf32> to vector<1x128xf32>
    %278 = vector.extract_strided_slice %267 {offsets = [0, 256], sizes = [1, 128], strides = [1, 1]} : vector<1x384xf32> to vector<1x128xf32>
    %279 = vector.extract_strided_slice %263 {offsets = [0, 256], sizes = [1, 128], strides = [1, 1]} : vector<1x384xf32> to vector<1x128xf32>
    %280 = arith.addf %279, %4 : vector<1x128xf32>
    %281 = arith.mulf %276, %280 : vector<1x128xf32>
    %282 = arith.addf %278, %281 : vector<1x128xf32>
    %283 = math.tanh %282 : vector<1x128xf32>
    %cst_73 = arith.constant 1.000000e+00 : f32
    %284 = vector.broadcast %cst_73 : f32 to vector<1x128xf32>
    %285 = arith.subf %284, %277 : vector<1x128xf32>
    %286 = arith.mulf %285, %283 : vector<1x128xf32>
    %287 = arith.mulf %277, %239 : vector<1x128xf32>
    %288 = arith.addf %286, %287 : vector<1x128xf32>
    %cst_74 = arith.constant dense<0.000000e+00> : vector<1x384xf32>
    %289 = tpu.matmul %288, %2, %cst_74 {dimension_numbers = #tpu.dot_dimension_numbers<[1], [0], [0], [1], [0, 0, 1, 1], [], []>} : vector<1x128xf32>, vector<128x384xf32>, vector<1x384xf32> -> vector<1x384xf32>
    %290 = arith.addf %289, %3 : vector<1x384xf32>
    %291 = vector.extract_strided_slice %290 {offsets = [0, 0], sizes = [1, 256], strides = [1, 1]} : vector<1x384xf32> to vector<1x256xf32>
    %292 = vector.extract_strided_slice %264 {offsets = [0, 0], sizes = [1, 256], strides = [1, 1]} : vector<1x384xf32> to vector<1x256xf32>
    %293 = arith.addf %291, %292 : vector<1x256xf32>
    %294 = arith.negf %293 : vector<1x256xf32>
    %295 = math.exp %294 : vector<1x256xf32>
    %cst_75 = arith.constant 1.000000e+00 : f32
    %296 = vector.broadcast %cst_75 : f32 to vector<1x256xf32>
    %297 = arith.addf %296, %295 : vector<1x256xf32>
    %298 = arith.divf %296, %297 : vector<1x256xf32>
    %299 = vector.extract_strided_slice %298 {offsets = [0, 0], sizes = [1, 128], strides = [1, 1]} : vector<1x256xf32> to vector<1x128xf32>
    %300 = vector.extract_strided_slice %298 {offsets = [0, 128], sizes = [1, 128], strides = [1, 1]} : vector<1x256xf32> to vector<1x128xf32>
    %301 = vector.extract_strided_slice %290 {offsets = [0, 256], sizes = [1, 128], strides = [1, 1]} : vector<1x384xf32> to vector<1x128xf32>
    %302 = vector.extract_strided_slice %264 {offsets = [0, 256], sizes = [1, 128], strides = [1, 1]} : vector<1x384xf32> to vector<1x128xf32>
    %303 = arith.addf %302, %5 : vector<1x128xf32>
    %304 = arith.mulf %299, %303 : vector<1x128xf32>
    %305 = arith.addf %301, %304 : vector<1x128xf32>
    %306 = math.tanh %305 : vector<1x128xf32>
    %cst_76 = arith.constant 1.000000e+00 : f32
    %307 = vector.broadcast %cst_76 : f32 to vector<1x128xf32>
    %308 = arith.subf %307, %300 : vector<1x128xf32>
    %309 = arith.mulf %308, %306 : vector<1x128xf32>
    %310 = arith.mulf %300, %262 : vector<1x128xf32>
    %311 = arith.addf %309, %310 : vector<1x128xf32>
    %c6_i32 = arith.constant 6 : i32
    %cst_77 = arith.constant dense<0.000000e+00> : vector<1x384xf32>
    %312 = tpu.matmul %288, %0, %cst_77 {dimension_numbers = #tpu.dot_dimension_numbers<[1], [0], [0], [1], [0, 0, 1, 1], [], []>} : vector<1x128xf32>, vector<128x384xf32>, vector<1x384xf32> -> vector<1x384xf32>
    %cst_78 = arith.constant dense<0.000000e+00> : vector<1x384xf32>
    %313 = tpu.matmul %311, %1, %cst_78 {dimension_numbers = #tpu.dot_dimension_numbers<[1], [0], [0], [1], [0, 0, 1, 1], [], []>} : vector<1x128xf32>, vector<128x384xf32>, vector<1x384xf32> -> vector<1x384xf32>
    %314 = arith.index_cast %c6_i32 : i32 to index
    %c0_79 = arith.constant 0 : index
    %c0_80 = arith.constant 0 : index
    %315 = vector.load %arg13[%314, %c0_79, %c0_80] : memref<8x1x384xf32, #tpu.memory_space<vmem>>, vector<1x1x384xf32>
    %316 = vector.shape_cast %315 : vector<1x1x384xf32> to vector<1x384xf32>
    %317 = vector.extract_strided_slice %316 {offsets = [0, 0], sizes = [1, 256], strides = [1, 1]} : vector<1x384xf32> to vector<1x256xf32>
    %318 = vector.extract_strided_slice %312 {offsets = [0, 0], sizes = [1, 256], strides = [1, 1]} : vector<1x384xf32> to vector<1x256xf32>
    %319 = arith.addf %317, %318 : vector<1x256xf32>
    %320 = arith.negf %319 : vector<1x256xf32>
    %321 = math.exp %320 : vector<1x256xf32>
    %cst_81 = arith.constant 1.000000e+00 : f32
    %322 = vector.broadcast %cst_81 : f32 to vector<1x256xf32>
    %323 = arith.addf %322, %321 : vector<1x256xf32>
    %324 = arith.divf %322, %323 : vector<1x256xf32>
    %325 = vector.extract_strided_slice %324 {offsets = [0, 0], sizes = [1, 128], strides = [1, 1]} : vector<1x256xf32> to vector<1x128xf32>
    %326 = vector.extract_strided_slice %324 {offsets = [0, 128], sizes = [1, 128], strides = [1, 1]} : vector<1x256xf32> to vector<1x128xf32>
    %327 = vector.extract_strided_slice %316 {offsets = [0, 256], sizes = [1, 128], strides = [1, 1]} : vector<1x384xf32> to vector<1x128xf32>
    %328 = vector.extract_strided_slice %312 {offsets = [0, 256], sizes = [1, 128], strides = [1, 1]} : vector<1x384xf32> to vector<1x128xf32>
    %329 = arith.addf %328, %4 : vector<1x128xf32>
    %330 = arith.mulf %325, %329 : vector<1x128xf32>
    %331 = arith.addf %327, %330 : vector<1x128xf32>
    %332 = math.tanh %331 : vector<1x128xf32>
    %cst_82 = arith.constant 1.000000e+00 : f32
    %333 = vector.broadcast %cst_82 : f32 to vector<1x128xf32>
    %334 = arith.subf %333, %326 : vector<1x128xf32>
    %335 = arith.mulf %334, %332 : vector<1x128xf32>
    %336 = arith.mulf %326, %288 : vector<1x128xf32>
    %337 = arith.addf %335, %336 : vector<1x128xf32>
    %cst_83 = arith.constant dense<0.000000e+00> : vector<1x384xf32>
    %338 = tpu.matmul %337, %2, %cst_83 {dimension_numbers = #tpu.dot_dimension_numbers<[1], [0], [0], [1], [0, 0, 1, 1], [], []>} : vector<1x128xf32>, vector<128x384xf32>, vector<1x384xf32> -> vector<1x384xf32>
    %339 = arith.addf %338, %3 : vector<1x384xf32>
    %340 = vector.extract_strided_slice %339 {offsets = [0, 0], sizes = [1, 256], strides = [1, 1]} : vector<1x384xf32> to vector<1x256xf32>
    %341 = vector.extract_strided_slice %313 {offsets = [0, 0], sizes = [1, 256], strides = [1, 1]} : vector<1x384xf32> to vector<1x256xf32>
    %342 = arith.addf %340, %341 : vector<1x256xf32>
    %343 = arith.negf %342 : vector<1x256xf32>
    %344 = math.exp %343 : vector<1x256xf32>
    %cst_84 = arith.constant 1.000000e+00 : f32
    %345 = vector.broadcast %cst_84 : f32 to vector<1x256xf32>
    %346 = arith.addf %345, %344 : vector<1x256xf32>
    %347 = arith.divf %345, %346 : vector<1x256xf32>
    %348 = vector.extract_strided_slice %347 {offsets = [0, 0], sizes = [1, 128], strides = [1, 1]} : vector<1x256xf32> to vector<1x128xf32>
    %349 = vector.extract_strided_slice %347 {offsets = [0, 128], sizes = [1, 128], strides = [1, 1]} : vector<1x256xf32> to vector<1x128xf32>
    %350 = vector.extract_strided_slice %339 {offsets = [0, 256], sizes = [1, 128], strides = [1, 1]} : vector<1x384xf32> to vector<1x128xf32>
    %351 = vector.extract_strided_slice %313 {offsets = [0, 256], sizes = [1, 128], strides = [1, 1]} : vector<1x384xf32> to vector<1x128xf32>
    %352 = arith.addf %351, %5 : vector<1x128xf32>
    %353 = arith.mulf %348, %352 : vector<1x128xf32>
    %354 = arith.addf %350, %353 : vector<1x128xf32>
    %355 = math.tanh %354 : vector<1x128xf32>
    %cst_85 = arith.constant 1.000000e+00 : f32
    %356 = vector.broadcast %cst_85 : f32 to vector<1x128xf32>
    %357 = arith.subf %356, %349 : vector<1x128xf32>
    %358 = arith.mulf %357, %355 : vector<1x128xf32>
    %359 = arith.mulf %349, %311 : vector<1x128xf32>
    %360 = arith.addf %358, %359 : vector<1x128xf32>
    %c7_i32 = arith.constant 7 : i32
    %cst_86 = arith.constant dense<0.000000e+00> : vector<1x384xf32>
    %361 = tpu.matmul %337, %0, %cst_86 {dimension_numbers = #tpu.dot_dimension_numbers<[1], [0], [0], [1], [0, 0, 1, 1], [], []>} : vector<1x128xf32>, vector<128x384xf32>, vector<1x384xf32> -> vector<1x384xf32>
    %cst_87 = arith.constant dense<0.000000e+00> : vector<1x384xf32>
    %362 = tpu.matmul %360, %1, %cst_87 {dimension_numbers = #tpu.dot_dimension_numbers<[1], [0], [0], [1], [0, 0, 1, 1], [], []>} : vector<1x128xf32>, vector<128x384xf32>, vector<1x384xf32> -> vector<1x384xf32>
    %363 = arith.index_cast %c7_i32 : i32 to index
    %c0_88 = arith.constant 0 : index
    %c0_89 = arith.constant 0 : index
    %364 = vector.load %arg13[%363, %c0_88, %c0_89] : memref<8x1x384xf32, #tpu.memory_space<vmem>>, vector<1x1x384xf32>
    %365 = vector.shape_cast %364 : vector<1x1x384xf32> to vector<1x384xf32>
    %366 = vector.extract_strided_slice %365 {offsets = [0, 0], sizes = [1, 256], strides = [1, 1]} : vector<1x384xf32> to vector<1x256xf32>
    %367 = vector.extract_strided_slice %361 {offsets = [0, 0], sizes = [1, 256], strides = [1, 1]} : vector<1x384xf32> to vector<1x256xf32>
    %368 = arith.addf %366, %367 : vector<1x256xf32>
    %369 = arith.negf %368 : vector<1x256xf32>
    %370 = math.exp %369 : vector<1x256xf32>
    %cst_90 = arith.constant 1.000000e+00 : f32
    %371 = vector.broadcast %cst_90 : f32 to vector<1x256xf32>
    %372 = arith.addf %371, %370 : vector<1x256xf32>
    %373 = arith.divf %371, %372 : vector<1x256xf32>
    %374 = vector.extract_strided_slice %373 {offsets = [0, 0], sizes = [1, 128], strides = [1, 1]} : vector<1x256xf32> to vector<1x128xf32>
    %375 = vector.extract_strided_slice %373 {offsets = [0, 128], sizes = [1, 128], strides = [1, 1]} : vector<1x256xf32> to vector<1x128xf32>
    %376 = vector.extract_strided_slice %365 {offsets = [0, 256], sizes = [1, 128], strides = [1, 1]} : vector<1x384xf32> to vector<1x128xf32>
    %377 = vector.extract_strided_slice %361 {offsets = [0, 256], sizes = [1, 128], strides = [1, 1]} : vector<1x384xf32> to vector<1x128xf32>
    %378 = arith.addf %377, %4 : vector<1x128xf32>
    %379 = arith.mulf %374, %378 : vector<1x128xf32>
    %380 = arith.addf %376, %379 : vector<1x128xf32>
    %381 = math.tanh %380 : vector<1x128xf32>
    %cst_91 = arith.constant 1.000000e+00 : f32
    %382 = vector.broadcast %cst_91 : f32 to vector<1x128xf32>
    %383 = arith.subf %382, %375 : vector<1x128xf32>
    %384 = arith.mulf %383, %381 : vector<1x128xf32>
    %385 = arith.mulf %375, %337 : vector<1x128xf32>
    %386 = arith.addf %384, %385 : vector<1x128xf32>
    %cst_92 = arith.constant dense<0.000000e+00> : vector<1x384xf32>
    %387 = tpu.matmul %386, %2, %cst_92 {dimension_numbers = #tpu.dot_dimension_numbers<[1], [0], [0], [1], [0, 0, 1, 1], [], []>} : vector<1x128xf32>, vector<128x384xf32>, vector<1x384xf32> -> vector<1x384xf32>
    %388 = arith.addf %387, %3 : vector<1x384xf32>
    %389 = vector.extract_strided_slice %388 {offsets = [0, 0], sizes = [1, 256], strides = [1, 1]} : vector<1x384xf32> to vector<1x256xf32>
    %390 = vector.extract_strided_slice %362 {offsets = [0, 0], sizes = [1, 256], strides = [1, 1]} : vector<1x384xf32> to vector<1x256xf32>
    %391 = arith.addf %389, %390 : vector<1x256xf32>
    %392 = arith.negf %391 : vector<1x256xf32>
    %393 = math.exp %392 : vector<1x256xf32>
    %cst_93 = arith.constant 1.000000e+00 : f32
    %394 = vector.broadcast %cst_93 : f32 to vector<1x256xf32>
    %395 = arith.addf %394, %393 : vector<1x256xf32>
    %396 = arith.divf %394, %395 : vector<1x256xf32>
    %397 = vector.extract_strided_slice %396 {offsets = [0, 0], sizes = [1, 128], strides = [1, 1]} : vector<1x256xf32> to vector<1x128xf32>
    %398 = vector.extract_strided_slice %396 {offsets = [0, 128], sizes = [1, 128], strides = [1, 1]} : vector<1x256xf32> to vector<1x128xf32>
    %399 = vector.extract_strided_slice %388 {offsets = [0, 256], sizes = [1, 128], strides = [1, 1]} : vector<1x384xf32> to vector<1x128xf32>
    %400 = vector.extract_strided_slice %362 {offsets = [0, 256], sizes = [1, 128], strides = [1, 1]} : vector<1x384xf32> to vector<1x128xf32>
    %401 = arith.addf %400, %5 : vector<1x128xf32>
    %402 = arith.mulf %397, %401 : vector<1x128xf32>
    %403 = arith.addf %399, %402 : vector<1x128xf32>
    %404 = math.tanh %403 : vector<1x128xf32>
    %cst_94 = arith.constant 1.000000e+00 : f32
    %405 = vector.broadcast %cst_94 : f32 to vector<1x128xf32>
    %406 = arith.subf %405, %398 : vector<1x128xf32>
    %407 = arith.mulf %406, %404 : vector<1x128xf32>
    %408 = arith.mulf %398, %360 : vector<1x128xf32>
    %409 = arith.addf %407, %408 : vector<1x128xf32>
    %c8_i32 = arith.constant 8 : i32
    %c0_95 = arith.constant 0 : index
    %c0_96 = arith.constant 0 : index
    %410 = vector.load %arg10[%c0_95, %c0_96] : memref<128x1xf32, #tpu.memory_space<vmem>>, vector<128x1xf32>
    %cst_97 = arith.constant dense<0.000000e+00> : vector<1x1xf32>
    %411 = tpu.matmul %409, %410, %cst_97 {dimension_numbers = #tpu.dot_dimension_numbers<[1], [0], [0], [1], [0, 0, 1, 1], [], []>} : vector<1x128xf32>, vector<128x1xf32>, vector<1x1xf32> -> vector<1x1xf32>
    %c0_98 = arith.constant 0 : index
    %c0_99 = arith.constant 0 : index
    %412 = vector.load %arg11[%c0_98, %c0_99] : memref<1x1xf32, #tpu.memory_space<vmem>>, vector<1x1xf32>
    %413 = arith.addf %411, %412 : vector<1x1xf32>
    %c0_100 = arith.constant 0 : index
    %c0_101 = arith.constant 0 : index
    %c0_102 = arith.constant 0 : index
    %414 = vector.load %arg12[%c0_100, %c0_101, %c0_102] : memref<1x1x1xf32, #tpu.memory_space<vmem>>, vector<1x1x1xf32>
    %415 = vector.shape_cast %414 : vector<1x1x1xf32> to vector<1x1xf32>
    %416 = vector.shape_cast %413 : vector<1x1xf32> to vector<1x1x1xf32>
    tpu.vector_store %arg12[%c0_100, %c0_101, %c0_102], %416 {strides = array<i32>} : memref<1x1x1xf32, #tpu.memory_space<vmem>>, vector<1x1x1xf32>,
    return
  }
  func.func @transform_0(%arg0: i32) -> (i32, i32, i32) {
    %c0_i32 = arith.constant 0 : i32
    %c0_i32_0 = arith.constant 0 : i32
    %c0_i32_1 = arith.constant 0 : i32
    return %arg0, %c0_i32, %c0_i32_0 : i32, i32, i32
  }
  func.func @transform_1(%arg0: i32) -> (i32, i32) {
    %c0_i32 = arith.constant 0 : i32
    %c0_i32_0 = arith.constant 0 : i32
    %c0_i32_1 = arith.constant 0 : i32
    return %c0_i32, %c0_i32_0 : i32, i32
  }
  func.func @transform_2(%arg0: i32) -> (i32, i32) {
    %c0_i32 = arith.constant 0 : i32
    %c0_i32_0 = arith.constant 0 : i32
    %c0_i32_1 = arith.constant 0 : i32
    return %c0_i32, %c0_i32_0 : i32, i32
  }
  func.func @transform_3(%arg0: i32) -> (i32, i32) {
    %c0_i32 = arith.constant 0 : i32
    %c0_i32_0 = arith.constant 0 : i32
    %c0_i32_1 = arith.constant 0 : i32
    return %c0_i32, %c0_i32_0 : i32, i32
  }
  func.func @transform_4(%arg0: i32) -> (i32, i32) {
    %c0_i32 = arith.constant 0 : i32
    %c0_i32_0 = arith.constant 0 : i32
    %c0_i32_1 = arith.constant 0 : i32
    return %c0_i32, %c0_i32_0 : i32, i32
  }
  func.func @transform_5(%arg0: i32) -> (i32, i32) {
    %c0_i32 = arith.constant 0 : i32
    %c0_i32_0 = arith.constant 0 : i32
    %c0_i32_1 = arith.constant 0 : i32
    return %c0_i32, %c0_i32_0 : i32, i32
  }
  func.func @transform_6(%arg0: i32) -> (i32, i32) {
    %c0_i32 = arith.constant 0 : i32
    %c0_i32_0 = arith.constant 0 : i32
    %c0_i32_1 = arith.constant 0 : i32
    return %c0_i32, %c0_i32_0 : i32, i32
  }
  func.func @transform_7(%arg0: i32) -> (i32, i32) {
    %c0_i32 = arith.constant 0 : i32
    %c0_i32_0 = arith.constant 0 : i32
    %c0_i32_1 = arith.constant 0 : i32
    return %c0_i32, %c0_i32_0 : i32, i32
  }
  func.func @transform_8(%arg0: i32) -> (i32, i32) {
    %c0_i32 = arith.constant 0 : i32
    %c0_i32_0 = arith.constant 0 : i32
    %c0_i32_1 = arith.constant 0 : i32
    return %c0_i32, %c0_i32_0 : i32, i32
  }
  func.func @transform_9(%arg0: i32) -> (i32, i32) {
    %c0_i32 = arith.constant 0 : i32
    %c0_i32_0 = arith.constant 0 : i32
    %c0_i32_1 = arith.constant 0 : i32
    return %c0_i32, %c0_i32_0 : i32, i32
  }
  func.func @transform_10(%arg0: i32) -> (i32, i32) {
    %c0_i32 = arith.constant 0 : i32
    %c0_i32_0 = arith.constant 0 : i32
    %c0_i32_1 = arith.constant 0 : i32
    return %c0_i32, %c0_i32_0 : i32, i32
  }
  func.func @transform_11(%arg0: i32) -> (i32, i32, i32) {
    %c0_i32 = arith.constant 0 : i32
    %c0_i32_0 = arith.constant 0 : i32
    %c0_i32_1 = arith.constant 0 : i32
    return %arg0, %c0_i32, %c0_i32_0 : i32, i32, i32
  }
}

</mosaic_0001>

<bundles_post_ra>
// kernel: tpu_custom_call.1
= control target key start
LH: loop header
LB: loop body
LE: loop exit
PB: predicated region body
PF: predicated region fallthrough
CT: control target
= control target key end

     0   :  { %s6092_s0 = inlined_call_operand.vmem [shape: f32[2,8,4], index: 0, kind: input, shape index: {}]   ;;  %s6093_s1 = inlined_call_operand.vmem [shape: f32[4,384], index: 1, kind: input, shape index: {}]   ;;  %s6094_s2 = inlined_call_operand.hbm [shape: f32[128,384], index: 2, kind: input, shape index: {}]   ;;  %s6095_s3 = inlined_call_operand.vmem [shape: f32[1,384], index: 3, kind: input, shape index: {}]   ;;  %s6096_s4 = inlined_call_operand.vmem [shape: f32[1,128], index: 4, kind: input, shape index: {}]   ;;  %s6097_s5 = inlined_call_operand.hbm [shape: f32[128,384], index: 5, kind: input, shape index: {}]   ;;  %s6098_s6 = inlined_call_operand.hbm [shape: f32[128,384], index: 6, kind: input, shape index: {}]   ;;  %s6099_s7 = inlined_call_operand.vmem [shape: f32[1,384], index: 7, kind: input, shape index: {}]   ;;  %s6100_s8 = inlined_call_operand.vmem [shape: f32[1,128], index: 8, kind: input, shape index: {}]   ;;  %s6101_s9 = inlined_call_operand.vmem [shape: f32[128,1], index: 9, kind: input, shape index: {}]   ;;  %s6102_s10 = inlined_call_operand.<no memory space> [shape: f32[1,1], index: 10, kind: input, shape index: {}]   ;;  %s6103_s11 = inlined_call_operand.vmem [shape: f32[2,1,1], index: 11, kind: output, shape index: {}]  }
   0x1   :  { %v16_v0 = vstv %s6102_s10 }
   0x2   :  { %17 = vst [vmem:[#allocation3] sm:$0x1] %v16_v0 }
   0x3   :  { %18 = vsyncpa [#allocation5], 0 }
   0x4   :  { %19 = vsyncpa [#allocation7], 0  ;;  %s3692_s19 = smov 0  }
   0x5 LB: > { %s3698_s20 = sadd.s32 4294967295, %s3621_s19   ;;  %p3010_p0 = scmp.ge.s32.totalorder %s3621_s19, 1  ;;  %s3621_s19 = sphi %s3692_s19, %s25_s19  }
   0x6   : > { %p292_p1 = scmp.lt.s32.totalorder %s3621_s19, 3  ;;  %p3074_p2 = scmp.eq.s32.totalorder %s3698_s20, 0 }
   0x7   : > { %s326_s22 = sshll.u32 %s6097_s5, 4  ;;  %s306_s26 = sshll.u32 %s6094_s2, 4  ;;  %s327_s22 = int_to_ptr.hbm [resolvable:$true] %s326_s22  ;;  %s307_s26 = int_to_ptr.hbm [resolvable:$true] %s306_s26 }
   0x8   : > { %p3706_p3 = pnand %p3010_p0, %p292_p1  ;;  %s3623_s27 = smov [#allocation6]  }
   0x9   : > { %s328_s28 = sshll.u32 %s3623_s27, 4  ;;  %s3624_s29 = smov [#allocation4]   ;;  %s329_s28 = int_to_ptr.vmem [resolvable:$true] %s328_s28 }
   0xa   : > { %p3064_p4 = pneg %p3706_p3  ;;  %s308_s30 = sshll.u32 %s3624_s29, 4  ;;  %s309_s30 = int_to_ptr.vmem [resolvable:$true] %s308_s30 }
   0xb   : > { %s340_s14 = sshll.u32 %s6098_s6, 4  ;;  %s3625_s15 = smov 384   ;;  %s341_s14 = int_to_ptr.hbm [resolvable:$true] %s340_s14 }
   0xc   : > { %p3065_p5 = pnand %p3074_p2, %p3064_p4  ;;  %s3626_s16 = smov 24  }
   0xd   : > { %s3627_s17 = smov [#allocation8]   ;;  %377 = sbr.rel (%p3706_p3) target bundleno = 1854 (0x73e), region = 64 }
   0xe   : > { %3070 = dma.hbm_to_vmem [thread:$0]  (!%p3065_p5), %s327_s22, 6144, %s329_s28, [#allocation7], %s3625_s15, %s3625_s15, %s3626_s16  }
   0xf   : > { %3067 = dma.hbm_to_vmem [thread:$0]  (!%p3065_p5), %s307_s26, 6144, %s309_s30, [#allocation5], %s3625_s15, %s3625_s15, %s3626_s16  }
  0x10   : > { %s342_s18 = sshll.u32 %s3627_s17, 4  ;;  %s343_s18 = int_to_ptr.vmem [resolvable:$true] %s342_s18 }
  0x11   : > { %3073 = dma.hbm_to_vmem [thread:$0]  (!%p3065_p5), %s341_s14, 6144, %s343_s18, [#allocation7], %s3625_s15, %s3625_s15, %s3626_s16  }
  0x12   : > { %3612 = dma.done.wait (%p3074_p2), [#allocation5], 6144  }
  0x13   : > { %3614 = vsyncadd (%p3074_p2), [#allocation5], 4294961152 }
  0x14   : > { %3616 = dma.done.wait (%p3074_p2), [#allocation7], 12288  }
  0x15   : > { %3618 = vsyncadd (%p3074_p2), [#allocation7], 4294955008  ;;  %p425_p6 = scmp.lt.s32.totalorder %s3698_s20, 1  ;;  %v3731_v1 = vld [vmem:[#allocation4 + $0x168] sm:$0xff]  ;;  %v3733_v2 = vld [vmem:[#allocation4 + $0x150] sm:$0xff]  ;;  %vm602_vm0 = vcmask 1043456  }
  0x16   : > { %v580_v3 = vld [vmem:[%s6093_s1] sm:$0xff]  ;;  %733 = vmatpush.msra.mxu3 %v3731_v1  ;;  %v581_v6 = vld [vmem:[%s6093_s1 + $0x8] sm:$0xf]  ;;  %v3754_v8 = vld [vmem:[#allocation4 + $0x170] sm:$0xff]  ;;  %vm598_vm1 = vcmask 31744   ;;  %v6109_v54 = vmov 0.0  }
  0x17   : > { %s7400_s20 = smov (!%p425_p6, %s3698_s20), 1  ;;  %592 = vst [vmem:[#allocation1] ss:$2 sm:$0xff] %v580_v3  ;;  %v3742_v4 = vld [vmem:[#allocation4 + $0x138] sm:$0xff]  ;;  %v3745_v5 = vld [vmem:[#allocation4 + $0x120] sm:$0xff]  ;;  %v3752_v7 = vld [vmem:[#allocation4 + $0x108] sm:$0xff] }
  0x18   : > { %734 = vmatpush.msra.mxu3 %v3733_v2  ;;  %s3019_s22 = sshll.u32 %s7400_s20, 3  ;;  %594 = vst [vmem:[#allocation1 + $0x10] ss:$2 sm:$0xff] %v581_v6  ;;  %v3760_v10 = vld [vmem:[#allocation4 + $0xf0] sm:$0xff]  ;;  %v3763_v11 = vld [vmem:[#allocation4 + $0x158] sm:$0xff]  ;;  %v3770_v15 = vld [vmem:[#allocation4 + $0x140] sm:$0xff]  ;;  %s431_s24 = scalar_lea.vmem %s6103_s11, %s7400_s20 }
  0x19   : > { %s428_s27 = scalar_lea.vmem %s6092_s0, %s3019_s22  ;;  %v3767_v13 = vld [vmem:[#allocation4 + $0xd8] sm:$0xff]  ;;  %v3775_v16 = vld [vmem:[#allocation4 + $0xc0] sm:$0xff]  ;;  %v3777_v17 = vld [vmem:[#allocation4 + $0x128] sm:$0xff]  ;;  %vm678_vm2 = vcmask 1041409   ;;  %vm680_vm3 = vcmask 1042433   ;;  %vm683_vm4 = vcmask 1042434  }
  0x1a   : > { %735 = vmatpush.msra.mxu3 %v3742_v4  ;;  %v579_v14 = vld [vmem:[%s428_s27] sm:$0xff]  ;;  %v3784_v20 = vld [vmem:[#allocation4 + $0xa8] sm:$0xff]  ;;  %v3787_v21 = vld [vmem:[#allocation4 + $0x110] sm:$0xff]  ;;  %vm685_vm5 = vcmask 1043458   ;;  %vm688_vm6 = vcmask 1043459   ;;  %vm690_vm7 = vcmask 1044483  }
  0x1b   : > { %v3781_v19 = vld [vmem:[#allocation4 + $0x178] sm:$0xff]  ;;  %v3791_v22 = vld [vmem:[#allocation4 + $0x160] sm:$0xff]  ;;  %v3794_v23 = vld [vmem:[#allocation4 + $0x90] sm:$0xff]  ;;  %vm693_vm8 = vcmask 1044484   ;;  %vm695_vm9 = vcmask 1045508   ;;  %vm698_vm10 = vcmask 1045509  }
  0x1c   : > { %736 = vmatpush.msra.mxu3 %v3745_v5  ;;  %v3797_v24 = vld [vmem:[#allocation4 + $0xf8] sm:$0xff]  ;;  %v3800_v25 = vld [vmem:[#allocation4 + $0x148] sm:$0xff]  ;;  %v3808_v28 = vld [vmem:[#allocation8 + $0x150] sm:$0xff]  ;;  %vm700_vm11 = vcmask 1046533   ;;  %vm703_vm12 = vcmask 1046534   ;;  %vm708_vm13 = vcmask 1046528  }
  0x1d   : > { %v3803_v26 = vld [vmem:[#allocation4 + $0x78] sm:$0xff]  ;;  %v3806_v27 = vld [vmem:[#allocation8 + $0x168] sm:$0xff]  ;;  %6613 = vst [vmem:[#allocation12_spill] sm:$0xff] %v3808_v28  ;;  %v3810_v29 = vld [vmem:[#allocation4 + $0xe0] sm:$0xff]  ;;  %vm674_vm14 = vcmask 1040384   ;;  %vm705_vm15 = vcmask 1045504  }
  0x1e   : > { %v595_v9 = vld.sshfl [vmem:[#allocation1] sm:$0xff pattern:$0x75316420]  ;;  %737 = vmatpush.msra.mxu3 %v3752_v7  ;;  %v596_v12 = vld.sshfl [vmem:[#allocation1 + $0x8] sm:$0xff pattern:$0x75316420] }
  0x1f   : > { %3020 = vmatpush.msk.msra.mxu0 %vm602_vm0, %v595_v9  ;;  %3022 = vmatpush.msk.msra.mxu1 %vm602_vm0, %v596_v12  ;;  %v597_v18 = vld.sshfl [vmem:[#allocation1 + $0x10] sm:$0xff pattern:$0x75316420]  ;;  %6612 = vst [vmem:[#allocation11_spill] sm:$0xff] %v3806_v27  ;;  %v3817_v31 = vld [vmem:[#allocation4 + $0x60] sm:$0xff]  ;;  %v3820_v32 = vld [vmem:[#allocation8 + $0x138] sm:$0xff] }
  0x20   : > { %738 = vmatpush.msra.mxu3 %v3760_v10  ;;  %3023 = vmatmul.msk.f32.vlgmr.msra.gmra.mxu1 %vm598_vm1, %v579_v14  ;;  %v3813_v30 = vld [vmem:[#allocation4 + $0x130] sm:$0xff]  ;;  %6614 = vst [vmem:[#allocation13_spill] sm:$0xff] %v3820_v32  ;;  %v3822_v33 = vld [vmem:[#allocation4 + $0xc8] sm:$0xff]  ;;  %v3825_v34 = vld [vmem:[#allocation4 + $0x118] sm:$0xff] }
  0x21   : > { %753 = vmatpush.msrb.mxu0 %v3754_v8  ;;  %3024 = vmatpush.msk.msra.mxu2 %vm602_vm0, %v597_v18  ;;  %v3829_v35 = vld [vmem:[#allocation4 + $0x48] sm:$0xff]  ;;  %v3832_v36 = vld [vmem:[#allocation8 + $0x120] sm:$0xff]  ;;  %v3834_v37 = vld [vmem:[#allocation4 + $0xb0] sm:$0xff]  ;;  %vm710_vm0 = vcmask 1046529  }
  0x22   : > { %739 = vmatpush.msra.mxu3 %v3767_v13  ;;  %3021 = vmatmul.msk.f32.vlgmr.msra.gmra.mxu0 %vm598_vm1, %v579_v14  ;;  %6615 = vst [vmem:[#allocation14_spill] sm:$0xff] %v3832_v36  ;;  %v3837_v38 = vld [vmem:[#allocation4 + $0x100] sm:$0xff]  ;;  %v3841_v39 = vld [vmem:[#allocation4 + $0x30] sm:$0xff]  ;;  %v3844_v40 = vld [vmem:[#allocation8 + $0x108] sm:$0xff] }
  0x23   : > { %754 = vmatpush.msrb.mxu0 %v3763_v11  ;;  %3025 = vmatmul.msk.f32.vlgmr.msra.gmra.mxu2 %vm598_vm1, %v579_v14  ;;  %6616 = vst [vmem:[#allocation15_spill] sm:$0xff] %v3844_v40  ;;  %v3846_v41 = vld [vmem:[#allocation4 + $0x98] sm:$0xff]  ;;  %v3849_v42 = vld [vmem:[#allocation4 + $0xe8] sm:$0xff]  ;;  %v3856_v44 = vld [vmem:[#allocation8 + $0xf0] sm:$0xff]  ;;  %vm676_vm1 = vcmask 1041408  }
  0x24   : > { %740 = vmatpush.msra.mxu3 %v3775_v16  ;;  %773 = vmatpush.msrb.mxu1 %v3781_v19  ;;  %v3853_v43 = vld [vmem:[#allocation4 + $0x18] sm:$0xff]  ;;  %6617 = vst [vmem:[#allocation16_spill] sm:$0xff] %v3856_v44  ;;  %v3858_v45 = vld [vmem:[#allocation4 + $0x80] sm:$0xff]  ;;  %v3861_v46 = vld [vmem:[#allocation4 + $0xd0] sm:$0xff] }
  0x25   : > { %755 = vmatpush.msrb.mxu0 %v3770_v15  ;;  %793 = vmatpush.msrb.mxu2 %v3806_v27  ;;  %v3865_v47 = vld [vmem:[#allocation4] sm:$0xff]  ;;  %v3868_v48 = vld [vmem:[#allocation8 + $0xd8] sm:$0xff]  ;;  %v3870_v49 = vld [vmem:[#allocation4 + $0x68] sm:$0xff] }
  0x26   : > { %741 = vmatpush.msra.mxu3 %v3784_v20  ;;  %774 = vmatpush.msrb.mxu1 %v3791_v22  ;;  %6618 = vst [vmem:[#allocation17_spill] sm:$0xff] %v3868_v48  ;;  %v3876_v50 = vld [vmem:[#allocation4 + $0xb8] sm:$0xff]  ;;  %v3878_v51 = vld [vmem:[#allocation8 + $0xc0] sm:$0xff]  ;;  %v3880_v52 = vld [vmem:[#allocation4 + $0x50] sm:$0xff] }
  0x27   : > { %756 = vmatpush.msrb.mxu0 %v3777_v17  ;;  %794 = vmatpush.msrb.mxu2 %v3808_v28  ;;  %6619 = vst [vmem:[#allocation18_spill] sm:$0xff] %v3878_v51  ;;  %v3884_v53 = vld [vmem:[#allocation8 + $0x170] sm:$0xff]  ;;  %v3888_v55 = vld [vmem:[#allocation4 + $0xa0] sm:$0xff]  ;;  %v3890_v56 = vld [vmem:[#allocation8 + $0xa8] sm:$0xff] }
  0x28   : > { %742 = vmatpush.msra.mxu3 %v3794_v23  ;;  %775 = vmatpush.msrb.mxu1 %v3800_v25  ;;  %6620 = vst [vmem:[#allocation19_spill] sm:$0xff] %v3880_v52  ;;  %v3892_v57 = vld [vmem:[#allocation4 + $0x38] sm:$0xff]  ;;  %v3897_v58 = vld [vmem:[#allocation4 + $0x88] sm:$0xff]  ;;  %v3899_v59 = vld [vmem:[#allocation8 + $0x90] sm:$0xff] }
  0x29   : > { %757 = vmatpush.msrb.mxu0 %v3787_v21  ;;  %795 = vmatpush.msrb.mxu2 %v3820_v32  ;;  %6621 = vst [vmem:[#allocation20_spill] sm:$0xff] %v3884_v53  ;;  %v3902_v60 = vld [vmem:[#allocation4 + $0x20] sm:$0xff]  ;;  %v3907_v61 = vld [vmem:[#allocation4 + $0x70] sm:$0xff]  ;;  %v3909_v62 = vld [vmem:[#allocation8 + $0x78] sm:$0xff] }
  0x2a   : > { %743 = vmatpush.msra.mxu3 %v3803_v26  ;;  %776 = vmatpush.msrb.mxu1 %v3813_v30  ;;  %6622 = vst [vmem:[#allocation21_spill] sm:$0xff] %v3890_v56  ;;  %v3911_v63 = vld [vmem:[#allocation4 + $0x8] sm:$0xff]  ;;  %v3916_v0 = vld [vmem:[#allocation4 + $0x58] sm:$0xff]  ;;  %v3920_v3 = vld [vmem:[#allocation8 + $0x60] sm:$0xff] }
  0x2b   : > { %758 = vmatpush.msrb.mxu0 %v3797_v24  ;;  %796 = vmatpush.msrb.mxu2 %v3832_v36  ;;  %6623 = vst [vmem:[#allocation22_spill] sm:$0xff] %v3892_v57  ;;  %v3922_v6 = vld [vmem:[#allocation8 + $0x178] sm:$0xff]  ;;  %v3925_v9 = vld [vmem:[#allocation4 + $0x40] sm:$0xff]  ;;  %v3929_v12 = vld [vmem:[#allocation8 + $0x48] sm:$0xff] }
  0x2c   : > { %744 = vmatpush.msra.mxu3 %v3817_v31  ;;  %777 = vmatpush.msrb.mxu1 %v3825_v34  ;;  %6624 = vst [vmem:[#allocation23_spill] sm:$0xff] %v3899_v59  ;;  %v3931_v14 = vld [vmem:[#allocation4 + $0x28] sm:$0xff]  ;;  %v3936_v18 = vld [vmem:[#allocation4 + $0x10] sm:$0xff]  ;;  %v4093_v32 = vld [vmem:[#allocation6 + $0x98] sm:$0xff] }
  0x2d   : > { %759 = vmatpush.msrb.mxu0 %v3810_v29  ;;  %797 = vmatpush.msrb.mxu2 %v3844_v40  ;;  %6625 = vst [vmem:[#allocation24_spill] sm:$0xff] %v3902_v60  ;;  %v3978_v40 = vld [vmem:[#allocation8 + $0xf8] sm:$0xff] }
  0x2e   : > { %745 = vmatpush.msra.mxu3 %v3829_v35  ;;  %778 = vmatpush.msrb.mxu1 %v3837_v38  ;;  %6626 = vst [vmem:[#allocation25_spill] sm:$0xff] %v3907_v61  ;;  %v4135_v27 = vld [vmem:[#allocation6 + $0x178] sm:$0xff] }
  0x2f   : > { %760 = vmatpush.msrb.mxu0 %v3822_v33  ;;  %798 = vmatpush.msrb.mxu2 %v3856_v44  ;;  %6627 = vst [vmem:[#allocation26_spill] sm:$0xff] %v3909_v62  ;;  %v3972_v44 = vld [vmem:[#allocation6 + $0x168] sm:$0xff] }
  0x30   : > { %746 = vmatpush.msra.mxu3 %v3841_v39  ;;  %779 = vmatpush.msrb.mxu1 %v3849_v42  ;;  %6628 = vst [vmem:[#allocation27_spill] sm:$0xff] %v3911_v63 }
  0x31   : > { %761 = vmatpush.msrb.mxu0 %v3834_v37  ;;  %799 = vmatpush.msrb.mxu2 %v3868_v48  ;;  %6629 = vst [vmem:[#allocation28_spill] sm:$0xff] %v3916_v0  ;;  %v3966_v48 = vld [vmem:[#allocation8 + $0x110] sm:$0xff] }
  0x32   : > { %747 = vmatpush.msra.mxu3 %v3853_v43  ;;  %780 = vmatpush.msrb.mxu1 %v3861_v46  ;;  %6630 = vst [vmem:[#allocation29_spill] sm:$0xff] %v3920_v3 }
  0x33   : > { %762 = vmatpush.msrb.mxu0 %v3846_v41  ;;  %800 = vmatpush.msrb.mxu2 %v3878_v51  ;;  %6631 = vst [vmem:[#allocation30_spill] sm:$0xff] %v3922_v6  ;;  %v3961_v51 = vld [vmem:[#allocation8 + $0x130] sm:$0xff] }
  0x34   : > { %748 = vmatpush.msra.mxu3 %v3865_v47  ;;  %781 = vmatpush.msrb.mxu1 %v3876_v50  ;;  %6632 = vst [vmem:[#allocation31_spill] sm:$0xff] %v3925_v9 }
  0x35   : > { %763 = vmatpush.msrb.mxu0 %v3858_v45  ;;  %749 = vmatmul.f32.vlgmr.msra.gmra.mxu3 %v6109_v54  ;;  %6633 = vst [vmem:[#allocation32_spill] sm:$0xff] %v3929_v12 }
  0x36   : > { %813 = vmatpush.msrb.mxu3 %v3884_v53  ;;  %782 = vmatpush.msrb.mxu1 %v3888_v55  ;;  %6634 = vst [vmem:[#allocation33_spill] sm:$0xff] %v3931_v14 }
  0x37   : > { %764 = vmatpush.msrb.mxu0 %v3870_v49  ;;  %801 = vmatpush.msrb.mxu2 %v3890_v56  ;;  %6635 = vst [vmem:[#allocation34_spill] sm:$0xff] %v3936_v18  ;;  %v3959_v56 = vld [vmem:[#allocation8 + $0x128] sm:$0xff] }
  0x38   : > { %783 = vmatpush.msrb.mxu1 %v3897_v58  ;;  %6642 = vst [vmem:[#allocation41_spill] sm:$0xff] %v3959_v56 }
  0x39   : > { %765 = vmatpush.msrb.mxu0 %v3880_v52  ;;  %802 = vmatpush.msrb.mxu2 %v3899_v59  ;;  %v3944_v59 = vld [vmem:[#allocation8 + $0x160] sm:$0xff]  ;;  %6643 = vst [vmem:[#allocation42_spill] sm:$0xff] %v3961_v51 }
  0x3a   : > { %784 = vmatpush.msrb.mxu1 %v3907_v61  ;;  %6637 = vst [vmem:[#allocation36_spill] sm:$0xff] %v3944_v59  ;;  %v4143_v61 = vld [vmem:[#allocation6 + $0x50] sm:$0xff] }
  0x3b   : > { %766 = vmatpush.msrb.mxu0 %v3892_v57  ;;  %803 = vmatpush.msrb.mxu2 %v3909_v62  ;;  %v3942_v62 = vld [vmem:[#allocation8 + $0x158] sm:$0xff]  ;;  %6645 = vst [vmem:[#allocation44_spill] sm:$0xff] %v3966_v48 }
  0x3c   : > { %785 = vmatpush.msrb.mxu1 %v3916_v0  ;;  %6636 = vst [vmem:[#allocation35_spill] sm:$0xff] %v3942_v62  ;;  %814 = vmatpush.msrb.mxu3 %v3942_v62  ;;  %v4109_v62 = vld [vmem:[#allocation6 + $0x80] sm:$0xff]  ;;  %v4206_v0 = vld [vmem:[#allocation6 + $0xe8] sm:$0xff] }
  0x3d   : > { %767 = vmatpush.msrb.mxu0 %v3902_v60  ;;  %804 = vmatpush.msrb.mxu2 %v3920_v3  ;;  %v3951_v3 = vld [vmem:[#allocation8 + $0x140] sm:$0xff]  ;;  %6647 = vst [vmem:[#allocation46_spill] sm:$0xff] %v3972_v44  ;;  %v4053_v60 = vld [vmem:[#allocation6 + $0xd8] sm:$0xff] }
  0x3e   : > { %786 = vmatpush.msrb.mxu1 %v3925_v9  ;;  %6639 = vst [vmem:[#allocation38_spill] sm:$0xff] %v3951_v3  ;;  %815 = vmatpush.msrb.mxu3 %v3951_v3 }
  0x3f   : > { %768 = vmatpush.msrb.mxu0 %v3911_v63  ;;  %805 = vmatpush.msrb.mxu2 %v3929_v12  ;;  %v3953_v12 = vld [vmem:[#allocation8 + $0x148] sm:$0xff]  ;;  %6649 = vst [vmem:[#allocation48_spill] sm:$0xff] %v3978_v40  ;;  %v3986_v63 = vld [vmem:[#allocation6 + $0x158] sm:$0xff] }
  0x40   : > { %769 = vmatmul.f32.vlgmr.msrb.gmra.mxu0 %v6109_v54  ;;  %787 = vmatpush.msrb.mxu1 %v3931_v14  ;;  %6640 = vst [vmem:[#allocation39_spill] sm:$0xff] %v3953_v12 }
  0x41   : > { %833 = vmatpush.msra.mxu0 %v3922_v6  ;;  %v3948_v6 = vld [vmem:[#allocation8 + $0x30] sm:$0xff]  ;;  %816 = vmatpush.msrb.mxu3 %v3959_v56  ;;  %6652 = vst [vmem:[#allocation51_spill] sm:$0xff] %v3986_v63  ;;  %v3998_v56 = vld [vmem:[#allocation6 + $0x140] sm:$0xff] }
  0x42   : > { %788 = vmatpush.msrb.mxu1 %v3936_v18  ;;  %6638 = vst [vmem:[#allocation37_spill] sm:$0xff] %v3948_v6  ;;  %806 = vmatpush.msrb.mxu2 %v3948_v6  ;;  %v3968_v6 = vld [vmem:[#allocation8 + $0x118] sm:$0xff]  ;;  %v3982_v18 = vld [vmem:[#allocation6 + $0x150] sm:$0xff] }
  0x43   : > { %789 = vmatmul.f32.vlgmr.msrb.gmra.mxu1 %v6109_v54  ;;  %834 = vmatpush.msra.mxu0 %v3944_v59  ;;  %v3957_v54 = vld [vmem:[#allocation8 + $0x18] sm:$0xff]  ;;  %v3964_v59 = vld [vmem:[#allocation8] sm:$0xff]  ;;  %6646 = vst [vmem:[#allocation45_spill] sm:$0xff] %v3968_v6 }
  0x44   : > { %6641 = vst [vmem:[#allocation40_spill] sm:$0xff] %v3957_v54  ;;  %807 = vmatpush.msrb.mxu2 %v3957_v54  ;;  %900 = vmatpush.msra.mxu1 %v3972_v44  ;;  %v3980_v54 = vld [vmem:[#allocation8 + $0x100] sm:$0xff]  ;;  %v3994_v44 = vld [vmem:[#allocation8 + $0xe8] sm:$0xff] }
  0x45   : > { %835 = vmatpush.msra.mxu0 %v3953_v12  ;;  %6644 = vst [vmem:[#allocation43_spill] sm:$0xff] %v3964_v59  ;;  %v3974_v12 = vld [vmem:[#allocation6 + $0x170] sm:$0xff]  ;;  %817 = vmatpush.msrb.mxu3 %v3966_v48  ;;  %v4028_v48 = vld [vmem:[#allocation6 + $0x108] sm:$0xff] }
  0x46   : > { %6648 = vst [vmem:[#allocation47_spill] sm:$0xff] %v3974_v12  ;;  %808 = vmatpush.msrb.mxu2 %v3964_v59  ;;  %901 = vmatpush.msra.mxu1 %v3982_v18  ;;  %v3992_v59 = vld [vmem:[#allocation8 + $0xe0] sm:$0xff] }
  0x47   : > { %836 = vmatpush.msra.mxu0 %v3961_v51  ;;  %6650 = vst [vmem:[#allocation49_spill] sm:$0xff] %v3980_v54  ;;  %v3988_v51 = vld [vmem:[#allocation6 + $0x138] sm:$0xff]  ;;  %818 = vmatpush.msrb.mxu3 %v3978_v40 }
  0x48   : > { %6651 = vst [vmem:[#allocation50_spill] sm:$0xff] %v3982_v18  ;;  %920 = vmatpush.msra.mxu2 %v3974_v12  ;;  %902 = vmatpush.msra.mxu1 %v3988_v51  ;;  %v6657_v12 = vmov 0.0   ;;  %v4013_v18 = vld [vmem:[#allocation8 + $0xd0] sm:$0xff]  ;;  %v4026_v40 = vld [vmem:[#allocation8 + $0xb8] sm:$0xff] }
  0x49   : > { %837 = vmatpush.msra.mxu0 %v3968_v6  ;;  %6653 = vst [vmem:[#allocation52_spill] sm:$0xff] %v3988_v51  ;;  %819 = vmatpush.msrb.mxu3 %v3992_v59  ;;  %v4007_v6 = vld [vmem:[%s6095_s3] sm:$0x7] }
  0x4a   : > { %6654 = vst [vmem:[#allocation53_spill] sm:$0xff] %v3992_v59  ;;  %921 = vmatpush.msra.mxu2 %v3986_v63  ;;  %v4015_v63 = vld [vmem:[#allocation6 + $0x120] sm:$0xff]  ;;  %v585_v51 = vperm.slane %v4007_v6, 1  ;;  %v584_v14 = vperm.slane %v4007_v6, 0 }
  0x4b   : > { %6655 = vst [vmem:[#allocation54_spill] sm:$0xff] %v3994_v44  ;;  %838 = vmatpush.msra.mxu0 %v3980_v54  ;;  %809 = vmatmul.f32.vlgmr.msrb.gmra.mxu2 %v6657_v12  ;;  %v4011_v54 = vld [vmem:[#allocation8 + $0xc8] sm:$0xff] }
  0x4c   : > { %6656 = vst [vmem:[#allocation55_spill] sm:$0xff] %v3998_v56  ;;  %922 = vmatpush.msra.mxu2 %v3998_v56  ;;  %820 = vmatpush.msrb.mxu3 %v4011_v54  ;;  %v4024_v56 = vld [vmem:[#allocation8 + $0xb0] sm:$0xff] }
  0x4d   : > { %839 = vmatpush.msra.mxu0 %v3994_v44  ;;  %6658 = vst [vmem:[#allocation56_spill] sm:$0xff] %v4011_v54  ;;  %v4020_v44 = vld [vmem:[#allocation6 + $0x128] sm:$0xff]  ;;  %903 = vmatpush.msra.mxu1 %v4015_v63  ;;  %v4032_v54 = vld [vmem:[#allocation6 + $0x110] sm:$0xff] }
  0x4e   : > { %6659 = vst [vmem:[#allocation57_spill] sm:$0xff] %v4013_v18  ;;  %923 = vmatpush.msra.mxu2 %v4020_v44  ;;  %821 = vmatpush.msrb.mxu3 %v4024_v56 }
  0x4f   : > { %6660 = vst [vmem:[#allocation58_spill] sm:$0xff] %v4015_v63  ;;  %840 = vmatpush.msra.mxu0 %v4013_v18  ;;  %904 = vmatpush.msra.mxu1 %v4028_v48  ;;  %v4036_v18 = vld [vmem:[#allocation8 + $0x98] sm:$0xff]  ;;  %v4038_v63 = vld [vmem:[#allocation8 + $0xa0] sm:$0xff] }
  0x50   : > { %6661 = vst [vmem:[#allocation59_spill] sm:$0xff] %v4020_v44  ;;  %924 = vmatpush.msra.mxu2 %v4032_v54  ;;  %v4040_v44 = vld [vmem:[#allocation6 + $0xf0] sm:$0xff]  ;;  %822 = vmatpush.msrb.mxu3 %v4036_v18 }
  0x51   : > { %6662 = vst [vmem:[#allocation60_spill] sm:$0xff] %v4024_v56  ;;  %841 = vmatpush.msra.mxu0 %v4026_v40  ;;  %905 = vmatpush.msra.mxu1 %v4040_v44 }
  0x52   : > { %6663 = vst [vmem:[#allocation61_spill] sm:$0xff] %v4026_v40  ;;  %v4045_v40 = vld [vmem:[#allocation6 + $0xf8] sm:$0xff] }
  0x53   : > { %6664 = vst [vmem:[#allocation62_spill] sm:$0xff] %v4028_v48  ;;  %842 = vmatpush.msra.mxu0 %v4038_v63  ;;  %925 = vmatpush.msra.mxu2 %v4045_v40  ;;  %v4051_v48 = vld [vmem:[#allocation8 + $0x88] sm:$0xff] }
  0x54   : > { %6665 = vst [vmem:[#allocation63_spill] sm:$0xff] %v4032_v54  ;;  %v4049_v54 = vld [vmem:[#allocation8 + $0x80] sm:$0xff]  ;;  %906 = vmatpush.msra.mxu1 %v4053_v60 }
  0x55   : > { %6666 = vst [vmem:[#allocation64_spill] sm:$0xff] %v4036_v18  ;;  %823 = vmatpush.msrb.mxu3 %v4049_v54  ;;  %843 = vmatpush.msra.mxu0 %v4051_v48  ;;  %v4063_v18 = vld [vmem:[#allocation6 + $0xc0] sm:$0xff] }
  0x56   : > { %6667 = vst [vmem:[#allocation65_spill] sm:$0xff] %v4038_v63  ;;  %v4061_v63 = vld [vmem:[#allocation8 + $0x70] sm:$0xff]  ;;  %907 = vmatpush.msra.mxu1 %v4063_v18 }
  0x57   : > { %6668 = vst [vmem:[#allocation66_spill] sm:$0xff] %v4040_v44  ;;  %844 = vmatpush.msra.mxu0 %v4061_v63 }
  0x58   : > { %6669 = vst [vmem:[#allocation67_spill] sm:$0xff] %v4045_v40  ;;  %v586_v40 = vperm.slane %v4007_v6, 2  ;;  %v4076_v6 = vld [vmem:[#allocation6 + $0xa8] sm:$0xff] }
  0x59   : > { %6670 = vst [vmem:[#allocation68_spill] sm:$0xff] %v4049_v54  ;;  %v4068_v54 = vld [vmem:[#allocation6 + $0xc8] sm:$0xff]  ;;  %908 = vmatpush.msra.mxu1 %v4076_v6 }
  0x5a   : > { %6671 = vst [vmem:[#allocation69_spill] sm:$0xff] %v4051_v48  ;;  %v4072_v48 = vld [vmem:[#allocation8 + $0x50] sm:$0xff] }
  0x5b   : > { %6672 = vst [vmem:[#allocation70_spill] sm:$0xff] %v4053_v60  ;;  %v4086_v60 = vld [vmem:[#allocation8 + $0x40] sm:$0xff] }
  0x5c   : > { %6675 = vst [vmem:[#allocation73_spill] sm:$0xff] %v4061_v63  ;;  %v721_v63 = vlaneseq }
  0x5d   : > { %6676 = vst [vmem:[#allocation74_spill] sm:$0xff] %v4063_v18 }
  0x5e   : > { %6677 = vst [vmem:[#allocation75_spill] sm:$0xff] %v4068_v54 }
  0x5f   : > { %6678 = vst [vmem:[#allocation76_spill] sm:$0xff] %v4072_v48 }
  0x60   : > { %6680 = vst [vmem:[#allocation78_spill] sm:$0xff] %v4076_v6  ;;  %v4104_v6 = vld [vmem:[#allocation6 + $0x78] sm:$0xff] }
  0x61   : > { %6683 = vst [vmem:[#allocation81_spill] sm:$0xff] %v4086_v60 }
  0x62   : > { %6685 = vst [vmem:[#allocation83_spill] sm:$0xff] %v4093_v32 }
  0x63   : > { %6688 = vst [vmem:[#allocation86_spill] sm:$0xff] %v4104_v6 }
  0x9d   : > { %v646_v59 = vpop.f32.mrf.mxu1 }
  0x9e   : > { %v647_v36 = vadd.f32 %v646_v59, %v585_v51  ;;  %v4056_v51 = vld [vmem:[#allocation6 + $0xe0] sm:$0xff]  ;;  %v4059_v59 = vld [vmem:[#allocation8 + $0x68] sm:$0xff] }
  0x9f   : > { %v626_v56 = vpop.f32.mrf.mxu0  ;;  %6673 = vst [vmem:[#allocation71_spill] sm:$0xff] %v4056_v51  ;;  %926 = vmatpush.msra.mxu2 %v4056_v51  ;;  %824 = vmatpush.msrb.mxu3 %v4059_v59  ;;  %v4084_v51 = vld [vmem:[#allocation8 + $0x38] sm:$0xff] }
  0xa0   : > { %6674 = vst [vmem:[#allocation72_spill] sm:$0xff] %v4059_v59  ;;  %v672_v44 = vrot.slane %v647_v36, 7  ;;  %v627_v3 = vadd.f32 %v626_v56, %v584_v14  ;;  %v4074_v36 = vld [vmem:[#allocation8 + $0x58] sm:$0xff]  ;;  %v4080_v56 = vld [vmem:[#allocation6 + $0xb0] sm:$0xff] }
  0xa1   : > { %6679 = vst [vmem:[#allocation77_spill] sm:$0xff] %v4074_v36  ;;  %927 = vmatpush.msra.mxu2 %v4068_v54  ;;  %825 = vmatpush.msrb.mxu3 %v4072_v48  ;;  %v4088_v59 = vld [vmem:[#allocation6 + $0x90] sm:$0xff] }
  0xa2   : > { %6681 = vst [vmem:[#allocation79_spill] sm:$0xff] %v4080_v56  ;;  %845 = vmatpush.msra.mxu0 %v4074_v36  ;;  %v679_v54 = vsel %vm678_vm2, %v627_v3, %v672_v44  ;;  %v684_v48 = vsel %vm683_vm4, %v627_v3, %v672_v44  ;;  %v689_v36 = vsel %vm688_vm6, %v627_v3, %v672_v44  ;;  %vm4114_vm2 = vcmp.lt.s32.totalorder %v721_v63, 384  ;;  %v4129_v63 = vld [vmem:[#allocation6 + $0x60] sm:$0xff] }
  0xa3   : > { %6682 = vst [vmem:[#allocation80_spill] sm:$0xff] %v4084_v51  ;;  %928 = vmatpush.msra.mxu2 %v4080_v56  ;;  %v694_v9 = vsel %vm693_vm8, %v627_v3, %v672_v44  ;;  %826 = vmatpush.msrb.mxu3 %v4084_v51  ;;  %v699_v57 = vsel %vm698_vm10, %v627_v3, %v672_v44 }
  0xa4   : > { %6684 = vst [vmem:[#allocation82_spill] sm:$0xff] %v4088_v59  ;;  %846 = vmatpush.msra.mxu0 %v4086_v60  ;;  %909 = vmatpush.msra.mxu1 %v4088_v59  ;;  %v704_v51 = vsel %vm703_vm12, %v627_v3, %v672_v44  ;;  %v709_v60 = vsel %vm708_vm13, %v672_v44, %v627_v3  ;;  %v4122_v59 = vld [vmem:[#allocation8 + $0x10] sm:$0xff] }
  0xa5   : > { %929 = vmatpush.msra.mxu2 %v4093_v32  ;;  %v675_v28 = vsel %vm674_vm14, %v627_v3, %v672_v44  ;;  %v4131_v3 = vld [vmem:[#allocation6 + $0x68] sm:$0xff] }
  0xa6   : > { %v666_v14 = vpop.f32.mrf.mxu2  ;;  %910 = vmatpush.msra.mxu1 %v4104_v6  ;;  %v4141_v6 = vld [vmem:[#allocation6 + $0x48] sm:$0xff] }
  0xa7   : > { %v667_v18 = vadd.f32 %v666_v14, %v586_v40  ;;  %v4100_v40 = vld [vmem:[#allocation8 + $0x20] sm:$0xff]  ;;  %v4102_v14 = vld [vmem:[#allocation8 + $0x28] sm:$0xff]  ;;  %930 = vmatpush.msra.mxu2 %v4109_v62 }
  0xa8   : > { %6686 = vst [vmem:[#allocation84_spill] sm:$0xff] %v4100_v40  ;;  %827 = vmatpush.msrb.mxu3 %v4100_v40  ;;  %847 = vmatpush.msra.mxu0 %v4102_v14 }
  0xa9   : > { %6687 = vst [vmem:[#allocation85_spill] sm:$0xff] %v4102_v14  ;;  %v673_v56 = vrot.slane %v667_v18, 6  ;;  %v4120_v18 = vld [vmem:[#allocation8 + $0x8] sm:$0xff]  ;;  %911 = vmatpush.msra.mxu1 %v4129_v63  ;;  %931 = vmatpush.msra.mxu2 %v4131_v3 }
  0xaa   : > { %828 = vmatpush.msrb.mxu3 %v4120_v18  ;;  %848 = vmatpush.msra.mxu0 %v4122_v59 }
  0xab   : > { %v681_v32 = vsel %vm680_vm3, %v679_v54, %v673_v56  ;;  %v686_v52 = vsel %vm685_vm5, %v684_v48, %v673_v56  ;;  %v691_v53 = vsel %vm690_vm7, %v689_v36, %v673_v56  ;;  %v696_v44 = vsel %vm695_vm9, %v694_v9, %v673_v56  ;;  %912 = vmatpush.msra.mxu1 %v4141_v6 }
  0xac   : > { %v682_v40 = vrot.slane %v681_v32, 1  ;;  %v687_v14 = vrot.slane %v686_v52, 2  ;;  %v692_v54 = vrot.slane %v691_v53, 3  ;;  %v701_v48 = vsel %vm700_vm11, %v699_v57, %v673_v56  ;;  %v4150_v53 = vld [vmem:[#allocation6 + $0x160] sm:$0xff]  ;;  %940 = vmatpush.msra.mxu3 %v4135_v27  ;;  %1008 = vmatpush.msrb.mxu0 %v3731_v1  ;;  %v4170_v1 = vld [vmem:[#allocation6 + $0x18] sm:$0xff] }
  0xad   : > { %v706_v36 = vsel %vm705_vm15, %v673_v56, %v704_v51  ;;  %v677_v9 = vsel %vm676_vm1, %v675_v28, %v673_v56  ;;  %v697_v32 = vrot.slane %v696_v44, 4  ;;  %v711_v52 = vsel %vm710_vm0, %v673_v56, %v709_v60  ;;  %v4156_v28 = vld [vmem:[#allocation6 + $0x30] sm:$0xff]  ;;  %v4158_v60 = vld [vmem:[#allocation6 + $0x38] sm:$0xff]  ;;  %932 = vmatpush.msra.mxu2 %v4143_v61  ;;  %v4164_v56 = vld [vmem:[#allocation6 + $0x148] sm:$0xff]  ;;  %829 = vmatmul.f32.vlgmr.msrb.gmra.mxu3 %v6657_v12 }
  0xae   : > { %725 = vst.msk [vmem:[#allocation2] sm:$0x7] %vm4114_vm2, %v677_v9  ;;  %v702_v57 = vrot.slane %v701_v48, 5  ;;  %v707_v51 = vrot.slane %v706_v36, 6  ;;  %v712_v44 = vrot.slane %v711_v52, 7  ;;  %941 = vmatpush.msra.mxu3 %v4150_v53  ;;  %1009 = vmatpush.msrb.mxu0 %v3733_v2  ;;  %v4184_v2 = vld [vmem:[#allocation6] sm:$0xff] }
  0xaf   : > { %726 = vst.msk [vmem:[#allocation2 + $0x3] sm:$0x7] %vm4114_vm2, %v682_v40  ;;  %v4172_v40 = vld [vmem:[#allocation6 + $0x20] sm:$0xff]  ;;  %913 = vmatpush.msra.mxu1 %v4156_v28  ;;  %933 = vmatpush.msra.mxu2 %v4158_v60  ;;  %v4192_v48 = vld [vmem:[#allocation6 + $0x118] sm:$0xff]  ;;  %v4212_v9 = vld [vmem:[#allocation6 + $0xd0] sm:$0xff] }
  0xb0   : > { %6691 = vst [vmem:[#allocation87_spill] sm:$0xff] %v4158_v60  ;;  %942 = vmatpush.msra.mxu3 %v4164_v56  ;;  %1010 = vmatpush.msrb.mxu0 %v3742_v4  ;;  %v4200_v4 = vld [vmem:[#allocation6 + $0x100] sm:$0xff] }
  0xb1   : > { %727 = vst.msk [vmem:[#allocation2 + $0x6] sm:$0x7] %vm4114_vm2, %v687_v14  ;;  %v4178_v14 = vld [vmem:[#allocation6 + $0x130] sm:$0xff]  ;;  %914 = vmatpush.msra.mxu1 %v4170_v1  ;;  %934 = vmatpush.msra.mxu2 %v4172_v40 }
  0xb2   : > { %728 = vst.msk [vmem:[#allocation2 + $0x9] sm:$0x7] %vm4114_vm2, %v692_v54  ;;  %v4186_v54 = vld [vmem:[#allocation6 + $0x8] sm:$0xff]  ;;  %943 = vmatpush.msra.mxu3 %v4178_v14  ;;  %1011 = vmatpush.msrb.mxu0 %v3745_v5 }
  0xb3   : > { %6692 = vst [vmem:[#allocation88_spill] sm:$0xff] %v4172_v40  ;;  %915 = vmatpush.msra.mxu1 %v4184_v2  ;;  %935 = vmatpush.msra.mxu2 %v4186_v54 }
  0xb4   : > { %729 = vst.msk [vmem:[#allocation2 + $0xc] sm:$0x7] %vm4114_vm2, %v697_v32  ;;  %944 = vmatpush.msra.mxu3 %v4192_v48  ;;  %1012 = vmatpush.msrb.mxu0 %v3752_v7 }
  0xb5   : > { %730 = vst.msk [vmem:[#allocation2 + $0xf] sm:$0x7] %vm4114_vm2, %v702_v57  ;;  %1028 = vmatpush.msrb.mxu1 %v3754_v8  ;;  %1048 = vmatpush.msrb.mxu2 %v3781_v19  ;;  %v4214_v7 = vld [vmem:[#allocation2] sm:$0x7]  ;;  %v4220_v8 = vld [vmem:[#allocation6 + $0xb8] sm:$0xff] }
  0xb6   : > { %6693 = vst [vmem:[#allocation89_spill] sm:$0xff] %v4184_v2  ;;  %945 = vmatpush.msra.mxu3 %v4200_v4  ;;  %1013 = vmatpush.msrb.mxu0 %v3760_v10  ;;  %v4228_v19 = vld [vmem:[#allocation6 + $0xa0] sm:$0xff] }
  0xb7   : > { %6694 = vst [vmem:[#allocation90_spill] sm:$0xff] %v4186_v54  ;;  %1029 = vmatpush.msrb.mxu1 %v3763_v11  ;;  %1049 = vmatpush.msrb.mxu2 %v3791_v22 }
  0xb8   : > { %731 = vst.msk [vmem:[#allocation2 + $0x12] sm:$0x7] %vm4114_vm2, %v707_v51  ;;  %v750_v36 = vpop.f32.mrf.mxu3  ;;  %946 = vmatpush.msra.mxu3 %v4206_v0  ;;  %1014 = vmatpush.msrb.mxu0 %v3767_v13  ;;  %v6711_v51 = vld [vmem:[#allocation24_spill] sm:$0xff] }
  0xb9   : > { %732 = vst.msk [vmem:[#allocation2 + $0x15] sm:$0x7] %vm4114_vm2, %v712_v44  ;;  %1030 = vmatpush.msrb.mxu1 %v3770_v15  ;;  %1050 = vmatpush.msrb.mxu2 %v3800_v25  ;;  %v4234_v15 = vld [vmem:[#allocation6 + $0x88] sm:$0xff]  ;;  %v6700_v25 = vld [vmem:[#allocation25_spill] sm:$0xff] }
  0xba   : > { %947 = vmatpush.msra.mxu3 %v4212_v9  ;;  %1015 = vmatpush.msrb.mxu0 %v3775_v16  ;;  %v4240_v16 = vld [vmem:[#allocation6 + $0x70] sm:$0xff] }
  0xbb   : > { %1031 = vmatpush.msrb.mxu1 %v3777_v17  ;;  %1051 = vmatpush.msrb.mxu2 %v3813_v30  ;;  %6695 = vst [vmem:[#allocation91_spill] sm:$0xff] %v4240_v16  ;;  %v4248_v17 = vld [vmem:[#allocation6 + $0x58] sm:$0xff]  ;;  %v6712_v44 = vld [vmem:[#allocation33_spill] sm:$0xff] }
  0xbc   : > { %948 = vmatpush.msra.mxu3 %v4220_v8  ;;  %1016 = vmatpush.msrb.mxu0 %v3784_v20  ;;  %6696 = vst [vmem:[#allocation92_spill] sm:$0xff] %v4248_v17  ;;  %v4254_v20 = vld [vmem:[#allocation6 + $0x40] sm:$0xff] }
  0xbd   : > { %v770_v5 = vpop.f32.mrf.mxu0  ;;  %1032 = vmatpush.msrb.mxu1 %v3787_v21  ;;  %1052 = vmatpush.msrb.mxu2 %v3825_v34  ;;  %6697 = vst [vmem:[#allocation93_spill] sm:$0xff] %v4254_v20 }
  0xbe   : > { %v856_v32 = vrot.slane %v770_v5, 7  ;;  %949 = vmatpush.msra.mxu3 %v4228_v19  ;;  %1017 = vmatpush.msrb.mxu0 %v3794_v23  ;;  %v4260_v23 = vld [vmem:[#allocation6 + $0x28] sm:$0xff] }
  0xbf   : > { %1033 = vmatpush.msrb.mxu1 %v3797_v24  ;;  %1053 = vmatpush.msrb.mxu2 %v3837_v38  ;;  %6698 = vst [vmem:[#allocation94_spill] sm:$0xff] %v4260_v23  ;;  %v4266_v24 = vld [vmem:[#allocation6 + $0x10] sm:$0xff]  ;;  %v6706_v38 = vld [vmem:[#allocation35_spill] sm:$0xff] }
  0xc0   : > { %v857_v10 = vsel %vm674_vm14, %v750_v36, %v856_v32  ;;  %950 = vmatpush.msra.mxu3 %v4234_v15  ;;  %1018 = vmatpush.msrb.mxu0 %v3803_v26  ;;  %6699 = vst [vmem:[#allocation95_spill] sm:$0xff] %v4266_v24  ;;  %v6701_v26 = vld [vmem:[#allocation11_spill] sm:$0xff]  ;;  %v790_v52 = vpop.f32.mrf.mxu1  ;;  %v6713_v32 = vld [vmem:[#allocation14_spill] sm:$0xff] }
  0xc1   : > { %v859_v11 = vadd.f32 %v857_v10, %v4214_v7  ;;  %1034 = vmatpush.msrb.mxu1 %v3810_v29  ;;  %1054 = vmatpush.msrb.mxu2 %v3849_v42  ;;  %v6702_v29 = vld [vmem:[#allocation20_spill] sm:$0xff]  ;;  %v6707_v42 = vld [vmem:[#allocation22_spill] sm:$0xff]  ;;  %v6714_v10 = vld [vmem:[#allocation41_spill] sm:$0xff] }
  0xc2   : > { %951 = vmatpush.msra.mxu3 %v4240_v16  ;;  %1019 = vmatpush.msrb.mxu0 %v3817_v31  ;;  %v6703_v31 = vld [vmem:[#allocation19_spill] sm:$0xff] }
  0xc3   : > { %v3026_v13 = vmul.f32 -1.442695, %v859_v11  ;;  %1035 = vmatpush.msrb.mxu1 %v3822_v33  ;;  %1055 = vmatpush.msrb.mxu2 %v3861_v46  ;;  %v6704_v33 = vld [vmem:[#allocation28_spill] sm:$0xff]  ;;  %v6708_v46 = vld [vmem:[#allocation31_spill] sm:$0xff] }
  0xc4   : > { %849 = vmatmul.f32.vlgmr.msra.gmra.mxu0 %v6657_v12  ;;  %952 = vmatpush.msra.mxu3 %v4248_v17  ;;  %v4289_v12 = vld [vmem:[%s6096_s4] sm:$0x1]  ;;  %v6715_v11 = vld [vmem:[#allocation27_spill] sm:$0xff] }
  0xc5   : > { %3094 = vpow2.f32 %v3026_v13  ;;  %1020 = vmatpush.msrb.mxu0 %v3829_v35  ;;  %1036 = vmatpush.msrb.mxu1 %v3834_v37  ;;  %v6705_v35 = vld [vmem:[#allocation12_spill] sm:$0xff]  ;;  %v6716_v13 = vld [vmem:[#allocation34_spill] sm:$0xff] }
  0xc6   : > { %1056 = vmatpush.msrb.mxu2 %v3876_v50  ;;  %953 = vmatpush.msra.mxu3 %v4254_v20 }
  0xc7   : > { %1021 = vmatpush.msrb.mxu0 %v3841_v39  ;;  %1037 = vmatpush.msrb.mxu1 %v3846_v41 }
  0xc8   : > { %1057 = vmatpush.msrb.mxu2 %v3888_v55  ;;  %954 = vmatpush.msra.mxu3 %v4260_v23  ;;  %v6709_v55 = vld [vmem:[#allocation13_spill] sm:$0xff] }
  0xc9   : > { %1022 = vmatpush.msrb.mxu0 %v3853_v43  ;;  %1038 = vmatpush.msrb.mxu1 %v3858_v45 }
  0xca   : > { %1058 = vmatpush.msrb.mxu2 %v3897_v58  ;;  %955 = vmatpush.msra.mxu3 %v4266_v24  ;;  %v6710_v58 = vld [vmem:[#allocation38_spill] sm:$0xff] }
  0xcb   : > { %v3095_v21 = vpop.eup %3094  ;;  %1023 = vmatpush.msrb.mxu0 %v3865_v47  ;;  %1039 = vmatpush.msrb.mxu1 %v3870_v49 }
  0xcc   : > { %v863_v22 = vadd.f32 1.0, %v3095_v21  ;;  %1059 = vmatpush.msrb.mxu2 %v6700_v25  ;;  %1068 = vmatpush.msrb.mxu3 %v6701_v26  ;;  %v879_v25 = vadd.f32 %v790_v52, %v4289_v12  ;;  %v6717_v26 = vld [vmem:[#allocation15_spill] sm:$0xff] }
  0xcd   : > { %1088 = vmatpush.msra.mxu0 %v6702_v29  ;;  %1040 = vmatpush.msrb.mxu1 %v6703_v31  ;;  %v6718_v29 = vld [vmem:[#allocation44_spill] sm:$0xff] }
  0xce   : > { %3096 = vrcp.f32 %v863_v22  ;;  %1060 = vmatpush.msrb.mxu2 %v6704_v33  ;;  %1069 = vmatpush.msrb.mxu3 %v6705_v35  ;;  %v875_v57 = vand.u32 2147483648, %v863_v22  ;;  %v873_v36 = vand.u32 2147483647, %v863_v22  ;;  %vm869_vm4 = vweird.f32 %v863_v22  ;;  %v6719_v35 = vld [vmem:[#allocation16_spill] sm:$0xff] }
  0xcf   : > { %1089 = vmatpush.msra.mxu0 %v6706_v38  ;;  %1041 = vmatpush.msrb.mxu1 %v6707_v42  ;;  %v6720_v38 = vld [vmem:[#allocation48_spill] sm:$0xff] }
  0xd0   : > { %1061 = vmatpush.msrb.mxu2 %v6708_v46  ;;  %1070 = vmatpush.msrb.mxu3 %v6709_v55  ;;  %v876_v33 = vor.u32 1.1754944e-38, %v875_v57  ;;  %vm874_vm6 = vcmp.eq.f32.partialorder %v873_v36, 8.507059e+37  ;;  %v6726_v57 = vld [vmem:[#allocation60_spill] sm:$0xff] }
  0xd1   : > { %1090 = vmatpush.msra.mxu0 %v6710_v58  ;;  %1042 = vmatpush.msrb.mxu1 %v6711_v51  ;;  %v6721_v58 = vld [vmem:[#allocation17_spill] sm:$0xff] }
  0xd2   : > { %1062 = vmatpush.msrb.mxu2 %v6712_v44  ;;  %1071 = vmatpush.msrb.mxu3 %v6713_v32  ;;  %v6723_v44 = vld [vmem:[#allocation18_spill] sm:$0xff]  ;;  %v6727_v32 = vld [vmem:[#allocation23_spill] sm:$0xff] }
  0xd3   : > { %1091 = vmatpush.msra.mxu0 %v6714_v10  ;;  %1043 = vmatpush.msrb.mxu1 %v6715_v11  ;;  %v6728_v10 = vld [vmem:[#allocation64_spill] sm:$0xff] }
  0xd4   : > { %v3097_v30 = vpop.eup %3096  ;;  %1063 = vmatpush.msrb.mxu2 %v6716_v13  ;;  %1072 = vmatpush.msrb.mxu3 %v6717_v26  ;;  %v6730_v13 = vld [vmem:[#allocation68_spill] sm:$0xff]  ;;  %v6731_v26 = vld [vmem:[#allocation29_spill] sm:$0xff] }
  0xd5   : > { %v865_v34 = vmul.f32 %v3097_v30, %v863_v22  ;;  %vm870_vm3 = vweird.f32 %v3097_v30  ;;  %1092 = vmatpush.msra.mxu0 %v6718_v29  ;;  %v6722_v22 = vld [vmem:[#allocation53_spill] sm:$0xff]  ;;  %v6732_v29 = vld [vmem:[#allocation72_spill] sm:$0xff] }
  0xd6   : > { %vm871_vm5 = vmor %vm869_vm4, %vm870_vm3  ;;  %1073 = vmatpush.msrb.mxu3 %v6719_v35  ;;  %v6733_v35 = vld [vmem:[#allocation32_spill] sm:$0xff] }
  0xd7   : > { %v866_v50 = vsub.f32 1.0, %v865_v34  ;;  %1093 = vmatpush.msra.mxu0 %v6720_v38  ;;  %v6734_v38 = vld [vmem:[#allocation76_spill] sm:$0xff] }
  0xd8   : > { %1074 = vmatpush.msrb.mxu3 %v6721_v58  ;;  %v6737_v58 = vld [vmem:[#allocation30_spill] sm:$0xff] }
  0xd9   : > { %v867_v5 = vmul.f32 %v3097_v30, %v866_v50  ;;  %v882_v50 = vrot.slane %v4214_v7, 2  ;;  %1094 = vmatpush.msra.mxu0 %v6722_v22  ;;  %v6729_v7 = vld [vmem:[#allocation26_spill] sm:$0xff] }
  0xda   : > { %1075 = vmatpush.msrb.mxu3 %v6723_v44  ;;  %v6738_v22 = vld [vmem:[#allocation46_spill] sm:$0xff]  ;;  %v6740_v44 = vld [vmem:[#allocation84_spill] sm:$0xff] }
  0xdb   : > { %v868_v21 = vadd.f32 %v3097_v30, %v867_v5  ;;  %v6724_v5 = vld [vmem:[#allocation56_spill] sm:$0xff] }
  0xdc   : > { %1095 = vmatpush.msra.mxu0 %v6724_v5  ;;  %v6741_v5 = vld [vmem:[#allocation36_spill] sm:$0xff] }
  0xdd   : > { %v872_v34 = vsel %vm871_vm5, %v3097_v30, %v868_v21  ;;  %v6725_v30 = vld [vmem:[#allocation21_spill] sm:$0xff] }
  0xde   : > { %v877_v46 = vsel %vm874_vm6, %v876_v33, %v872_v34  ;;  %1076 = vmatpush.msrb.mxu3 %v6725_v30  ;;  %1096 = vmatpush.msra.mxu0 %v6726_v57  ;;  %v6742_v30 = vld [vmem:[#allocation50_spill] sm:$0xff]  ;;  %v6743_v57 = vld [vmem:[#allocation43_spill] sm:$0xff] }
  0xdf   : > { %v880_v55 = vmul.f32 %v879_v25, %v877_v46  ;;  %v887_v36 = vrot.slane %v877_v46, 1 }
  0xe0   : > { %1077 = vmatpush.msrb.mxu3 %v6727_v32  ;;  %1097 = vmatpush.msra.mxu0 %v6728_v10  ;;  %v6745_v32 = vld [vmem:[#allocation52_spill] sm:$0xff]  ;;  %v6746_v10 = vld [vmem:[#allocation47_spill] sm:$0xff] }
  0xe1   : > { %v884_v52 = vadd.f32 %v882_v50, %v880_v55  ;;  %v889_v21 = vsub.f32 1.0, %v887_v36  ;;  %v891_v34 = vmul.f32 0.0, %v887_v36  ;;  %v6735_v50 = vld [vmem:[#allocation37_spill] sm:$0xff]  ;;  %v6736_v55 = vld [vmem:[#allocation80_spill] sm:$0xff]  ;;  %v6744_v36 = vld [vmem:[#allocation39_spill] sm:$0xff] }
  0xe2   : > { %1078 = vmatpush.msrb.mxu3 %v6729_v7  ;;  %1098 = vmatpush.msra.mxu0 %v6730_v13  ;;  %v6747_v7 = vld [vmem:[#allocation42_spill] sm:$0xff] }
  0xe3   : > { %3098 = vtanh.f32 %v884_v52  ;;  %v6739_v52 = vld [vmem:[#allocation40_spill] sm:$0xff]  ;;  %v6748_v13 = vld [vmem:[#allocation58_spill] sm:$0xff] }
  0xe4   : > { %1079 = vmatpush.msrb.mxu3 %v6731_v26  ;;  %1099 = vmatpush.msra.mxu0 %v6732_v29  ;;  %v6751_v26 = vld [vmem:[#allocation62_spill] sm:$0xff]  ;;  %v6752_v29 = vld [vmem:[#allocation55_spill] sm:$0xff] }
  0xe6   : > { %1080 = vmatpush.msrb.mxu3 %v6733_v35  ;;  %1100 = vmatpush.msra.mxu0 %v6734_v38  ;;  %v6755_v35 = vld [vmem:[#allocation59_spill] sm:$0xff] }
  0xe8   : > { %1081 = vmatpush.msrb.mxu3 %v6735_v50  ;;  %1101 = vmatpush.msra.mxu0 %v6736_v55  ;;  %v6756_v50 = vld [vmem:[#allocation54_spill] sm:$0xff] }
  0xe9   : > { %v3099_v25 = vpop.eup %3098 }
  0xea   : > { %v890_v33 = vmul.f32 %v3099_v25, %v889_v21  ;;  %1082 = vmatpush.msrb.mxu3 %v6739_v52  ;;  %1102 = vmatpush.msra.mxu0 %v6740_v44  ;;  %v6749_v21 = vld [vmem:[#allocation51_spill] sm:$0xff]  ;;  %v6750_v25 = vld [vmem:[#allocation45_spill] sm:$0xff] }
  0xeb   : > { %v6759_v52 = vld [vmem:[#allocation57_spill] sm:$0xff] }
  0xec   : > { %v4317_v46 = vadd.f32 %v891_v34, %v890_v33  ;;  %1083 = vmatpush.msrb.mxu3 %v6743_v57  ;;  %1103 = vmatpush.msra.mxu0 %v4120_v18  ;;  %v6753_v33 = vld [vmem:[#allocation49_spill] sm:$0xff]  ;;  %v6754_v34 = vld [vmem:[#allocation66_spill] sm:$0xff] }
  0xed   : > { %v6762_v57 = vld [vmem:[#allocation61_spill] sm:$0xff] }
  0xee   : > { %916 = vmatmul.f32.vlgmr.msra.gmra.mxu1 %v4317_v46  ;;  %936 = vmatmul.f32.vlgmr.msra.gmra.mxu2 %v4317_v46 }
  0xef   : > { %956 = vmatmul.f32.vlgmr.msra.gmra.mxu3 %v4317_v46  ;;  %1024 = vmatmul.f32.vlgmr.msrb.gmra.mxu0 %v4317_v46 }
  0xf0   : > { %1108 = vmatpush.msra.mxu1 %v6737_v58  ;;  %1169 = vmatpush.msra.mxu2 %v6738_v22  ;;  %v6757_v58 = vld [vmem:[#allocation70_spill] sm:$0xff]  ;;  %v6758_v22 = vld [vmem:[#allocation63_spill] sm:$0xff] }
  0xf1   : > { %1189 = vmatpush.msra.mxu3 %v6746_v10  ;;  %1209 = vmatpush.msrb.mxu0 %v4135_v27  ;;  %v6765_v10 = vld [vmem:[#allocation65_spill] sm:$0xff] }
  0xf2   : > { %1109 = vmatpush.msra.mxu1 %v6741_v5  ;;  %1170 = vmatpush.msra.mxu2 %v6742_v30  ;;  %v6760_v5 = vld [vmem:[#allocation74_spill] sm:$0xff]  ;;  %v6761_v30 = vld [vmem:[#allocation67_spill] sm:$0xff] }
  0xf3   : > { %1190 = vmatpush.msra.mxu3 %v6749_v21  ;;  %1210 = vmatpush.msrb.mxu0 %v4150_v53  ;;  %v6768_v21 = vld [vmem:[#allocation69_spill] sm:$0xff] }
  0xf4   : > { %1110 = vmatpush.msra.mxu1 %v6744_v36  ;;  %1171 = vmatpush.msra.mxu2 %v6745_v32  ;;  %v6763_v36 = vld [vmem:[#allocation78_spill] sm:$0xff]  ;;  %v6764_v32 = vld [vmem:[#allocation71_spill] sm:$0xff] }
  0xf5   : > { %1191 = vmatpush.msra.mxu3 %v6752_v29  ;;  %1211 = vmatpush.msrb.mxu0 %v4164_v56  ;;  %v6771_v29 = vld [vmem:[#allocation73_spill] sm:$0xff] }
  0xf6   : > { %1044 = vmatmul.f32.vlgmr.msrb.gmra.mxu1 %v4317_v46  ;;  %1064 = vmatmul.f32.vlgmr.msrb.gmra.mxu2 %v4317_v46 }
  0xf7   : > { %1111 = vmatpush.msra.mxu1 %v6747_v7  ;;  %1172 = vmatpush.msra.mxu2 %v6748_v13  ;;  %v6766_v7 = vld [vmem:[#allocation82_spill] sm:$0xff]  ;;  %v6767_v13 = vld [vmem:[#allocation75_spill] sm:$0xff] }
  0xf8   : > { %1192 = vmatpush.msra.mxu3 %v6755_v35  ;;  %1212 = vmatpush.msrb.mxu0 %v4178_v14  ;;  %v6774_v35 = vld [vmem:[#allocation81_spill] sm:$0xff] }
  0xf9   : > { %1112 = vmatpush.msra.mxu1 %v6750_v25  ;;  %1173 = vmatpush.msra.mxu2 %v6751_v26  ;;  %v6769_v25 = vld [vmem:[#allocation86_spill] sm:$0xff]  ;;  %v6770_v26 = vld [vmem:[#allocation79_spill] sm:$0xff] }
  0xfa   : > { %1193 = vmatpush.msra.mxu3 %v6758_v22  ;;  %1213 = vmatpush.msrb.mxu0 %v4192_v48  ;;  %v4397_v22 = vld [vmem:[#allocation4 + $0x150] sm:$0xff] }
  0xfb   : > { %1113 = vmatpush.msra.mxu1 %v6753_v33  ;;  %1174 = vmatpush.msra.mxu2 %v6754_v34  ;;  %v6772_v33 = vld [vmem:[#allocation83_spill] sm:$0xff]  ;;  %v6773_v34 = vld [vmem:[#allocation77_spill] sm:$0xff]  ;;  %6777 = vst [vmem:[#allocation11_spill] sm:$0xff] %v4397_v22 }
  0xfc   : > { %1194 = vmatpush.msra.mxu3 %v6761_v30  ;;  %1214 = vmatpush.msrb.mxu0 %v4200_v4  ;;  %v4408_v30 = vld [vmem:[#allocation4 + $0x140] sm:$0xff] }
  0xfd   : > { %1114 = vmatpush.msra.mxu1 %v6756_v50  ;;  %1175 = vmatpush.msra.mxu2 %v6757_v58  ;;  %v6775_v50 = vld [vmem:[#allocation85_spill] sm:$0xff]  ;;  %6780 = vst [vmem:[#allocation28_spill] sm:$0xff] %v4408_v30 }
  0xfe   : > { %1195 = vmatpush.msra.mxu3 %v6764_v32  ;;  %1215 = vmatpush.msrb.mxu0 %v4206_v0  ;;  %v4392_v58 = vld [vmem:[#allocation4 + $0x170] sm:$0xff]  ;;  %v4419_v32 = vld [vmem:[#allocation4 + $0x108] sm:$0xff] }
  0xff   : > { %1115 = vmatpush.msra.mxu1 %v6759_v52  ;;  %1176 = vmatpush.msra.mxu2 %v6760_v5  ;;  %6776 = vst [vmem:[#allocation25_spill] sm:$0xff] %v4392_v58  ;;  %v4400_v52 = vld [vmem:[#allocation4 + $0x158] sm:$0xff] }
 0x100   : > { %1196 = vmatpush.msra.mxu3 %v6767_v13  ;;  %1216 = vmatpush.msrb.mxu0 %v4212_v9  ;;  %6778 = vst [vmem:[#allocation20_spill] sm:$0xff] %v4400_v52  ;;  %v4405_v5 = vld [vmem:[#allocation4 + $0x138] sm:$0xff] }
 0x101   : > { %1116 = vmatpush.msra.mxu1 %v6762_v57  ;;  %1177 = vmatpush.msra.mxu2 %v6763_v36  ;;  %6779 = vst [vmem:[#allocation19_spill] sm:$0xff] %v4405_v5  ;;  %v4413_v57 = vld [vmem:[#allocation4 + $0x120] sm:$0xff]  ;;  %v4416_v36 = vld [vmem:[#allocation4 + $0x128] sm:$0xff]  ;;  %v4428_v13 = vld [vmem:[#allocation4 + $0xf8] sm:$0xff] }
 0x102   : > { %1197 = vmatpush.msra.mxu3 %v6770_v26  ;;  %1217 = vmatpush.msrb.mxu0 %v4220_v8  ;;  %6781 = vst [vmem:[#allocation12_spill] sm:$0xff] %v4413_v57  ;;  %v4437_v26 = vld [vmem:[#allocation4 + $0xc0] sm:$0xff] }
 0x103   : > { %1117 = vmatpush.msra.mxu1 %v6765_v10  ;;  %1178 = vmatpush.msra.mxu2 %v6766_v7  ;;  %6782 = vst [vmem:[#allocation35_spill] sm:$0xff] %v4416_v36  ;;  %v4422_v10 = vld [vmem:[#allocation4 + $0x110] sm:$0xff] }
 0x104   : > { %1198 = vmatpush.msra.mxu3 %v6772_v33  ;;  %1218 = vmatpush.msrb.mxu0 %v4228_v19  ;;  %6783 = vst [vmem:[#allocation22_spill] sm:$0xff] %v4419_v32  ;;  %v4425_v7 = vld [vmem:[#allocation4 + $0xf0] sm:$0xff]  ;;  %v4443_v33 = vld [vmem:[#allocation4 + $0xa8] sm:$0xff] }
 0x105   : > { %1118 = vmatpush.msra.mxu1 %v6768_v21  ;;  %1179 = vmatpush.msra.mxu2 %v6769_v25  ;;  %6784 = vst [vmem:[#allocation31_spill] sm:$0xff] %v4422_v10  ;;  %v4431_v21 = vld [vmem:[#allocation4 + $0xd8] sm:$0xff]  ;;  %v4434_v25 = vld [vmem:[#allocation4 + $0xe0] sm:$0xff] }
 0x106   : > { %1199 = vmatpush.msra.mxu3 %v4109_v62  ;;  %1219 = vmatpush.msrb.mxu0 %v4234_v15  ;;  %v4389_v62 = vld [vmem:[#allocation4 + $0x168] sm:$0xff]  ;;  %6785 = vst [vmem:[#allocation13_spill] sm:$0xff] %v4425_v7 }
 0x107   : > { %1119 = vmatpush.msra.mxu1 %v6771_v29  ;;  %1180 = vmatpush.msra.mxu2 %v4129_v63  ;;  %6786 = vst [vmem:[#allocation38_spill] sm:$0xff] %v4428_v13  ;;  %v4440_v29 = vld [vmem:[#allocation4 + $0xc8] sm:$0xff] }
 0x108   : > { %1200 = vmatpush.msra.mxu3 %v4131_v3  ;;  %1220 = vmatpush.msrb.mxu0 %v4240_v16  ;;  %6787 = vst [vmem:[#allocation24_spill] sm:$0xff] %v4431_v21 }
 0x109   : > { %1120 = vmatpush.msra.mxu1 %v6773_v34  ;;  %1181 = vmatpush.msra.mxu2 %v4141_v6  ;;  %6788 = vst [vmem:[#allocation33_spill] sm:$0xff] %v4434_v25  ;;  %v4447_v34 = vld [vmem:[#allocation4 + $0x90] sm:$0xff] }
 0x10a   : > { %1201 = vmatpush.msra.mxu3 %v4143_v61  ;;  %1221 = vmatpush.msrb.mxu0 %v4248_v17  ;;  %6789 = vst [vmem:[#allocation14_spill] sm:$0xff] %v4437_v26 }
 0x10b   : > { %1121 = vmatpush.msra.mxu1 %v6774_v35  ;;  %1182 = vmatpush.msra.mxu2 %v4156_v28  ;;  %6790 = vst [vmem:[#allocation41_spill] sm:$0xff] %v4440_v29 }
 0x10c   : > { %1202 = vmatpush.msra.mxu3 %v4158_v60  ;;  %1222 = vmatpush.msrb.mxu0 %v4254_v20  ;;  %6791 = vst [vmem:[#allocation27_spill] sm:$0xff] %v4443_v33 }
 0x10d   : > { %1122 = vmatpush.msra.mxu1 %v6775_v50  ;;  %1183 = vmatpush.msra.mxu2 %v4170_v1  ;;  %6792 = vst [vmem:[#allocation34_spill] sm:$0xff] %v4447_v34 }
 0x10e   : > { %1203 = vmatpush.msra.mxu3 %v4172_v40  ;;  %1223 = vmatpush.msrb.mxu0 %v4260_v23 }
 0x10f   : > { %1123 = vmatpush.msra.mxu1 %v4122_v59  ;;  %1184 = vmatpush.msra.mxu2 %v4184_v2 }
 0x110   : > { %1204 = vmatpush.msra.mxu3 %v4186_v54  ;;  %1224 = vmatpush.msrb.mxu0 %v4266_v24 }
 0x111   : > { %1277 = vmatpush.msrb.mxu1 %v4389_v62  ;;  %1297 = vmatpush.msrb.mxu2 %v4392_v58 }
 0x113   : > { %1278 = vmatpush.msrb.mxu1 %v4397_v22  ;;  %1298 = vmatpush.msrb.mxu2 %v4400_v52 }
 0x115   : > { %1279 = vmatpush.msrb.mxu1 %v4405_v5  ;;  %1299 = vmatpush.msrb.mxu2 %v4408_v30 }
 0x117   : > { %1280 = vmatpush.msrb.mxu1 %v4413_v57  ;;  %1300 = vmatpush.msrb.mxu2 %v4416_v36 }
 0x119   : > { %1281 = vmatpush.msrb.mxu1 %v4419_v32  ;;  %1301 = vmatpush.msrb.mxu2 %v4422_v10 }
 0x11b   : > { %1282 = vmatpush.msrb.mxu1 %v4425_v7  ;;  %1302 = vmatpush.msrb.mxu2 %v4428_v13  ;;  %v4455_v13 = vld [vmem:[#allocation4 + $0x60] sm:$0xff] }
 0x11c   : > { %6794 = vst [vmem:[#allocation44_spill] sm:$0xff] %v4455_v13 }
 0x11d   : > { %1283 = vmatpush.msrb.mxu1 %v4431_v21  ;;  %1303 = vmatpush.msrb.mxu2 %v4434_v25  ;;  %v4451_v25 = vld [vmem:[#allocation4 + $0x78] sm:$0xff] }
 0x11e   : > { %6793 = vst [vmem:[#allocation15_spill] sm:$0xff] %v4451_v25 }
 0x11f   : > { %1284 = vmatpush.msrb.mxu1 %v4437_v26  ;;  %1304 = vmatpush.msrb.mxu2 %v4440_v29  ;;  %v4459_v29 = vld [vmem:[#allocation4 + $0x48] sm:$0xff] }
 0x120   : > { %6795 = vst [vmem:[#allocation16_spill] sm:$0xff] %v4459_v29 }
 0x121   : > { %1285 = vmatpush.msrb.mxu1 %v4443_v33  ;;  %1305 = vmatpush.msrb.mxu2 %v3834_v37  ;;  %v576_v37 = vld [vmem:[%s6099_s7] sm:$0x7] }
 0x122   : > { %v4475_v10 = vperm.slane %v576_v37, 1 }
 0x123   : > { %1286 = vmatpush.msrb.mxu1 %v4447_v34  ;;  %1306 = vmatpush.msrb.mxu2 %v3846_v41  ;;  %v810_v41 = vpop.f32.mrf.mxu2 }
 0x124   : > { %6797 = vst [vmem:[#allocation17_spill] sm:$0xff] %v4475_v10 }
 0x125   : > { %1287 = vmatpush.msrb.mxu1 %v4451_v25  ;;  %1307 = vmatpush.msrb.mxu2 %v3858_v45  ;;  %v4472_v45 = vperm.slane %v576_v37, 0 }
 0x127   : > { %1288 = vmatpush.msrb.mxu1 %v4455_v13  ;;  %1308 = vmatpush.msrb.mxu2 %v3870_v49  ;;  %6796 = vst [vmem:[#allocation48_spill] sm:$0xff] %v4472_v45  ;;  %v4478_v13 = vld [vmem:[#allocation2 + $0x3] sm:$0x7] }
 0x129   : > { %1289 = vmatpush.msrb.mxu1 %v4459_v29  ;;  %1309 = vmatpush.msrb.mxu2 %v6703_v31 }
 0x12b   : > { %1290 = vmatpush.msrb.mxu1 %v3841_v39  ;;  %1310 = vmatpush.msrb.mxu2 %v6707_v42 }
 0x12d   : > { %1291 = vmatpush.msrb.mxu1 %v3853_v43  ;;  %1311 = vmatpush.msrb.mxu2 %v6711_v51 }
 0x12f   : > { %1292 = vmatpush.msrb.mxu1 %v3865_v47  ;;  %1312 = vmatpush.msrb.mxu2 %v6715_v11 }
 0x130   : > { %v830_v11 = vpop.f32.mrf.mxu3 }
 0x141   : > { %v850_v49 = vpop.f32.mrf.mxu0 }
 0x16b   : > { %v917_v31 = vpop.f32.mrf.mxu1 }
 0x16c   : > { %v918_v39 = vadd.f32 %v917_v31, %v4472_v45  ;;  %v1025_v30 = vpop.f32.mrf.mxu0 }
 0x16e   : > { %v960_v42 = vadd.f32 %v918_v39, %v810_v41 }
 0x170   : > { %v3027_v43 = vmul.f32 -1.442695, %v960_v42 }
 0x171   : > { %v937_v51 = vpop.f32.mrf.mxu2 }
 0x172   : > { %3100 = vpow2.f32 %v3027_v43  ;;  %v938_v47 = vadd.f32 %v937_v51, %v4475_v10 }
 0x173   : > { %v1045_v36 = vpop.f32.mrf.mxu1 }
 0x174   : > { %v961_v24 = vadd.f32 %v938_v47, %v830_v11  ;;  %v1132_v29 = vrot.slane %v1045_v36, 7 }
 0x176   : > { %v3028_v23 = vmul.f32 -1.442695, %v961_v24  ;;  %v1133_v54 = vsel %vm674_vm14, %v1025_v30, %v1132_v29  ;;  %v4487_v29 = vperm.slane %v576_v37, 2 }
 0x177   : > { %v1135_v31 = vadd.f32 %v1133_v54, %v4478_v13 }
 0x178   : > { %v3101_v41 = vpop.eup %3100  ;;  %3102 = vpow2.f32 %v3028_v23  ;;  %v4485_v23 = vld [vmem:[%s6100_s8] sm:$0x1] }
 0x179   : > { %v968_v39 = vadd.f32 1.0, %v3101_v41  ;;  %v3029_v42 = vmul.f32 -1.442695, %v1135_v31  ;;  %v957_v41 = vpop.f32.mrf.mxu3 }
 0x17a   : > { %v958_v25 = vadd.f32 %v957_v41, %v4487_v29 }
 0x17b   : > { %3104 = vrcp.f32 %v968_v39  ;;  %v981_v45 = vand.u32 2147483648, %v968_v39  ;;  %v979_v30 = vand.u32 2147483647, %v968_v39  ;;  %vm975_vm8 = vweird.f32 %v968_v39 }
 0x17c   : > { %3106 = vpow2.f32 %v3029_v42 }
 0x17d   : > { %vm980_vm10 = vcmp.eq.f32.partialorder %v979_v30, 8.507059e+37 }
 0x17e   : > { %v3103_v43 = vpop.eup %3102 }
 0x17f   : > { %v969_v51 = vadd.f32 1.0, %v3103_v43  ;;  %v982_v43 = vor.u32 1.1754944e-38, %v981_v45 }
 0x181   : > { %v3105_v10 = vpop.eup %3104  ;;  %3108 = vrcp.f32 %v969_v51  ;;  %v996_v58 = vand.u32 2147483648, %v969_v51  ;;  %v994_v34 = vand.u32 2147483647, %v969_v51  ;;  %vm990_vm12 = vweird.f32 %v969_v51 }
 0x182   : > { %v3107_v47 = vpop.eup %3106  ;;  %v971_v36 = vmul.f32 %v3105_v10, %v968_v39  ;;  %vm976_vm7 = vweird.f32 %v3105_v10 }
 0x183   : > { %v1139_v11 = vadd.f32 1.0, %v3107_v47  ;;  %vm977_vm9 = vmor %vm975_vm8, %vm976_vm7  ;;  %v1000_v47 = vadd.f32 %v850_v49, %v4485_v23  ;;  %v997_v49 = vor.u32 1.1754944e-38, %v996_v58  ;;  %vm995_vm0 = vcmp.eq.f32.partialorder %v994_v34, 8.507059e+37 }
 0x184   : > { %v972_v24 = vsub.f32 1.0, %v971_v36 }
 0x185   : > { %3110 = vrcp.f32 %v1139_v11  ;;  %v1149_v45 = vand.u32 2147483647, %v1139_v11  ;;  %v1151_v16 = vand.u32 2147483648, %v1139_v11  ;;  %vm1145_vm1 = vweird.f32 %v1139_v11 }
 0x186   : > { %v973_v52 = vmul.f32 %v3105_v10, %v972_v24 }
 0x187   : > { %v3109_v54 = vpop.eup %3108  ;;  %vm1150_vm3 = vcmp.eq.f32.partialorder %v1149_v45, 8.507059e+37 }
 0x188   : > { %v986_v31 = vmul.f32 %v3109_v54, %v969_v51  ;;  %v974_v42 = vadd.f32 %v3105_v10, %v973_v52  ;;  %vm991_vm11 = vweird.f32 %v3109_v54 }
 0x189   : > { %vm992_vm13 = vmor %vm990_vm12, %vm991_vm11 }
 0x18a   : > { %v987_v36 = vsub.f32 1.0, %v986_v31  ;;  %v978_v24 = vsel %vm977_vm9, %v3105_v10, %v974_v42  ;;  %v1065_v31 = vpop.f32.mrf.mxu2  ;;  %v1152_v42 = vor.u32 1.1754944e-38, %v1151_v16  ;;  %v4498_v16 = vld [vmem:[#allocation4 + $0x178] sm:$0xff] }
 0x18b   : > { %v3111_v20 = vpop.eup %3110  ;;  %v983_v40 = vsel %vm980_vm10, %v982_v43, %v978_v24 }
 0x18c   : > { %v1001_v17 = vmul.f32 %v1000_v47, %v983_v40  ;;  %v1141_v2 = vmul.f32 %v3111_v20, %v1139_v11  ;;  %v988_v37 = vmul.f32 %v3109_v54, %v987_v36  ;;  %vm1146_vm15 = vweird.f32 %v3111_v20  ;;  %v4507_v11 = vld [vmem:[#allocation4 + $0x160] sm:$0xff] }
 0x18d   : > { %vm1147_vm2 = vmor %vm1145_vm1, %vm1146_vm15 }
 0x18e   : > { %v1002_v60 = vadd.f32 %v1001_v17, %v958_v25  ;;  %v1142_v52 = vsub.f32 1.0, %v1141_v2  ;;  %v989_v39 = vadd.f32 %v3109_v54, %v988_v37  ;;  %v1155_v2 = vadd.f32 %v1065_v31, %v4289_v12  ;;  %v4520_v31 = vld [vmem:[#allocation8 + $0x138] sm:$0xff] }
 0x190   : > { %3112 = vtanh.f32 %v1002_v60  ;;  %v1143_v10 = vmul.f32 %v3111_v20, %v1142_v52  ;;  %v993_v30 = vsel %vm992_vm13, %v3109_v54, %v989_v39  ;;  %v1158_v60 = vrot.slane %v4478_v13, 2  ;;  %v4504_v13 = vld [vmem:[#allocation8 + $0x170] sm:$0xff]  ;;  %v4513_v39 = vld [vmem:[#allocation8 + $0x158] sm:$0xff] }
 0x191   : > { %v998_v40 = vsel %vm995_vm0, %v997_v49, %v993_v30  ;;  %v4510_v52 = vld [vmem:[#allocation8 + $0x150] sm:$0xff]  ;;  %v4516_v49 = vld [vmem:[#allocation4 + $0x148] sm:$0xff] }
 0x192   : > { %v1144_v41 = vadd.f32 %v3111_v20, %v1143_v10  ;;  %v1004_v25 = vsub.f32 1.0, %v998_v40  ;;  %v1006_v36 = vmul.f32 0.0, %v998_v40  ;;  %v4526_v40 = vld [vmem:[#allocation4 + $0x130] sm:$0xff] }
 0x194   : > { %v1148_v43 = vsel %vm1147_vm2, %v3111_v20, %v1144_v41  ;;  %v4501_v20 = vld [vmem:[#allocation8 + $0x168] sm:$0xff]  ;;  %v4523_v41 = vld [vmem:[#allocation8 + $0x140] sm:$0xff] }
 0x195   : > { %v1153_v17 = vsel %vm1150_vm3, %v1152_v42, %v1148_v43  ;;  %v4531_v43 = vld [vmem:[#allocation8 + $0x120] sm:$0xff] }
 0x196   : > { %v3113_v51 = vpop.eup %3112  ;;  %v1156_v47 = vmul.f32 %v1155_v2, %v1153_v17  ;;  %v1163_v34 = vrot.slane %v1153_v17, 1  ;;  %v4534_v2 = vld [vmem:[#allocation8 + $0x128] sm:$0xff]  ;;  %v4544_v17 = vld [vmem:[#allocation4 + $0x100] sm:$0xff] }
 0x197   : > { %v1005_v58 = vmul.f32 %v3113_v51, %v1004_v25  ;;  %v4547_v25 = vld [vmem:[#allocation8 + $0x108] sm:$0xff]  ;;  %v4550_v51 = vld [vmem:[#allocation8 + $0x178] sm:$0xff] }
 0x198   : > { %v1160_v54 = vadd.f32 %v1158_v60, %v1156_v47  ;;  %v1165_v37 = vsub.f32 1.0, %v1163_v34  ;;  %v1167_v30 = vmul.f32 %v1163_v34, %v4317_v46  ;;  %v4537_v46 = vld [vmem:[#allocation4 + $0x118] sm:$0xff]  ;;  %v4553_v47 = vld [vmem:[#allocation8 + $0x110] sm:$0xff]  ;;  %v4556_v60 = vld [vmem:[#allocation4 + $0xe8] sm:$0xff] }
 0x199   : > { %v4493_v24 = vadd.f32 %v1006_v36, %v1005_v58  ;;  %v4559_v58 = vld [vmem:[#allocation8 + $0xf0] sm:$0xff]  ;;  %v4562_v36 = vld [vmem:[#allocation8 + $0x160] sm:$0xff] }
 0x19a   : > { %3114 = vtanh.f32 %v1160_v54  ;;  %6798 = vst [vmem:[#allocation53_spill] sm:$0xff] %v4562_v36  ;;  %v4565_v54 = vld [vmem:[#allocation8 + $0xf8] sm:$0xff]  ;;  %v4568_v34 = vld [vmem:[#allocation4 + $0xd0] sm:$0xff] }
 0x19b   : > { %1084 = vmatmul.f32.vlgmr.msrb.gmra.mxu3 %v4493_v24  ;;  %1104 = vmatmul.f32.vlgmr.msra.gmra.mxu0 %v4493_v24  ;;  %6799 = vst [vmem:[#allocation18_spill] sm:$0xff] %v4568_v34 }
 0x19c   : > { %1124 = vmatmul.f32.vlgmr.msra.gmra.mxu1 %v4493_v24  ;;  %1317 = vmatpush.msrb.mxu3 %v4498_v16 }
 0x19d   : > { %1337 = vmatpush.msra.mxu0 %v4501_v20  ;;  %1357 = vmatpush.msra.mxu1 %v4504_v13 }
 0x19e   : > { %1318 = vmatpush.msrb.mxu3 %v4507_v11 }
 0x19f   : > { %1338 = vmatpush.msra.mxu0 %v4510_v52  ;;  %1358 = vmatpush.msra.mxu1 %v4513_v39 }
 0x1a0   : > { %v3115_v45 = vpop.eup %3114  ;;  %1319 = vmatpush.msrb.mxu3 %v4516_v49 }
 0x1a1   : > { %v1166_v10 = vmul.f32 %v3115_v45, %v1165_v37  ;;  %1339 = vmatpush.msra.mxu0 %v4520_v31  ;;  %1359 = vmatpush.msra.mxu1 %v4523_v41  ;;  %v4571_v37 = vld [vmem:[#allocation8 + $0xd8] sm:$0xff]  ;;  %v4574_v45 = vld [vmem:[#allocation8 + $0x148] sm:$0xff] }
 0x1a2   : > { %1320 = vmatpush.msrb.mxu3 %v4526_v40  ;;  %6800 = vst [vmem:[#allocation56_spill] sm:$0xff] %v4571_v37 }
 0x1a3   : > { %v4529_v42 = vadd.f32 %v1167_v30, %v1166_v10  ;;  %1340 = vmatpush.msra.mxu0 %v4531_v43  ;;  %1360 = vmatpush.msra.mxu1 %v4534_v2  ;;  %6801 = vst [vmem:[#allocation21_spill] sm:$0xff] %v4574_v45  ;;  %v4577_v10 = vld [vmem:[#allocation8 + $0xe0] sm:$0xff]  ;;  %v4580_v30 = vld [vmem:[#allocation4 + $0xb8] sm:$0xff] }
 0x1a4   : > { %1321 = vmatpush.msrb.mxu3 %v4537_v46  ;;  %6802 = vst [vmem:[#allocation60_spill] sm:$0xff] %v4577_v10 }
 0x1a5   : > { %1185 = vmatmul.f32.vlgmr.msra.gmra.mxu2 %v4529_v42  ;;  %1205 = vmatmul.f32.vlgmr.msra.gmra.mxu3 %v4529_v42  ;;  %6803 = vst [vmem:[#allocation23_spill] sm:$0xff] %v4580_v30 }
 0x1a6   : > { %1225 = vmatmul.f32.vlgmr.msrb.gmra.mxu0 %v4529_v42  ;;  %1293 = vmatmul.f32.vlgmr.msrb.gmra.mxu1 %v4529_v42 }
 0x1a7   : > { %1322 = vmatpush.msrb.mxu3 %v4544_v17  ;;  %1341 = vmatpush.msra.mxu0 %v4547_v25 }
 0x1a8   : > { %1377 = vmatpush.msra.mxu2 %v4550_v51  ;;  %1361 = vmatpush.msra.mxu1 %v4553_v47 }
 0x1a9   : > { %1323 = vmatpush.msrb.mxu3 %v4556_v60  ;;  %1342 = vmatpush.msra.mxu0 %v4559_v58 }
 0x1aa   : > { %1378 = vmatpush.msra.mxu2 %v4562_v36  ;;  %1362 = vmatpush.msra.mxu1 %v4565_v54  ;;  %v4584_v36 = vld [vmem:[#allocation8 + $0xc0] sm:$0xff] }
 0x1ab   : > { %1324 = vmatpush.msrb.mxu3 %v4568_v34  ;;  %1343 = vmatpush.msra.mxu0 %v4571_v37  ;;  %6804 = vst [vmem:[#allocation64_spill] sm:$0xff] %v4584_v36  ;;  %v4587_v34 = vld [vmem:[#allocation8 + $0x130] sm:$0xff]  ;;  %v4590_v37 = vld [vmem:[#allocation4 + $0xa0] sm:$0xff] }
 0x1ac   : > { %1379 = vmatpush.msra.mxu2 %v4574_v45  ;;  %1363 = vmatpush.msra.mxu1 %v4577_v10  ;;  %6805 = vst [vmem:[#allocation26_spill] sm:$0xff] %v4587_v34  ;;  %v4593_v45 = vld [vmem:[#allocation8 + $0xc8] sm:$0xff] }
 0x1ad   : > { %1325 = vmatpush.msrb.mxu3 %v4580_v30  ;;  %1313 = vmatmul.f32.vlgmr.msrb.gmra.mxu2 %v4529_v42  ;;  %6806 = vst [vmem:[#allocation68_spill] sm:$0xff] %v4590_v37  ;;  %v4596_v10 = vld [vmem:[#allocation8 + $0xa8] sm:$0xff]  ;;  %v4599_v30 = vld [vmem:[#allocation8 + $0x118] sm:$0xff] }
 0x1ae   : > { %1344 = vmatpush.msra.mxu0 %v4584_v36  ;;  %1380 = vmatpush.msra.mxu2 %v4587_v34  ;;  %6807 = vst [vmem:[#allocation29_spill] sm:$0xff] %v4593_v45  ;;  %v4602_v36 = vld [vmem:[#allocation4 + $0x88] sm:$0xff]  ;;  %v4605_v34 = vld [vmem:[#allocation8 + $0xb0] sm:$0xff] }
 0x1af   : > { %1326 = vmatpush.msrb.mxu3 %v4590_v37  ;;  %1364 = vmatpush.msra.mxu1 %v4593_v45  ;;  %6808 = vst [vmem:[#allocation72_spill] sm:$0xff] %v4596_v10  ;;  %v4608_v37 = vld [vmem:[#allocation8 + $0x90] sm:$0xff]  ;;  %v4611_v45 = vld [vmem:[#allocation8 + $0x100] sm:$0xff] }
 0x1b0   : > { %1345 = vmatpush.msra.mxu0 %v4596_v10  ;;  %6809 = vst [vmem:[#allocation32_spill] sm:$0xff] %v4599_v30  ;;  %1381 = vmatpush.msra.mxu2 %v4599_v30  ;;  %v4614_v10 = vld [vmem:[#allocation4 + $0x70] sm:$0xff]  ;;  %v4617_v30 = vld [vmem:[#allocation8 + $0x98] sm:$0xff] }
 0x1b1   : > { %6810 = vst [vmem:[#allocation76_spill] sm:$0xff] %v4602_v36  ;;  %1327 = vmatpush.msrb.mxu3 %v4602_v36  ;;  %1365 = vmatpush.msra.mxu1 %v4605_v34  ;;  %v4620_v36 = vld [vmem:[#allocation8 + $0x78] sm:$0xff] }
 0x1b2   : > { %6811 = vst [vmem:[#allocation37_spill] sm:$0xff] %v4605_v34  ;;  %1346 = vmatpush.msra.mxu0 %v4608_v37  ;;  %1382 = vmatpush.msra.mxu2 %v4611_v45  ;;  %v4623_v34 = vld [vmem:[#allocation8 + $0xe8] sm:$0xff] }
 0x1b3   : > { %6812 = vst [vmem:[#allocation80_spill] sm:$0xff] %v4608_v37  ;;  %1328 = vmatpush.msrb.mxu3 %v4614_v10  ;;  %1366 = vmatpush.msra.mxu1 %v4617_v30  ;;  %v4626_v37 = vld [vmem:[#allocation4 + $0x58] sm:$0xff] }
 0x1b4   : > { %6813 = vst [vmem:[#allocation30_spill] sm:$0xff] %v4611_v45  ;;  %1347 = vmatpush.msra.mxu0 %v4620_v36  ;;  %1383 = vmatpush.msra.mxu2 %v4623_v34  ;;  %v4629_v45 = vld [vmem:[#allocation8 + $0x80] sm:$0xff] }
 0x1b5   : > { %6814 = vst [vmem:[#allocation46_spill] sm:$0xff] %v4614_v10  ;;  %1329 = vmatpush.msrb.mxu3 %v4626_v37  ;;  %1367 = vmatpush.msra.mxu1 %v4629_v45  ;;  %v4632_v10 = vld [vmem:[#allocation8 + $0x60] sm:$0xff] }
 0x1b6   : > { %6815 = vst [vmem:[#allocation40_spill] sm:$0xff] %v4617_v30  ;;  %1348 = vmatpush.msra.mxu0 %v4632_v10  ;;  %v4635_v30 = vld [vmem:[#allocation8 + $0xd0] sm:$0xff] }
 0x1b7   : > { %6816 = vst [vmem:[#allocation84_spill] sm:$0xff] %v4620_v36  ;;  %1384 = vmatpush.msra.mxu2 %v4635_v30  ;;  %v4638_v36 = vld [vmem:[#allocation4 + $0x40] sm:$0xff] }
 0x1b8   : > { %6817 = vst [vmem:[#allocation36_spill] sm:$0xff] %v4623_v34  ;;  %1330 = vmatpush.msrb.mxu3 %v4638_v36  ;;  %v4641_v34 = vld [vmem:[#allocation8 + $0x68] sm:$0xff] }
 0x1b9   : > { %6818 = vst [vmem:[#allocation50_spill] sm:$0xff] %v4626_v37  ;;  %1368 = vmatpush.msra.mxu1 %v4641_v34  ;;  %v4644_v37 = vld [vmem:[#allocation8 + $0x48] sm:$0xff] }
 0x1ba   : > { %6819 = vst [vmem:[#allocation43_spill] sm:$0xff] %v4629_v45  ;;  %1349 = vmatpush.msra.mxu0 %v4644_v37  ;;  %v4647_v45 = vld [vmem:[#allocation8 + $0xb8] sm:$0xff] }
 0x1bb   : > { %6820 = vst [vmem:[#allocation39_spill] sm:$0xff] %v4632_v10  ;;  %1385 = vmatpush.msra.mxu2 %v4647_v45  ;;  %v4650_v10 = vld [vmem:[#allocation4 + $0x28] sm:$0xff]  ;;  %1369 = vmatpush.msra.mxu1 %v6734_v38 }
 0x1bc   : > { %6821 = vst [vmem:[#allocation52_spill] sm:$0xff] %v4635_v30  ;;  %1331 = vmatpush.msrb.mxu3 %v4650_v10  ;;  %v4654_v30 = vld [vmem:[#allocation8 + $0x30] sm:$0xff]  ;;  %v4668_v38 = vld [vmem:[#allocation6 + $0x168] sm:$0xff] }
 0x1bd   : > { %6822 = vst [vmem:[#allocation47_spill] sm:$0xff] %v4638_v36  ;;  %1350 = vmatpush.msra.mxu0 %v4654_v30  ;;  %v4657_v36 = vld [vmem:[#allocation8 + $0xa0] sm:$0xff]  ;;  %1370 = vmatpush.msra.mxu1 %v6736_v55  ;;  %v4678_v55 = vld [vmem:[#allocation6 + $0x150] sm:$0xff] }
 0x1be   : > { %6823 = vst [vmem:[#allocation42_spill] sm:$0xff] %v4641_v34  ;;  %1386 = vmatpush.msra.mxu2 %v4657_v36  ;;  %v4660_v34 = vld [vmem:[#allocation4 + $0x10] sm:$0xff] }
 0x1bf   : > { %6824 = vst [vmem:[#allocation58_spill] sm:$0xff] %v4644_v37  ;;  %1332 = vmatpush.msrb.mxu3 %v4660_v34  ;;  %1371 = vmatpush.msra.mxu1 %v6740_v44  ;;  %v4694_v44 = vld [vmem:[#allocation6 + $0x158] sm:$0xff] }
 0x1c0   : > { %6825 = vst [vmem:[#allocation51_spill] sm:$0xff] %v4647_v45  ;;  %1333 = vmatmul.f32.vlgmr.msrb.gmra.mxu3 %v4529_v42  ;;  %v4665_v45 = vld [vmem:[#allocation8 + $0x18] sm:$0xff] }
 0x1c1   : > { %6826 = vst [vmem:[#allocation45_spill] sm:$0xff] %v4650_v10  ;;  %1351 = vmatpush.msra.mxu0 %v4665_v45  ;;  %1438 = vmatpush.msra.mxu3 %v4668_v38  ;;  %v4671_v10 = vld [vmem:[#allocation8 + $0x88] sm:$0xff] }
 0x1c2   : > { %6827 = vst [vmem:[#allocation62_spill] sm:$0xff] %v4654_v30  ;;  %1387 = vmatpush.msra.mxu2 %v4671_v10  ;;  %1372 = vmatpush.msra.mxu1 %v4120_v18  ;;  %v4702_v18 = vld [vmem:[#allocation6 + $0x140] sm:$0xff] }
 0x1c3   : > { %6828 = vst [vmem:[#allocation55_spill] sm:$0xff] %v4657_v36  ;;  %v4674_v36 = vld [vmem:[#allocation8] sm:$0xff]  ;;  %1439 = vmatpush.msra.mxu3 %v4678_v55 }
 0x1c4   : > { %6829 = vst [vmem:[#allocation49_spill] sm:$0xff] %v4660_v34  ;;  %1352 = vmatpush.msra.mxu0 %v4674_v36  ;;  %v4681_v34 = vld [vmem:[#allocation8 + $0x70] sm:$0xff]  ;;  %1478 = vmatpush.msrb.mxu1 %v4135_v27 }
 0x1c5   : > { %6830 = vst [vmem:[#allocation66_spill] sm:$0xff] %v4665_v45  ;;  %1388 = vmatpush.msra.mxu2 %v4681_v34  ;;  %v4684_v45 = vld [vmem:[#allocation6 + $0x170] sm:$0xff] }
 0x1c6   : > { %6831 = vst [vmem:[#allocation59_spill] sm:$0xff] %v4668_v38  ;;  %1458 = vmatpush.msrb.mxu0 %v4684_v45  ;;  %v4688_v38 = vld [vmem:[#allocation6 + $0x138] sm:$0xff]  ;;  %1479 = vmatpush.msrb.mxu1 %v4150_v53  ;;  %v4714_v27 = vld [vmem:[#allocation6 + $0xf0] sm:$0xff] }
 0x1c7   : > { %6832 = vst [vmem:[#allocation54_spill] sm:$0xff] %v4671_v10  ;;  %1440 = vmatpush.msra.mxu3 %v4688_v38  ;;  %v4722_v53 = vld [vmem:[#allocation6 + $0xd8] sm:$0xff] }
 0x1c8   : > { %6833 = vst [vmem:[#allocation70_spill] sm:$0xff] %v4674_v36  ;;  %v4691_v36 = vld [vmem:[#allocation8 + $0x58] sm:$0xff]  ;;  %1459 = vmatpush.msrb.mxu0 %v4694_v44  ;;  %1480 = vmatpush.msrb.mxu1 %v4164_v56  ;;  %v4730_v56 = vld [vmem:[#allocation6 + $0xc0] sm:$0xff] }
 0x1c9   : > { %6834 = vst [vmem:[#allocation63_spill] sm:$0xff] %v4678_v55  ;;  %1389 = vmatpush.msra.mxu2 %v4691_v36  ;;  %v4698_v55 = vld [vmem:[#allocation6 + $0x120] sm:$0xff] }
 0x1ca   : > { %6835 = vst [vmem:[#allocation57_spill] sm:$0xff] %v4681_v34  ;;  %1441 = vmatpush.msra.mxu3 %v4698_v55  ;;  %1460 = vmatpush.msrb.mxu0 %v4702_v18 }
 0x1cb   : > { %6836 = vst [vmem:[#allocation74_spill] sm:$0xff] %v4684_v45  ;;  %1390 = vmatpush.msra.mxu2 %v6774_v35  ;;  %v4718_v35 = vld [vmem:[#allocation6 + $0x110] sm:$0xff]  ;;  %1481 = vmatpush.msrb.mxu1 %v4178_v14  ;;  %v4742_v14 = vld [vmem:[#allocation6 + $0xc8] sm:$0xff] }
 0x1cc   : > { %6837 = vst [vmem:[#allocation67_spill] sm:$0xff] %v4688_v38  ;;  %v4706_v38 = vld [vmem:[#allocation6 + $0x108] sm:$0xff] }
 0x1cd   : > { %6838 = vst [vmem:[#allocation61_spill] sm:$0xff] %v4691_v36  ;;  %1442 = vmatpush.msra.mxu3 %v4706_v38  ;;  %1391 = vmatpush.msra.mxu2 %v6775_v50  ;;  %v4726_v50 = vld [vmem:[#allocation6 + $0xf8] sm:$0xff] }
 0x1ce   : > { %6839 = vst [vmem:[#allocation78_spill] sm:$0xff] %v4694_v44  ;;  %v4710_v44 = vld [vmem:[#allocation6 + $0x128] sm:$0xff]  ;;  %1482 = vmatpush.msrb.mxu1 %v4192_v48  ;;  %v4750_v48 = vld [vmem:[#allocation6 + $0xb0] sm:$0xff] }
 0x1cf   : > { %6840 = vst [vmem:[#allocation71_spill] sm:$0xff] %v4698_v55  ;;  %1461 = vmatpush.msrb.mxu0 %v4710_v44  ;;  %1443 = vmatpush.msra.mxu3 %v4714_v27 }
 0x1d0   : > { %6841 = vst [vmem:[#allocation65_spill] sm:$0xff] %v4702_v18  ;;  %1392 = vmatpush.msra.mxu2 %v4122_v59  ;;  %v4734_v59 = vld [vmem:[#allocation6 + $0xe0] sm:$0xff]  ;;  %1483 = vmatpush.msrb.mxu1 %v4200_v4  ;;  %v4758_v4 = vld [vmem:[#allocation6 + $0x98] sm:$0xff] }
 0x1d1   : > { %6842 = vst [vmem:[#allocation82_spill] sm:$0xff] %v4706_v38  ;;  %1462 = vmatpush.msrb.mxu0 %v4718_v35  ;;  %1444 = vmatpush.msra.mxu3 %v4722_v53 }
 0x1d2   : > { %6843 = vst [vmem:[#allocation75_spill] sm:$0xff] %v4710_v44  ;;  %1546 = vmatpush.msrb.mxu2 %v4389_v62  ;;  %1484 = vmatpush.msrb.mxu1 %v4206_v0  ;;  %v4764_v0 = vld [vmem:[#allocation6 + $0x80] sm:$0xff] }
 0x1d3   : > { %6844 = vst [vmem:[#allocation69_spill] sm:$0xff] %v4714_v27  ;;  %1463 = vmatpush.msrb.mxu0 %v4726_v50  ;;  %1445 = vmatpush.msra.mxu3 %v4730_v56 }
 0x1d4   : > { %6845 = vst [vmem:[#allocation86_spill] sm:$0xff] %v4718_v35  ;;  %1547 = vmatpush.msrb.mxu2 %v4397_v22  ;;  %1485 = vmatpush.msrb.mxu1 %v4212_v9  ;;  %v6858_v9 = vld [vmem:[#allocation87_spill] sm:$0xff] }
 0x1d5   : > { %6846 = vst [vmem:[#allocation79_spill] sm:$0xff] %v4722_v53  ;;  %1464 = vmatpush.msrb.mxu0 %v4734_v59  ;;  %v4738_v53 = vld [vmem:[#allocation6 + $0xa8] sm:$0xff] }
 0x1d6   : > { %6847 = vst [vmem:[#allocation73_spill] sm:$0xff] %v4726_v50  ;;  %1548 = vmatpush.msrb.mxu2 %v4405_v5  ;;  %1446 = vmatpush.msra.mxu3 %v4738_v53 }
 0x1d7   : > { %6848 = vst [vmem:[#allocation83_spill] sm:$0xff] %v4730_v56  ;;  %1465 = vmatpush.msrb.mxu0 %v4742_v14  ;;  %v4746_v56 = vld [vmem:[#allocation6 + $0x90] sm:$0xff]  ;;  %1486 = vmatpush.msrb.mxu1 %v4220_v8 }
 0x1d8   : > { %6849 = vst [vmem:[#allocation77_spill] sm:$0xff] %v4734_v59  ;;  %1549 = vmatpush.msrb.mxu2 %v4413_v57  ;;  %1447 = vmatpush.msra.mxu3 %v4746_v56  ;;  %v6860_v8 = vld [vmem:[#allocation89_spill] sm:$0xff] }
 0x1d9   : > { %6850 = vst [vmem:[#allocation81_spill] sm:$0xff] %v4738_v53  ;;  %1466 = vmatpush.msrb.mxu0 %v4750_v48  ;;  %v4754_v53 = vld [vmem:[#allocation6 + $0x78] sm:$0xff]  ;;  %1487 = vmatpush.msrb.mxu1 %v4228_v19  ;;  %v6862_v19 = vld [vmem:[#allocation25_spill] sm:$0xff] }
 0x1da   : > { %6851 = vst [vmem:[#allocation85_spill] sm:$0xff] %v4742_v14  ;;  %1550 = vmatpush.msrb.mxu2 %v4419_v32  ;;  %1448 = vmatpush.msra.mxu3 %v4754_v53  ;;  %v4833_v32 = vld [vmem:[#allocation2 + $0x6] sm:$0x7] }
 0x1db   : > { %6852 = vst [vmem:[#allocation96_spill] sm:$0xff] %v4746_v56  ;;  %1467 = vmatpush.msrb.mxu0 %v4758_v4  ;;  %1488 = vmatpush.msrb.mxu1 %v4234_v15  ;;  %v6864_v15 = vld [vmem:[#allocation15_spill] sm:$0xff] }
 0x1dc   : > { %6853 = vst [vmem:[#allocation97_spill] sm:$0xff] %v4750_v48  ;;  %1551 = vmatpush.msrb.mxu2 %v4425_v7  ;;  %1449 = vmatpush.msra.mxu3 %v4129_v63  ;;  %v6857_v63 = vld [vmem:[#allocation91_spill] sm:$0xff] }
 0x1dd   : > { %6854 = vst [vmem:[#allocation98_spill] sm:$0xff] %v4754_v53  ;;  %1468 = vmatpush.msrb.mxu0 %v4764_v0  ;;  %1489 = vmatpush.msrb.mxu1 %v6857_v63  ;;  %v6868_v63 = vld [vmem:[#allocation44_spill] sm:$0xff] }
 0x1de   : > { %6855 = vst [vmem:[#allocation99_spill] sm:$0xff] %v4758_v4  ;;  %1552 = vmatpush.msrb.mxu2 %v4431_v21  ;;  %1450 = vmatpush.msra.mxu3 %v4141_v6  ;;  %v6859_v6 = vld [vmem:[#allocation34_spill] sm:$0xff] }
 0x1df   : > { %6856 = vst [vmem:[#allocation100_spill] sm:$0xff] %v4764_v0  ;;  %1469 = vmatpush.msrb.mxu0 %v4131_v3  ;;  %v6861_v3 = vld [vmem:[#allocation92_spill] sm:$0xff] }
 0x1e0   : > { %1553 = vmatpush.msrb.mxu2 %v4437_v26  ;;  %1451 = vmatpush.msra.mxu3 %v4156_v28  ;;  %v6863_v28 = vld [vmem:[#allocation88_spill] sm:$0xff] }
 0x1e1   : > { %1470 = vmatpush.msrb.mxu0 %v4143_v61  ;;  %1490 = vmatpush.msrb.mxu1 %v6861_v3  ;;  %v6865_v61 = vld [vmem:[#allocation93_spill] sm:$0xff]  ;;  %v6872_v3 = vld [vmem:[#allocation95_spill] sm:$0xff] }
 0x1e2   : > { %1554 = vmatpush.msrb.mxu2 %v4443_v33  ;;  %1452 = vmatpush.msra.mxu3 %v4170_v1  ;;  %v6866_v33 = vld [vmem:[#allocation20_spill] sm:$0xff]  ;;  %v6867_v1 = vld [vmem:[#allocation90_spill] sm:$0xff] }
 0x1e3   : > { %1471 = vmatpush.msrb.mxu0 %v6858_v9  ;;  %1491 = vmatpush.msrb.mxu1 %v6865_v61  ;;  %v6869_v9 = vld [vmem:[#allocation94_spill] sm:$0xff]  ;;  %v6875_v61 = vld [vmem:[#allocation31_spill] sm:$0xff] }
 0x1e4   : > { %1555 = vmatpush.msrb.mxu2 %v6859_v6  ;;  %1453 = vmatpush.msra.mxu3 %v6860_v8  ;;  %v6870_v6 = vld [vmem:[#allocation28_spill] sm:$0xff] }
 0x1e5   : > { %1472 = vmatpush.msrb.mxu0 %v6863_v28  ;;  %1492 = vmatpush.msrb.mxu1 %v6869_v9  ;;  %v6871_v8 = vld [vmem:[#allocation16_spill] sm:$0xff]  ;;  %v4794_v28 = vld [vmem:[#allocation4 + $0x30] sm:$0xff]  ;;  %v4802_v9 = vld [vmem:[#allocation4] sm:$0xff] }
 0x1e6   : > { %1566 = vmatpush.msrb.mxu3 %v6862_v19  ;;  %1556 = vmatpush.msrb.mxu2 %v6864_v15  ;;  %v6873_v19 = vld [vmem:[#allocation35_spill] sm:$0xff]  ;;  %6874 = vst [vmem:[#allocation91_spill] sm:$0xff] %v4794_v28  ;;  %v6890_v15 = vld [vmem:[#allocation17_spill] sm:$0xff] }
 0x1e7   : > { %1473 = vmatpush.msrb.mxu0 %v6867_v1  ;;  %1493 = vmatpush.msrb.mxu1 %v6872_v3  ;;  %v6877_v1 = vld [vmem:[#allocation38_spill] sm:$0xff]  ;;  %6878 = vst [vmem:[#allocation89_spill] sm:$0xff] %v4802_v9  ;;  %v6880_v3 = vld [vmem:[#allocation41_spill] sm:$0xff] }
 0x1e8   : > { %1567 = vmatpush.msrb.mxu3 %v6866_v33  ;;  %1557 = vmatpush.msrb.mxu2 %v6868_v63  ;;  %v4798_v33 = vld [vmem:[#allocation4 + $0x18] sm:$0xff] }
 0x1e9   : > { %6876 = vst [vmem:[#allocation87_spill] sm:$0xff] %v4798_v33 }
 0x1ea   : > { %1568 = vmatpush.msrb.mxu3 %v6870_v6  ;;  %1558 = vmatpush.msrb.mxu2 %v6871_v8  ;;  %v6879_v6 = vld [vmem:[#allocation33_spill] sm:$0xff]  ;;  %v6889_v8 = vld [vmem:[#allocation48_spill] sm:$0xff] }
 0x1ec   : > { %1569 = vmatpush.msrb.mxu3 %v6873_v19  ;;  %1559 = vmatpush.msrb.mxu2 %v4794_v28  ;;  %v4807_v19 = vld [vmem:[#allocation4 + $0xb0] sm:$0xff]  ;;  %v4810_v28 = vld [vmem:[#allocation4 + $0x98] sm:$0xff] }
 0x1ed   : > { %6881 = vst [vmem:[#allocation92_spill] sm:$0xff] %v4807_v19 }
 0x1ee   : > { %1570 = vmatpush.msrb.mxu3 %v6875_v61  ;;  %1560 = vmatpush.msrb.mxu2 %v4798_v33  ;;  %6882 = vst [vmem:[#allocation25_spill] sm:$0xff] %v4810_v28  ;;  %v4813_v61 = vld [vmem:[#allocation4 + $0x80] sm:$0xff] }
 0x1ef   : > { %6883 = vst [vmem:[#allocation88_spill] sm:$0xff] %v4813_v61 }
 0x1f0   : > { %1571 = vmatpush.msrb.mxu3 %v6877_v1  ;;  %1561 = vmatpush.msrb.mxu2 %v4802_v9  ;;  %v4816_v1 = vld [vmem:[#allocation4 + $0x68] sm:$0xff]  ;;  %v4819_v9 = vld [vmem:[#allocation4 + $0x50] sm:$0xff] }
 0x1f1   : > { %6884 = vst [vmem:[#allocation93_spill] sm:$0xff] %v4816_v1 }
 0x1f2   : > { %1572 = vmatpush.msrb.mxu3 %v6879_v6  ;;  %6885 = vst [vmem:[#allocation20_spill] sm:$0xff] %v4819_v9 }
 0x1f4   : > { %1573 = vmatpush.msrb.mxu3 %v6880_v3  ;;  %v4822_v3 = vld [vmem:[#allocation4 + $0x38] sm:$0xff] }
 0x1f5   : > { %6886 = vst [vmem:[#allocation90_spill] sm:$0xff] %v4822_v3 }
 0x1f6   : > { %1574 = vmatpush.msrb.mxu3 %v4807_v19  ;;  %v4825_v19 = vld [vmem:[#allocation4 + $0x20] sm:$0xff] }
 0x1f7   : > { %6887 = vst [vmem:[#allocation94_spill] sm:$0xff] %v4825_v19 }
 0x1f8   : > { %1575 = vmatpush.msrb.mxu3 %v4810_v28  ;;  %v4828_v28 = vld [vmem:[#allocation4 + $0x8] sm:$0xff] }
 0x1f9   : > { %6888 = vst [vmem:[#allocation28_spill] sm:$0xff] %v4828_v28 }
 0x1fa   : > { %1576 = vmatpush.msrb.mxu3 %v4813_v61 }
 0x1fc   : > { %1577 = vmatpush.msrb.mxu3 %v4816_v1 }
 0x1fe   : > { %1578 = vmatpush.msrb.mxu3 %v4819_v9 }
 0x200   : > { %1579 = vmatpush.msrb.mxu3 %v4822_v3 }
 0x202   : > { %1580 = vmatpush.msrb.mxu3 %v4825_v19 }
 0x204   : > { %1581 = vmatpush.msrb.mxu3 %v4828_v28 }
 0x218   : > { %v1105_v26 = vpop.f32.mrf.mxu0 }
 0x219   : > { %v1125_v6 = vpop.f32.mrf.mxu1 }
 0x21e   : > { %v1085_v61 = vpop.f32.mrf.mxu3 }
 0x223   : > { %v1294_v4 = vpop.f32.mrf.mxu1 }
 0x228   : > { %v1186_v33 = vpop.f32.mrf.mxu2  ;;  %v1206_v1 = vpop.f32.mrf.mxu3 }
 0x229   : > { %v1187_v63 = vadd.f32 %v1186_v33, %v6889_v8  ;;  %v1207_v9 = vadd.f32 %v1206_v1, %v6890_v15 }
 0x22b   : > { %v1229_v21 = vadd.f32 %v1187_v63, %v1085_v61  ;;  %v1230_v0 = vadd.f32 %v1207_v9, %v1105_v26 }
 0x22d   : > { %v3030_v3 = vmul.f32 -1.442695, %v1229_v21  ;;  %v3031_v7 = vmul.f32 -1.442695, %v1230_v0 }
 0x22f   : > { %3116 = vpow2.f32 %v3030_v3 }
 0x230   : > { %3118 = vpow2.f32 %v3031_v7  ;;  %v1314_v19 = vpop.f32.mrf.mxu2 }
 0x231   : > { %v1401_v53 = vrot.slane %v1314_v19, 7 }
 0x233   : > { %v1402_v28 = vsel %vm674_vm14, %v1294_v4, %v1401_v53 }
 0x234   : > { %v1404_v56 = vadd.f32 %v1402_v28, %v4833_v32 }
 0x235   : > { %v3117_v48 = vpop.eup %3116 }
 0x236   : > { %v3119_v33 = vpop.eup %3118  ;;  %v1237_v8 = vadd.f32 1.0, %v3117_v48  ;;  %v3032_v1 = vmul.f32 -1.442695, %v1404_v56  ;;  %v1226_v56 = vpop.f32.mrf.mxu0 }
 0x237   : > { %v1238_v15 = vadd.f32 1.0, %v3119_v33 }
 0x238   : > { %3120 = vrcp.f32 %v1237_v8  ;;  %v1250_v9 = vand.u32 2147483648, %v1237_v8  ;;  %v1248_v4 = vand.u32 2147483647, %v1237_v8  ;;  %vm1244_vm5 = vweird.f32 %v1237_v8 }
 0x239   : > { %3122 = vrcp.f32 %v1238_v15  ;;  %vm1259_vm9 = vweird.f32 %v1238_v15 }
 0x23a   : > { %3124 = vpow2.f32 %v3032_v1  ;;  %v1251_v33 = vor.u32 1.1754944e-38, %v1250_v9  ;;  %v1269_v1 = vadd.f32 %v1125_v6, %v4485_v23  ;;  %vm1249_vm7 = vcmp.eq.f32.partialorder %v1248_v4, 8.507059e+37 }
 0x23e   : > { %v3121_v21 = vpop.eup %3120 }
 0x23f   : > { %v3123_v26 = vpop.eup %3122  ;;  %v1240_v7 = vmul.f32 %v3121_v21, %v1237_v8  ;;  %vm1245_vm4 = vweird.f32 %v3121_v21 }
 0x240   : > { %v3125_v0 = vpop.eup %3124  ;;  %v1255_v63 = vmul.f32 %v3123_v26, %v1238_v15  ;;  %vm1246_vm6 = vmor %vm1244_vm5, %vm1245_vm4  ;;  %vm1260_vm8 = vweird.f32 %v3123_v26 }
 0x241   : > { %v1241_v19 = vsub.f32 1.0, %v1240_v7  ;;  %v1408_v61 = vadd.f32 1.0, %v3125_v0  ;;  %v1227_v0 = vadd.f32 %v1226_v56, %v4487_v29  ;;  %vm1261_vm10 = vmor %vm1259_vm9, %vm1260_vm8 }
 0x242   : > { %v1256_v3 = vsub.f32 1.0, %v1255_v63  ;;  %v1265_v63 = vand.u32 2147483648, %v1238_v15 }
 0x243   : > { %v1242_v53 = vmul.f32 %v3121_v21, %v1241_v19  ;;  %3126 = vrcp.f32 %v1408_v61  ;;  %v1420_v9 = vand.u32 2147483648, %v1408_v61  ;;  %vm1414_vm13 = vweird.f32 %v1408_v61 }
 0x244   : > { %v1257_v28 = vmul.f32 %v3123_v26, %v1256_v3  ;;  %v1263_v3 = vand.u32 2147483647, %v1238_v15  ;;  %v1266_v50 = vor.u32 1.1754944e-38, %v1265_v63 }
 0x245   : > { %v1243_v48 = vadd.f32 %v3121_v21, %v1242_v53 }
 0x246   : > { %v1258_v5 = vadd.f32 %v3123_v26, %v1257_v28  ;;  %vm1264_vm12 = vcmp.eq.f32.partialorder %v1263_v3, 8.507059e+37  ;;  %v6893_v3 = vld [vmem:[#allocation60_spill] sm:$0xff] }
 0x247   : > { %v1247_v57 = vsel %vm1246_vm6, %v3121_v21, %v1243_v48  ;;  %v1334_v21 = vpop.f32.mrf.mxu3 }
 0x248   : > { %v1252_v14 = vsel %vm1249_vm7, %v1251_v33, %v1247_v57  ;;  %v1262_v22 = vsel %vm1261_vm10, %v3123_v26, %v1258_v5  ;;  %v1418_v57 = vand.u32 2147483647, %v1408_v61  ;;  %v1424_v15 = vadd.f32 %v1334_v21, %v4289_v12  ;;  %v6899_v21 = vld [vmem:[#allocation26_spill] sm:$0xff] }
 0x249   : > { %v3127_v7 = vpop.eup %3126  ;;  %v1270_v19 = vmul.f32 %v1269_v1, %v1252_v14  ;;  %v1267_v4 = vsel %vm1264_vm12, %v1266_v50, %v1262_v22  ;;  %v1421_v14 = vor.u32 1.1754944e-38, %v1420_v9  ;;  %v1427_v33 = vrot.slane %v4833_v32, 2  ;;  %v6896_v9 = vld [vmem:[#allocation64_spill] sm:$0xff] }
 0x24a   : > { %v1410_v59 = vmul.f32 %v3127_v7, %v1408_v61  ;;  %vm1415_vm11 = vweird.f32 %v3127_v7  ;;  %vm1419_vm0 = vcmp.eq.f32.partialorder %v1418_v57, 8.507059e+37  ;;  %v1273_v56 = vsub.f32 1.0, %v1267_v4  ;;  %v6898_v57 = vld [vmem:[#allocation23_spill] sm:$0xff] }
 0x24b   : > { %v1271_v8 = vadd.f32 %v1270_v19, %v1227_v0  ;;  %vm1416_vm15 = vmor %vm1414_vm13, %vm1415_vm11  ;;  %v1275_v0 = vmul.f32 %v1267_v4, %v4493_v24  ;;  %v6900_v4 = vld [vmem:[#allocation72_spill] sm:$0xff] }
 0x24c   : > { %v1411_v53 = vsub.f32 1.0, %v1410_v59 }
 0x24d   : > { %3128 = vtanh.f32 %v1271_v8  ;;  %v6894_v8 = vld [vmem:[#allocation18_spill] sm:$0xff] }
 0x24e   : > { %v1412_v6 = vmul.f32 %v3127_v7, %v1411_v53  ;;  %v6895_v53 = vld [vmem:[#allocation21_spill] sm:$0xff] }
 0x250   : > { %v1413_v28 = vadd.f32 %v3127_v7, %v1412_v6  ;;  %v6897_v6 = vld [vmem:[#allocation29_spill] sm:$0xff] }
 0x252   : > { %v1417_v48 = vsel %vm1416_vm15, %v3127_v7, %v1413_v28  ;;  %v6892_v7 = vld [vmem:[#allocation56_spill] sm:$0xff] }
 0x253   : > { %v3129_v59 = vpop.eup %3128  ;;  %v1422_v5 = vsel %vm1419_vm0, %v1421_v14, %v1417_v48  ;;  %v6901_v28 = vld [vmem:[#allocation68_spill] sm:$0xff]  ;;  %v6902_v14 = vld [vmem:[#allocation37_spill] sm:$0xff] }
 0x254   : > { %v1425_v26 = vmul.f32 %v1424_v15, %v1422_v5  ;;  %v1274_v1 = vmul.f32 %v3129_v59, %v1273_v56  ;;  %v1432_v22 = vrot.slane %v1422_v5, 1  ;;  %v6903_v48 = vld [vmem:[#allocation32_spill] sm:$0xff]  ;;  %v6907_v5 = vld [vmem:[#allocation30_spill] sm:$0xff] }
 0x255   : > { %v6904_v15 = vld [vmem:[#allocation80_spill] sm:$0xff] }
 0x256   : > { %v1429_v63 = vadd.f32 %v1427_v33, %v1425_v26  ;;  %v4842_v19 = vadd.f32 %v1275_v0, %v1274_v1  ;;  %v1434_v12 = vsub.f32 1.0, %v1432_v22  ;;  %v1436_v50 = vmul.f32 %v1432_v22, %v4529_v42  ;;  %v6891_v42 = vld [vmem:[#allocation53_spill] sm:$0xff]  ;;  %v6905_v56 = vld [vmem:[#allocation76_spill] sm:$0xff]  ;;  %v6909_v33 = vld [vmem:[#allocation46_spill] sm:$0xff] }
 0x257   : > { %v6906_v59 = vld [vmem:[#allocation40_spill] sm:$0xff]  ;;  %v6910_v1 = vld [vmem:[#allocation43_spill] sm:$0xff]  ;;  %v6913_v22 = vld [vmem:[#allocation50_spill] sm:$0xff] }
 0x258   : > { %3130 = vtanh.f32 %v1429_v63  ;;  %1353 = vmatmul.f32.vlgmr.msra.gmra.mxu0 %v4842_v19  ;;  %1373 = vmatmul.f32.vlgmr.msra.gmra.mxu1 %v4842_v19  ;;  %v6908_v26 = vld [vmem:[#allocation84_spill] sm:$0xff]  ;;  %v6912_v63 = vld [vmem:[#allocation39_spill] sm:$0xff] }
 0x259   : > { %1393 = vmatmul.f32.vlgmr.msra.gmra.mxu2 %v4842_v19  ;;  %1586 = vmatpush.msra.mxu0 %v4498_v16  ;;  %v6911_v0 = vld [vmem:[#allocation36_spill] sm:$0xff] }
 0x25a   : > { %1606 = vmatpush.msra.mxu1 %v4501_v20  ;;  %1626 = vmatpush.msra.mxu2 %v4504_v13 }
 0x25b   : > { %1587 = vmatpush.msra.mxu0 %v4507_v11 }
 0x25c   : > { %1607 = vmatpush.msra.mxu1 %v4510_v52  ;;  %1627 = vmatpush.msra.mxu2 %v4513_v39 }
 0x25d   : > { %1588 = vmatpush.msra.mxu0 %v4516_v49 }
 0x25e   : > { %v3131_v32 = vpop.eup %3130  ;;  %1608 = vmatpush.msra.mxu1 %v4520_v31  ;;  %1628 = vmatpush.msra.mxu2 %v4523_v41 }
 0x25f   : > { %v1435_v24 = vmul.f32 %v3131_v32, %v1434_v12  ;;  %1589 = vmatpush.msra.mxu0 %v4526_v40  ;;  %v6914_v12 = vld [vmem:[#allocation42_spill] sm:$0xff]  ;;  %v6915_v32 = vld [vmem:[#allocation52_spill] sm:$0xff] }
 0x260   : > { %1609 = vmatpush.msra.mxu1 %v4531_v43  ;;  %1629 = vmatpush.msra.mxu2 %v4534_v2 }
 0x261   : > { %v4860_v61 = vadd.f32 %v1436_v50, %v1435_v24  ;;  %1590 = vmatpush.msra.mxu0 %v4537_v46  ;;  %v6916_v24 = vld [vmem:[#allocation47_spill] sm:$0xff]  ;;  %v4902_v50 = vld [vmem:[#allocation8 + $0x50] sm:$0xff] }
 0x262   : > { %1610 = vmatpush.msra.mxu1 %v4547_v25  ;;  %1630 = vmatpush.msra.mxu2 %v4553_v47  ;;  %6917 = vst [vmem:[#allocation95_spill] sm:$0xff] %v4902_v50 }
 0x263   : > { %1454 = vmatmul.f32.vlgmr.msra.gmra.mxu3 %v4860_v61  ;;  %1474 = vmatmul.f32.vlgmr.msrb.gmra.mxu0 %v4860_v61 }
 0x264   : > { %1494 = vmatmul.f32.vlgmr.msrb.gmra.mxu1 %v4860_v61  ;;  %1562 = vmatmul.f32.vlgmr.msrb.gmra.mxu2 %v4860_v61 }
 0x265   : > { %1591 = vmatpush.msra.mxu0 %v4544_v17  ;;  %1646 = vmatpush.msra.mxu3 %v4550_v51 }
 0x266   : > { %1611 = vmatpush.msra.mxu1 %v4559_v58  ;;  %1631 = vmatpush.msra.mxu2 %v4565_v54 }
 0x267   : > { %1592 = vmatpush.msra.mxu0 %v4556_v60  ;;  %1647 = vmatpush.msra.mxu3 %v6891_v42 }
 0x268   : > { %1612 = vmatpush.msra.mxu1 %v6892_v7  ;;  %1632 = vmatpush.msra.mxu2 %v6893_v3 }
 0x269   : > { %1593 = vmatpush.msra.mxu0 %v6894_v8  ;;  %1648 = vmatpush.msra.mxu3 %v6895_v53 }
 0x26a   : > { %1613 = vmatpush.msra.mxu1 %v6896_v9  ;;  %1633 = vmatpush.msra.mxu2 %v6897_v6 }
 0x26b   : > { %1594 = vmatpush.msra.mxu0 %v6898_v57  ;;  %1582 = vmatmul.f32.vlgmr.msrb.gmra.mxu3 %v4860_v61 }
 0x26c   : > { %1649 = vmatpush.msra.mxu3 %v6899_v21  ;;  %1614 = vmatpush.msra.mxu1 %v6900_v4 }
 0x26d   : > { %1595 = vmatpush.msra.mxu0 %v6901_v28  ;;  %1634 = vmatpush.msra.mxu2 %v6902_v14 }
 0x26e   : > { %1650 = vmatpush.msra.mxu3 %v6903_v48  ;;  %1615 = vmatpush.msra.mxu1 %v6904_v15 }
 0x26f   : > { %1596 = vmatpush.msra.mxu0 %v6905_v56  ;;  %1635 = vmatpush.msra.mxu2 %v6906_v59 }
 0x270   : > { %1651 = vmatpush.msra.mxu3 %v6907_v5  ;;  %1616 = vmatpush.msra.mxu1 %v6908_v26  ;;  %v6918_v26 = vld [vmem:[#allocation51_spill] sm:$0xff] }
 0x271   : > { %1597 = vmatpush.msra.mxu0 %v6909_v33  ;;  %1636 = vmatpush.msra.mxu2 %v6910_v1  ;;  %v6919_v1 = vld [vmem:[#allocation45_spill] sm:$0xff] }
 0x272   : > { %1652 = vmatpush.msra.mxu3 %v6911_v0  ;;  %1617 = vmatpush.msra.mxu1 %v6912_v63  ;;  %v4908_v63 = vld [vmem:[#allocation8 + $0x38] sm:$0xff] }
 0x273   : > { %1598 = vmatpush.msra.mxu0 %v6913_v22  ;;  %1637 = vmatpush.msra.mxu2 %v6914_v12  ;;  %6920 = vst [vmem:[#allocation53_spill] sm:$0xff] %v4908_v63  ;;  %v6921_v12 = vld [vmem:[#allocation55_spill] sm:$0xff] }
 0x274   : > { %1653 = vmatpush.msra.mxu3 %v6915_v32  ;;  %1618 = vmatpush.msra.mxu1 %v4644_v37  ;;  %v6922_v32 = vld [vmem:[#allocation66_spill] sm:$0xff]  ;;  %v6923_v37 = vld [vmem:[#allocation49_spill] sm:$0xff] }
 0x275   : > { %1599 = vmatpush.msra.mxu0 %v6916_v24  ;;  %1638 = vmatpush.msra.mxu2 %v4902_v50  ;;  %v4914_v24 = vld [vmem:[#allocation8 + $0x20] sm:$0xff]  ;;  %v6926_v50 = vld [vmem:[#allocation70_spill] sm:$0xff] }
 0x276   : > { %1654 = vmatpush.msra.mxu3 %v6918_v26  ;;  %1619 = vmatpush.msra.mxu1 %v4654_v30  ;;  %6924 = vst [vmem:[#allocation56_spill] sm:$0xff] %v4914_v24  ;;  %v6925_v30 = vld [vmem:[#allocation59_spill] sm:$0xff] }
 0x277   : > { %1600 = vmatpush.msra.mxu0 %v6919_v1  ;;  %1639 = vmatpush.msra.mxu2 %v4908_v63  ;;  %v6927_v63 = vld [vmem:[#allocation63_spill] sm:$0xff]  ;;  %v5074_v1 = vld [vmem:[#allocation2 + $0x9] sm:$0x7] }
 0x278   : > { %1655 = vmatpush.msra.mxu3 %v6921_v12  ;;  %1620 = vmatpush.msra.mxu1 %v6922_v32  ;;  %v4924_v32 = vld [vmem:[#allocation8 + $0x8] sm:$0xff] }
 0x279   : > { %1601 = vmatpush.msra.mxu0 %v6923_v37  ;;  %1640 = vmatpush.msra.mxu2 %v4914_v24  ;;  %6928 = vst [vmem:[#allocation60_spill] sm:$0xff] %v4924_v32  ;;  %v6929_v24 = vld [vmem:[#allocation78_spill] sm:$0xff]  ;;  %v6930_v37 = vld [vmem:[#allocation67_spill] sm:$0xff] }
 0x27a   : > { %1602 = vmatmul.f32.vlgmr.msra.gmra.mxu0 %v4860_v61  ;;  %1656 = vmatpush.msra.mxu3 %v4671_v10  ;;  %v4930_v10 = vld [vmem:[#allocation6 + $0x178] sm:$0xff] }
 0x27b   : > { %1707 = vmatpush.msrb.mxu0 %v6925_v30  ;;  %1621 = vmatpush.msra.mxu1 %v6926_v50  ;;  %6931 = vst [vmem:[#allocation18_spill] sm:$0xff] %v4930_v10  ;;  %v4933_v50 = vld [vmem:[#allocation8 + $0x40] sm:$0xff] }
 0x27c   : > { %1657 = vmatpush.msra.mxu3 %v4681_v34  ;;  %1641 = vmatpush.msra.mxu2 %v4924_v32  ;;  %6932 = vst [vmem:[#allocation21_spill] sm:$0xff] %v4933_v50 }
 0x27d   : > { %1727 = vmatpush.msrb.mxu1 %v4684_v45  ;;  %1708 = vmatpush.msrb.mxu0 %v6927_v63  ;;  %v4938_v45 = vld [vmem:[#allocation6 + $0x160] sm:$0xff] }
 0x27e   : > { %1658 = vmatpush.msra.mxu3 %v4691_v36  ;;  %1747 = vmatpush.msrb.mxu2 %v4930_v10  ;;  %6933 = vst [vmem:[#allocation64_spill] sm:$0xff] %v4938_v45  ;;  %v4941_v36 = vld [vmem:[#allocation8 + $0x28] sm:$0xff] }
 0x27f   : > { %1728 = vmatpush.msrb.mxu1 %v6929_v24  ;;  %1709 = vmatpush.msrb.mxu0 %v6930_v37  ;;  %6934 = vst [vmem:[#allocation29_spill] sm:$0xff] %v4941_v36  ;;  %v4946_v10 = vld [vmem:[#allocation6 + $0x148] sm:$0xff]  ;;  %v7002_v24 = vld [vmem:[#allocation17_spill] sm:$0xff] }
 0x280   : > { %1659 = vmatpush.msra.mxu3 %v4933_v50  ;;  %1748 = vmatpush.msrb.mxu2 %v4938_v45  ;;  %6935 = vst [vmem:[#allocation23_spill] sm:$0xff] %v4946_v10  ;;  %v4949_v50 = vld [vmem:[#allocation8 + $0x10] sm:$0xff] }
 0x281   : > { %1729 = vmatpush.msrb.mxu1 %v4702_v18  ;;  %1710 = vmatpush.msrb.mxu0 %v4698_v55  ;;  %6936 = vst [vmem:[#allocation26_spill] sm:$0xff] %v4949_v50  ;;  %v6937_v45 = vld [vmem:[#allocation73_spill] sm:$0xff]  ;;  %v4962_v18 = vld [vmem:[#allocation6 + $0x118] sm:$0xff]  ;;  %v6996_v55 = vld [vmem:[#allocation88_spill] sm:$0xff] }
 0x282   : > { %1660 = vmatpush.msra.mxu3 %v4941_v36  ;;  %1749 = vmatpush.msrb.mxu2 %v4946_v10  ;;  %v4956_v36 = vld [vmem:[#allocation6 + $0x130] sm:$0xff]  ;;  %6942 = vst [vmem:[#allocation68_spill] sm:$0xff] %v4962_v18 }
 0x283   : > { %1730 = vmatpush.msrb.mxu1 %v4710_v44  ;;  %1711 = vmatpush.msrb.mxu0 %v4706_v38  ;;  %6938 = vst [vmem:[#allocation72_spill] sm:$0xff] %v4956_v36  ;;  %v6939_v44 = vld [vmem:[#allocation79_spill] sm:$0xff]  ;;  %v6941_v10 = vld [vmem:[#allocation77_spill] sm:$0xff] }
 0x284   : > { %1661 = vmatpush.msra.mxu3 %v4949_v50  ;;  %1750 = vmatpush.msrb.mxu2 %v4956_v36  ;;  %v6940_v38 = vld [vmem:[#allocation11_spill] sm:$0xff]  ;;  %v6947_v36 = vld [vmem:[#allocation81_spill] sm:$0xff] }
 0x285   : > { %1731 = vmatpush.msrb.mxu1 %v4718_v35  ;;  %1712 = vmatpush.msrb.mxu0 %v4714_v27  ;;  %v6943_v35 = vld [vmem:[#allocation83_spill] sm:$0xff]  ;;  %v6993_v27 = vld [vmem:[#allocation41_spill] sm:$0xff] }
 0x286   : > { %1815 = vmatpush.msrb.mxu3 %v4389_v62  ;;  %1751 = vmatpush.msrb.mxu2 %v4962_v18  ;;  %v6944_v50 = vld [vmem:[#allocation19_spill] sm:$0xff]  ;;  %v6945_v62 = vld [vmem:[#allocation85_spill] sm:$0xff]  ;;  %v6951_v18 = vld [vmem:[#allocation96_spill] sm:$0xff] }
 0x287   : > { %1732 = vmatpush.msrb.mxu1 %v6937_v45  ;;  %1713 = vmatpush.msrb.mxu0 %v6939_v44  ;;  %v4968_v45 = vld [vmem:[#allocation6 + $0x100] sm:$0xff]  ;;  %v6948_v44 = vld [vmem:[#allocation12_spill] sm:$0xff] }
 0x288   : > { %1816 = vmatpush.msrb.mxu3 %v6940_v38  ;;  %6946 = vst [vmem:[#allocation37_spill] sm:$0xff] %v4968_v45  ;;  %1752 = vmatpush.msrb.mxu2 %v4968_v45  ;;  %v6949_v38 = vld [vmem:[#allocation97_spill] sm:$0xff]  ;;  %v6955_v45 = vld [vmem:[#allocation98_spill] sm:$0xff] }
 0x289   : > { %1733 = vmatpush.msrb.mxu1 %v6941_v10  ;;  %1714 = vmatpush.msrb.mxu0 %v6943_v35  ;;  %v4974_v10 = vld [vmem:[#allocation6 + $0xe8] sm:$0xff]  ;;  %v6952_v35 = vld [vmem:[#allocation22_spill] sm:$0xff] }
 0x28a   : > { %1817 = vmatpush.msrb.mxu3 %v6944_v50  ;;  %6950 = vst [vmem:[#allocation32_spill] sm:$0xff] %v4974_v10  ;;  %1753 = vmatpush.msrb.mxu2 %v4974_v10  ;;  %v6953_v50 = vld [vmem:[#allocation99_spill] sm:$0xff] }
 0x28b   : > { %1734 = vmatpush.msrb.mxu1 %v6945_v62  ;;  %1715 = vmatpush.msrb.mxu0 %v6947_v36  ;;  %v4980_v62 = vld [vmem:[#allocation6 + $0xd0] sm:$0xff]  ;;  %v4989_v10 = vld [vmem:[#allocation6 + $0x60] sm:$0xff] }
 0x28c   : > { %1818 = vmatpush.msrb.mxu3 %v6948_v44  ;;  %6954 = vst [vmem:[#allocation76_spill] sm:$0xff] %v4980_v62  ;;  %1754 = vmatpush.msrb.mxu2 %v4980_v62  ;;  %v6956_v36 = vld [vmem:[#allocation13_spill] sm:$0xff]  ;;  %v6957_v44 = vld [vmem:[#allocation100_spill] sm:$0xff]  ;;  %v4996_v62 = vld [vmem:[#allocation6 + $0xa0] sm:$0xff] }
 0x28d   : > { %1735 = vmatpush.msrb.mxu1 %v6949_v38  ;;  %1716 = vmatpush.msrb.mxu0 %v6951_v18  ;;  %v4986_v38 = vld [vmem:[#allocation6 + $0xb8] sm:$0xff]  ;;  %6959 = vst [vmem:[#allocation19_spill] sm:$0xff] %v4989_v10 }
 0x28e   : > { %1819 = vmatpush.msrb.mxu3 %v6952_v35  ;;  %6958 = vst [vmem:[#allocation11_spill] sm:$0xff] %v4986_v38  ;;  %1755 = vmatpush.msrb.mxu2 %v4986_v38  ;;  %v6960_v35 = vld [vmem:[#allocation24_spill] sm:$0xff]  ;;  %v5003_v38 = vld [vmem:[#allocation6 + $0x50] sm:$0xff]  ;;  %v6991_v18 = vld [vmem:[#allocation38_spill] sm:$0xff] }
 0x28f   : > { %1736 = vmatpush.msrb.mxu1 %v6953_v50  ;;  %1717 = vmatpush.msrb.mxu0 %v6955_v45  ;;  %v4993_v50 = vld [vmem:[#allocation6 + $0x68] sm:$0xff]  ;;  %6962 = vst [vmem:[#allocation22_spill] sm:$0xff] %v4996_v62  ;;  %v6988_v45 = vld [vmem:[#allocation87_spill] sm:$0xff] }
 0x290   : > { %1820 = vmatpush.msrb.mxu3 %v6956_v36  ;;  %6961 = vst [vmem:[#allocation12_spill] sm:$0xff] %v4993_v50  ;;  %1756 = vmatpush.msrb.mxu2 %v4996_v62  ;;  %v4999_v36 = vld [vmem:[#allocation6 + $0x48] sm:$0xff]  ;;  %v5013_v62 = vld [vmem:[#allocation6 + $0x38] sm:$0xff] }
 0x291   : > { %1737 = vmatpush.msrb.mxu1 %v6957_v44  ;;  %1718 = vmatpush.msrb.mxu0 %v4989_v10  ;;  %6963 = vst [vmem:[#allocation13_spill] sm:$0xff] %v4999_v36  ;;  %v6964_v44 = vld [vmem:[#allocation14_spill] sm:$0xff]  ;;  %v5006_v10 = vld [vmem:[#allocation6 + $0x88] sm:$0xff] }
 0x292   : > { %1821 = vmatpush.msrb.mxu3 %v6960_v35  ;;  %6965 = vst [vmem:[#allocation24_spill] sm:$0xff] %v5003_v38  ;;  %1757 = vmatpush.msrb.mxu2 %v5006_v10  ;;  %v5009_v35 = vld [vmem:[#allocation6 + $0x30] sm:$0xff] }
 0x293   : > { %1738 = vmatpush.msrb.mxu1 %v4993_v50  ;;  %1719 = vmatpush.msrb.mxu0 %v4999_v36  ;;  %6966 = vst [vmem:[#allocation14_spill] sm:$0xff] %v5006_v10  ;;  %v6968_v50 = vld [vmem:[#allocation27_spill] sm:$0xff]  ;;  %v5016_v36 = vld [vmem:[#allocation6 + $0x70] sm:$0xff] }
 0x294   : > { %1822 = vmatpush.msrb.mxu3 %v6964_v44  ;;  %6967 = vst [vmem:[#allocation101_spill] sm:$0xff] %v5009_v35  ;;  %1758 = vmatpush.msrb.mxu2 %v5016_v36  ;;  %v5019_v44 = vld [vmem:[#allocation6 + $0x18] sm:$0xff]  ;;  %v5023_v10 = vld [vmem:[#allocation6 + $0x20] sm:$0xff] }
 0x295   : > { %1739 = vmatpush.msrb.mxu1 %v5003_v38  ;;  %1720 = vmatpush.msrb.mxu0 %v5009_v35  ;;  %6969 = vst [vmem:[#allocation27_spill] sm:$0xff] %v5013_v62  ;;  %v6972_v38 = vld [vmem:[#allocation34_spill] sm:$0xff] }
 0x296   : > { %1823 = vmatpush.msrb.mxu3 %v6968_v50  ;;  %6970 = vst [vmem:[#allocation102_spill] sm:$0xff] %v5016_v36  ;;  %v5026_v35 = vld [vmem:[#allocation6 + $0x58] sm:$0xff]  ;;  %v5029_v50 = vld [vmem:[#allocation6] sm:$0xff]  ;;  %v5033_v36 = vld [vmem:[#allocation4 + $0x170] sm:$0xff] }
 0x297   : > { %1740 = vmatpush.msrb.mxu1 %v5013_v62  ;;  %6971 = vst [vmem:[#allocation103_spill] sm:$0xff] %v5019_v44  ;;  %1721 = vmatpush.msrb.mxu0 %v5019_v44  ;;  %v6976_v62 = vld [vmem:[#allocation15_spill] sm:$0xff]  ;;  %v5036_v44 = vld [vmem:[#allocation6 + $0x8] sm:$0xff] }
 0x298   : > { %1824 = vmatpush.msrb.mxu3 %v6972_v38  ;;  %6973 = vst [vmem:[#allocation34_spill] sm:$0xff] %v5023_v10  ;;  %1759 = vmatpush.msrb.mxu2 %v5026_v35  ;;  %v6979_v38 = vld [vmem:[#allocation44_spill] sm:$0xff] }
 0x299   : > { %1741 = vmatpush.msrb.mxu1 %v5023_v10  ;;  %6974 = vst [vmem:[#allocation104_spill] sm:$0xff] %v5026_v35  ;;  %1722 = vmatpush.msrb.mxu0 %v5029_v50  ;;  %v5040_v10 = vld [vmem:[#allocation6 + $0x40] sm:$0xff]  ;;  %v5043_v35 = vld [vmem:[#allocation4 + $0x158] sm:$0xff] }
 0x29a   : > { %6975 = vst [vmem:[#allocation105_spill] sm:$0xff] %v5029_v50  ;;  %1825 = vmatpush.msrb.mxu3 %v6976_v62  ;;  %1760 = vmatpush.msrb.mxu2 %v5040_v10  ;;  %v6982_v50 = vld [vmem:[#allocation16_spill] sm:$0xff] }
 0x29b   : > { %6977 = vst [vmem:[#allocation15_spill] sm:$0xff] %v5033_v36  ;;  %1835 = vmatpush.msra.mxu0 %v5033_v36  ;;  %1742 = vmatpush.msrb.mxu1 %v5036_v44  ;;  %v5047_v62 = vld [vmem:[#allocation6 + $0x28] sm:$0xff]  ;;  %v5050_v36 = vld [vmem:[#allocation4 + $0x140] sm:$0xff] }
 0x29c   : > { %6978 = vst [vmem:[#allocation106_spill] sm:$0xff] %v5036_v44  ;;  %1826 = vmatpush.msrb.mxu3 %v6979_v38  ;;  %1761 = vmatpush.msrb.mxu2 %v5047_v62  ;;  %v6985_v44 = vld [vmem:[#allocation91_spill] sm:$0xff]  ;;  %v5054_v38 = vld [vmem:[#allocation6 + $0x10] sm:$0xff] }
 0x29d   : > { %6980 = vst [vmem:[#allocation44_spill] sm:$0xff] %v5040_v10  ;;  %1836 = vmatpush.msra.mxu0 %v5043_v35  ;;  %v6987_v10 = vld [vmem:[#allocation35_spill] sm:$0xff] }
 0x29e   : > { %6981 = vst [vmem:[#allocation107_spill] sm:$0xff] %v5043_v35  ;;  %1827 = vmatpush.msrb.mxu3 %v6982_v50  ;;  %1762 = vmatpush.msrb.mxu2 %v5054_v38  ;;  %v6989_v35 = vld [vmem:[#allocation31_spill] sm:$0xff]  ;;  %v6990_v50 = vld [vmem:[#allocation89_spill] sm:$0xff] }
 0x29f   : > { %6983 = vst [vmem:[#allocation16_spill] sm:$0xff] %v5047_v62  ;;  %1837 = vmatpush.msra.mxu0 %v5050_v36  ;;  %v6992_v62 = vld [vmem:[#allocation33_spill] sm:$0xff] }
 0x2a0   : > { %6984 = vst [vmem:[#allocation108_spill] sm:$0xff] %v5050_v36  ;;  %1828 = vmatpush.msrb.mxu3 %v6985_v44  ;;  %v6994_v36 = vld [vmem:[#allocation92_spill] sm:$0xff]  ;;  %v6995_v44 = vld [vmem:[#allocation25_spill] sm:$0xff] }
 0x2a1   : > { %6986 = vst [vmem:[#allocation109_spill] sm:$0xff] %v5054_v38  ;;  %1838 = vmatpush.msra.mxu0 %v6987_v10  ;;  %v6997_v38 = vld [vmem:[#allocation93_spill] sm:$0xff]  ;;  %v6998_v10 = vld [vmem:[#allocation20_spill] sm:$0xff] }
 0x2a2   : > { %1829 = vmatpush.msrb.mxu3 %v6988_v45  ;;  %v6999_v45 = vld [vmem:[#allocation90_spill] sm:$0xff] }
 0x2a3   : > { %1839 = vmatpush.msra.mxu0 %v6989_v35  ;;  %v7000_v35 = vld [vmem:[#allocation94_spill] sm:$0xff] }
 0x2a4   : > { %1830 = vmatpush.msrb.mxu3 %v6990_v50  ;;  %v7001_v50 = vld [vmem:[#allocation28_spill] sm:$0xff] }
 0x2a5   : > { %1840 = vmatpush.msra.mxu0 %v6991_v18 }
 0x2a7   : > { %1841 = vmatpush.msra.mxu0 %v6992_v62 }
 0x2a9   : > { %1842 = vmatpush.msra.mxu0 %v6993_v27 }
 0x2ab   : > { %1843 = vmatpush.msra.mxu0 %v6994_v36 }
 0x2ad   : > { %1844 = vmatpush.msra.mxu0 %v6995_v44 }
 0x2af   : > { %1845 = vmatpush.msra.mxu0 %v6996_v55  ;;  %v7003_v55 = vld [vmem:[#allocation48_spill] sm:$0xff] }
 0x2b1   : > { %1846 = vmatpush.msra.mxu0 %v6997_v38 }
 0x2b3   : > { %1847 = vmatpush.msra.mxu0 %v6998_v10 }
 0x2b5   : > { %1848 = vmatpush.msra.mxu0 %v6999_v45 }
 0x2b7   : > { %1849 = vmatpush.msra.mxu0 %v7000_v35 }
 0x2b9   : > { %1850 = vmatpush.msra.mxu0 %v7001_v50 }
 0x2d5   : > { %v1354_v18 = vpop.f32.mrf.mxu0  ;;  %v1374_v37 = vpop.f32.mrf.mxu1 }
 0x2dc   : > { %v1394_v44 = vpop.f32.mrf.mxu2 }
 0x2e0   : > { %v1475_v62 = vpop.f32.mrf.mxu0 }
 0x2e1   : > { %v1476_v27 = vadd.f32 %v1475_v62, %v7002_v24 }
 0x2e3   : > { %v1499_v36 = vadd.f32 %v1476_v27, %v1374_v37 }
 0x2e5   : > { %v3034_v32 = vmul.f32 -1.442695, %v1499_v36 }
 0x2e6   : > { %v1455_v34 = vpop.f32.mrf.mxu3 }
 0x2e7   : > { %3132 = vpow2.f32 %v3034_v32  ;;  %v1456_v38 = vadd.f32 %v1455_v34, %v7003_v55  ;;  %v1563_v50 = vpop.f32.mrf.mxu2 }
 0x2e9   : > { %v1498_v63 = vadd.f32 %v1456_v38, %v1354_v18 }
 0x2eb   : > { %v3033_v10 = vmul.f32 -1.442695, %v1498_v63 }
 0x2ed   : > { %v3133_v30 = vpop.eup %3132  ;;  %3134 = vpow2.f32 %v3033_v10 }
 0x2ee   : > { %v1507_v45 = vadd.f32 1.0, %v3133_v30  ;;  %v1583_v35 = vpop.f32.mrf.mxu3 }
 0x2ef   : > { %v1670_v12 = vrot.slane %v1583_v35, 7 }
 0x2f0   : > { %3136 = vrcp.f32 %v1507_v45  ;;  %vm1528_vm6 = vweird.f32 %v1507_v45 }
 0x2f1   : > { %v1671_v62 = vsel %vm674_vm14, %v1563_v50, %v1670_v12 }
 0x2f2   : > { %v1673_v37 = vadd.f32 %v1671_v62, %v5074_v1 }
 0x2f3   : > { %v3135_v36 = vpop.eup %3134 }
 0x2f4   : > { %v1506_v27 = vadd.f32 1.0, %v3135_v36  ;;  %v3035_v32 = vmul.f32 -1.442695, %v1673_v37  ;;  %v1495_v36 = vpop.f32.mrf.mxu1 }
 0x2f6   : > { %3138 = vrcp.f32 %v1506_v27  ;;  %v3137_v34 = vpop.eup %3136  ;;  %v1519_v55 = vand.u32 2147483648, %v1506_v27  ;;  %v1517_v12 = vand.u32 2147483647, %v1506_v27  ;;  %vm1513_vm2 = vweird.f32 %v1506_v27 }
 0x2f7   : > { %3140 = vpow2.f32 %v3035_v32  ;;  %v1524_v63 = vmul.f32 %v3137_v34, %v1507_v45  ;;  %v1538_v32 = vadd.f32 %v1394_v44, %v4485_v23  ;;  %vm1529_vm5 = vweird.f32 %v3137_v34 }
 0x2f8   : > { %v1520_v37 = vor.u32 1.1754944e-38, %v1519_v55  ;;  %vm1518_vm4 = vcmp.eq.f32.partialorder %v1517_v12, 8.507059e+37  ;;  %vm1530_vm7 = vmor %vm1528_vm6, %vm1529_vm5 }
 0x2f9   : > { %v1525_v18 = vsub.f32 1.0, %v1524_v63 }
 0x2fb   : > { %v1526_v50 = vmul.f32 %v3137_v34, %v1525_v18  ;;  %v1532_v18 = vand.u32 2147483647, %v1507_v45 }
 0x2fc   : > { %v3139_v38 = vpop.eup %3138 }
 0x2fd   : > { %v3141_v10 = vpop.eup %3140  ;;  %v1509_v30 = vmul.f32 %v3139_v38, %v1506_v27  ;;  %vm1514_vm1 = vweird.f32 %v3139_v38  ;;  %v1527_v63 = vadd.f32 %v3137_v34, %v1526_v50  ;;  %vm1533_vm9 = vcmp.eq.f32.partialorder %v1532_v18, 8.507059e+37  ;;  %v7039_v18 = vld [vmem:[#allocation65_spill] sm:$0xff] }
 0x2fe   : > { %v1677_v35 = vadd.f32 1.0, %v3141_v10  ;;  %vm1515_vm3 = vmor %vm1513_vm2, %vm1514_vm1  ;;  %v1534_v10 = vand.u32 2147483648, %v1507_v45  ;;  %v5083_v45 = vld [vmem:[%s6096_s4] sm:$0x1] }
 0x2ff   : > { %v1510_v24 = vsub.f32 1.0, %v1509_v30  ;;  %v1496_v30 = vadd.f32 %v1495_v36, %v4487_v29  ;;  %v1531_v55 = vsel %vm1530_vm7, %v3137_v34, %v1527_v63 }
 0x300   : > { %3142 = vrcp.f32 %v1677_v35  ;;  %v1689_v5 = vand.u32 2147483648, %v1677_v35  ;;  %v1535_v15 = vor.u32 1.1754944e-38, %v1534_v10  ;;  %v1687_v44 = vand.u32 2147483647, %v1677_v35 }
 0x301   : > { %v1511_v26 = vmul.f32 %v3139_v38, %v1510_v24  ;;  %vm1683_vm10 = vweird.f32 %v1677_v35 }
 0x302   : > { %v1536_v12 = vsel %vm1533_vm9, %v1535_v15, %v1531_v55  ;;  %v1690_v50 = vor.u32 1.1754944e-38, %v1689_v5  ;;  %vm1688_vm12 = vcmp.eq.f32.partialorder %v1687_v44, 8.507059e+37  ;;  %v7042_v55 = vld [vmem:[#allocation29_spill] sm:$0xff]  ;;  %v7044_v44 = vld [vmem:[#allocation23_spill] sm:$0xff] }
 0x303   : > { %v1512_v62 = vadd.f32 %v3139_v38, %v1511_v26  ;;  %v1544_v15 = vmul.f32 %v1536_v12, %v4842_v19 }
 0x305   : > { %v1516_v22 = vsel %vm1515_vm3, %v3139_v38, %v1512_v62  ;;  %v1542_v62 = vsub.f32 1.0, %v1536_v12  ;;  %v7047_v12 = vld [vmem:[#allocation86_spill] sm:$0xff] }
 0x306   : > { %v3143_v0 = vpop.eup %3142  ;;  %v1521_v59 = vsel %vm1518_vm4, %v1520_v37, %v1516_v22  ;;  %v1603_v22 = vpop.f32.mrf.mxu0 }
 0x307   : > { %v1679_v24 = vmul.f32 %v3143_v0, %v1677_v35  ;;  %v1539_v33 = vmul.f32 %v1538_v32, %v1521_v59  ;;  %vm1684_vm8 = vweird.f32 %v3143_v0  ;;  %v1696_v32 = vrot.slane %v5074_v1, 2 }
 0x308   : > { %vm1685_vm11 = vmor %vm1683_vm10, %vm1684_vm8 }
 0x309   : > { %v1680_v26 = vsub.f32 1.0, %v1679_v24  ;;  %v1540_v27 = vadd.f32 %v1539_v33, %v1496_v30  ;;  %v1693_v33 = vadd.f32 %v5083_v45, %v1603_v22  ;;  %v7038_v24 = vld [vmem:[#allocation21_spill] sm:$0xff] }
 0x30a   : > { %v7045_v22 = vld [vmem:[#allocation69_spill] sm:$0xff] }
 0x30b   : > { %v1681_v23 = vmul.f32 %v3143_v0, %v1680_v26  ;;  %3144 = vtanh.f32 %v1540_v27  ;;  %v7040_v26 = vld [vmem:[#allocation64_spill] sm:$0xff]  ;;  %v7041_v27 = vld [vmem:[#allocation82_spill] sm:$0xff] }
 0x30d   : > { %v1682_v38 = vadd.f32 %v3143_v0, %v1681_v23  ;;  %v7043_v23 = vld [vmem:[#allocation75_spill] sm:$0xff] }
 0x30f   : > { %v1686_v59 = vsel %vm1685_vm11, %v3143_v0, %v1682_v38  ;;  %v7046_v38 = vld [vmem:[#allocation26_spill] sm:$0xff] }
 0x310   : > { %v1691_v34 = vsel %vm1688_vm12, %v1690_v50, %v1686_v59  ;;  %v5180_v50 = vld [vmem:[#allocation4 + $0x168] sm:$0xff]  ;;  %v7048_v59 = vld [vmem:[#allocation79_spill] sm:$0xff] }
 0x311   : > { %v3145_v36 = vpop.eup %3144  ;;  %v1694_v37 = vmul.f32 %v1693_v33, %v1691_v34  ;;  %v1701_v0 = vrot.slane %v1691_v34, 1  ;;  %v7049_v33 = vld [vmem:[#allocation72_spill] sm:$0xff]  ;;  %v7050_v34 = vld [vmem:[#allocation73_spill] sm:$0xff] }
 0x312   : > { %v1543_v63 = vmul.f32 %v3145_v36, %v1542_v62  ;;  %v5186_v62 = vld [vmem:[#allocation4 + $0x150] sm:$0xff]  ;;  %v7052_v36 = vld [vmem:[#allocation83_spill] sm:$0xff] }
 0x313   : > { %v1698_v35 = vadd.f32 %v1696_v32, %v1694_v37  ;;  %v1703_v19 = vsub.f32 1.0, %v1701_v0  ;;  %v1705_v30 = vmul.f32 %v1701_v0, %v4860_v61  ;;  %v7023_v61 = vld [vmem:[#allocation53_spill] sm:$0xff]  ;;  %7051 = vst [vmem:[#allocation35_spill] sm:$0xff] %v5186_v62  ;;  %v7053_v37 = vld [vmem:[#allocation68_spill] sm:$0xff] }
 0x314   : > { %v5088_v5 = vadd.f32 %v1544_v15, %v1543_v63  ;;  %v7054_v32 = vld [vmem:[#allocation77_spill] sm:$0xff]  ;;  %v5192_v63 = vld [vmem:[#allocation4 + $0x138] sm:$0xff] }
 0x315   : > { %3146 = vtanh.f32 %v1698_v35  ;;  %7055 = vst [vmem:[#allocation31_spill] sm:$0xff] %v5192_v63  ;;  %v7056_v15 = vld [vmem:[#allocation81_spill] sm:$0xff] }
 0x316   : > { %1622 = vmatmul.f32.vlgmr.msra.gmra.mxu1 %v5088_v5  ;;  %1642 = vmatmul.f32.vlgmr.msra.gmra.mxu2 %v5088_v5  ;;  %v7057_v35 = vld [vmem:[#allocation37_spill] sm:$0xff] }
 0x317   : > { %1662 = vmatmul.f32.vlgmr.msra.gmra.mxu3 %v5088_v5  ;;  %1855 = vmatpush.msra.mxu1 %v4498_v16  ;;  %v7058_v0 = vld [vmem:[#allocation85_spill] sm:$0xff] }
 0x318   : > { %1875 = vmatpush.msra.mxu2 %v4501_v20  ;;  %1895 = vmatpush.msra.mxu3 %v4504_v13  ;;  %v7004_v20 = vld [vmem:[#allocation80_spill] sm:$0xff]  ;;  %v7005_v13 = vld [vmem:[#allocation30_spill] sm:$0xff] }
 0x319   : > { %1856 = vmatpush.msra.mxu1 %v4507_v11  ;;  %v7006_v11 = vld [vmem:[#allocation46_spill] sm:$0xff] }
 0x31a   : > { %1876 = vmatpush.msra.mxu2 %v4510_v52  ;;  %1896 = vmatpush.msra.mxu3 %v4513_v39  ;;  %v7007_v52 = vld [vmem:[#allocation40_spill] sm:$0xff] }
 0x31b   : > { %v3147_v1 = vpop.eup %3146  ;;  %1857 = vmatpush.msra.mxu1 %v4516_v49  ;;  %v7008_v39 = vld [vmem:[#allocation84_spill] sm:$0xff] }
 0x31c   : > { %v1704_v10 = vmul.f32 %v3147_v1, %v1703_v19  ;;  %1877 = vmatpush.msra.mxu2 %v4520_v31  ;;  %1897 = vmatpush.msra.mxu3 %v4523_v41  ;;  %v7009_v49 = vld [vmem:[#allocation36_spill] sm:$0xff]  ;;  %v7010_v31 = vld [vmem:[#allocation50_spill] sm:$0xff]  ;;  %v7011_v41 = vld [vmem:[#allocation43_spill] sm:$0xff] }
 0x31d   : > { %1858 = vmatpush.msra.mxu1 %v4526_v40  ;;  %v7012_v40 = vld [vmem:[#allocation39_spill] sm:$0xff]  ;;  %v7060_v1 = vld [vmem:[#allocation96_spill] sm:$0xff] }
 0x31e   : > { %v5104_v16 = vadd.f32 %v1705_v30, %v1704_v10  ;;  %1878 = vmatpush.msra.mxu2 %v4531_v43  ;;  %1898 = vmatpush.msra.mxu3 %v4534_v2  ;;  %v7013_v43 = vld [vmem:[#allocation52_spill] sm:$0xff]  ;;  %v7014_v2 = vld [vmem:[#allocation47_spill] sm:$0xff]  ;;  %v7062_v30 = vld [vmem:[#allocation97_spill] sm:$0xff] }
 0x31f   : > { %1859 = vmatpush.msra.mxu1 %v4537_v46  ;;  %v7015_v46 = vld [vmem:[#allocation42_spill] sm:$0xff]  ;;  %v5198_v19 = vld [vmem:[#allocation4 + $0x120] sm:$0xff]  ;;  %v7061_v10 = vld [vmem:[#allocation32_spill] sm:$0xff] }
 0x320   : > { %1723 = vmatmul.f32.vlgmr.msrb.gmra.mxu0 %v5104_v16  ;;  %1743 = vmatmul.f32.vlgmr.msrb.gmra.mxu1 %v5104_v16  ;;  %7059 = vst [vmem:[#allocation38_spill] sm:$0xff] %v5198_v19 }
 0x321   : > { %1763 = vmatmul.f32.vlgmr.msrb.gmra.mxu2 %v5104_v16  ;;  %1831 = vmatmul.f32.vlgmr.msrb.gmra.mxu3 %v5104_v16 }
 0x322   : > { %1860 = vmatpush.msra.mxu1 %v4544_v17  ;;  %1879 = vmatpush.msra.mxu2 %v4547_v25  ;;  %v7016_v17 = vld [vmem:[#allocation58_spill] sm:$0xff]  ;;  %v7017_v25 = vld [vmem:[#allocation51_spill] sm:$0xff] }
 0x323   : > { %1915 = vmatpush.msrb.mxu0 %v4550_v51  ;;  %1899 = vmatpush.msra.mxu3 %v4553_v47  ;;  %v7018_v51 = vld [vmem:[#allocation45_spill] sm:$0xff]  ;;  %v7019_v47 = vld [vmem:[#allocation95_spill] sm:$0xff] }
 0x324   : > { %1861 = vmatpush.msra.mxu1 %v4556_v60  ;;  %1880 = vmatpush.msra.mxu2 %v4559_v58  ;;  %v7020_v60 = vld [vmem:[#allocation62_spill] sm:$0xff]  ;;  %v7021_v58 = vld [vmem:[#allocation55_spill] sm:$0xff] }
 0x325   : > { %1916 = vmatpush.msrb.mxu0 %v6891_v42  ;;  %1900 = vmatpush.msra.mxu3 %v4565_v54  ;;  %v7022_v54 = vld [vmem:[#allocation49_spill] sm:$0xff]  ;;  %v7024_v42 = vld [vmem:[#allocation66_spill] sm:$0xff] }
 0x326   : > { %1862 = vmatpush.msra.mxu1 %v6894_v8  ;;  %1881 = vmatpush.msra.mxu2 %v6892_v7  ;;  %v7025_v7 = vld [vmem:[#allocation59_spill] sm:$0xff]  ;;  %v7027_v8 = vld [vmem:[#allocation70_spill] sm:$0xff] }
 0x327   : > { %1917 = vmatpush.msrb.mxu0 %v6895_v53  ;;  %1901 = vmatpush.msra.mxu3 %v6893_v3  ;;  %v7026_v3 = vld [vmem:[#allocation54_spill] sm:$0xff]  ;;  %v7028_v53 = vld [vmem:[#allocation56_spill] sm:$0xff] }
 0x328   : > { %1863 = vmatpush.msra.mxu1 %v6898_v57  ;;  %1851 = vmatmul.f32.vlgmr.msra.gmra.mxu0 %v5104_v16  ;;  %v7031_v57 = vld [vmem:[#allocation74_spill] sm:$0xff] }
 0x329   : > { %1882 = vmatpush.msra.mxu2 %v6896_v9  ;;  %1918 = vmatpush.msrb.mxu0 %v6899_v21  ;;  %v7029_v9 = vld [vmem:[#allocation63_spill] sm:$0xff]  ;;  %v7032_v21 = vld [vmem:[#allocation60_spill] sm:$0xff] }
 0x32a   : > { %1864 = vmatpush.msra.mxu1 %v6901_v28  ;;  %1902 = vmatpush.msra.mxu3 %v6897_v6  ;;  %v7030_v6 = vld [vmem:[#allocation57_spill] sm:$0xff] }
 0x32b   : > { %1883 = vmatpush.msra.mxu2 %v6900_v4  ;;  %1919 = vmatpush.msrb.mxu0 %v6903_v48  ;;  %v7033_v4 = vld [vmem:[#allocation67_spill] sm:$0xff]  ;;  %v7034_v28 = vld [vmem:[#allocation61_spill] sm:$0xff]  ;;  %v7036_v48 = vld [vmem:[#allocation18_spill] sm:$0xff] }
 0x32c   : > { %1865 = vmatpush.msra.mxu1 %v6905_v56  ;;  %1903 = vmatpush.msra.mxu3 %v6902_v14  ;;  %v7035_v14 = vld [vmem:[#allocation78_spill] sm:$0xff]  ;;  %v7037_v56 = vld [vmem:[#allocation71_spill] sm:$0xff] }
 0x32d   : > { %1884 = vmatpush.msra.mxu2 %v7004_v20  ;;  %1920 = vmatpush.msrb.mxu0 %v7005_v13  ;;  %v5204_v20 = vld [vmem:[#allocation4 + $0x108] sm:$0xff]  ;;  %v7064_v13 = vld [vmem:[#allocation98_spill] sm:$0xff] }
 0x32e   : > { %1866 = vmatpush.msra.mxu1 %v7006_v11  ;;  %1904 = vmatpush.msra.mxu3 %v7007_v52  ;;  %7063 = vst [vmem:[#allocation33_spill] sm:$0xff] %v5204_v20  ;;  %v7065_v11 = vld [vmem:[#allocation76_spill] sm:$0xff]  ;;  %v7066_v52 = vld [vmem:[#allocation99_spill] sm:$0xff] }
 0x32f   : > { %1885 = vmatpush.msra.mxu2 %v7008_v39  ;;  %1921 = vmatpush.msrb.mxu0 %v7009_v49  ;;  %v5210_v39 = vld [vmem:[#allocation4 + $0xf0] sm:$0xff]  ;;  %v7068_v49 = vld [vmem:[#allocation19_spill] sm:$0xff] }
 0x330   : > { %1867 = vmatpush.msra.mxu1 %v7010_v31  ;;  %1905 = vmatpush.msra.mxu3 %v7011_v41  ;;  %7067 = vst [vmem:[#allocation41_spill] sm:$0xff] %v5210_v39  ;;  %v7069_v31 = vld [vmem:[#allocation11_spill] sm:$0xff]  ;;  %v7070_v41 = vld [vmem:[#allocation100_spill] sm:$0xff] }
 0x331   : > { %1886 = vmatpush.msra.mxu2 %v7012_v40  ;;  %1922 = vmatpush.msrb.mxu0 %v7013_v43  ;;  %v5216_v40 = vld [vmem:[#allocation4 + $0xd8] sm:$0xff]  ;;  %v7072_v43 = vld [vmem:[#allocation13_spill] sm:$0xff] }
 0x332   : > { %1868 = vmatpush.msra.mxu1 %v7014_v2  ;;  %1906 = vmatpush.msra.mxu3 %v7015_v46  ;;  %7071 = vst [vmem:[#allocation80_spill] sm:$0xff] %v5216_v40  ;;  %v7073_v2 = vld [vmem:[#allocation22_spill] sm:$0xff]  ;;  %v7074_v46 = vld [vmem:[#allocation12_spill] sm:$0xff] }
 0x333   : > { %1887 = vmatpush.msra.mxu2 %v7016_v17  ;;  %1923 = vmatpush.msrb.mxu0 %v7017_v25  ;;  %v5222_v17 = vld [vmem:[#allocation4 + $0xc0] sm:$0xff]  ;;  %v7076_v25 = vld [vmem:[#allocation101_spill] sm:$0xff] }
 0x334   : > { %1869 = vmatpush.msra.mxu1 %v7018_v51  ;;  %1907 = vmatpush.msra.mxu3 %v7019_v47  ;;  %7075 = vst [vmem:[#allocation30_spill] sm:$0xff] %v5222_v17  ;;  %v7077_v51 = vld [vmem:[#allocation14_spill] sm:$0xff] }
 0x335   : > { %1888 = vmatpush.msra.mxu2 %v7020_v60  ;;  %1924 = vmatpush.msrb.mxu0 %v7021_v58  ;;  %v7078_v60 = vld [vmem:[#allocation24_spill] sm:$0xff] }
 0x336   : > { %1870 = vmatpush.msra.mxu1 %v7022_v54  ;;  %1908 = vmatpush.msra.mxu3 %v7023_v61  ;;  %v5228_v58 = vld [vmem:[#allocation4 + $0xa8] sm:$0xff]  ;;  %v7080_v54 = vld [vmem:[#allocation103_spill] sm:$0xff] }
 0x337   : > { %1871 = vmatmul.f32.vlgmr.msra.gmra.mxu1 %v5104_v16  ;;  %1889 = vmatpush.msra.mxu2 %v7024_v42  ;;  %7079 = vst [vmem:[#allocation46_spill] sm:$0xff] %v5228_v58  ;;  %v7081_v42 = vld [vmem:[#allocation102_spill] sm:$0xff] }
 0x338   : > { %1976 = vmatpush.msrb.mxu1 %v7025_v7  ;;  %1925 = vmatpush.msrb.mxu0 %v7026_v3  ;;  %v7082_v7 = vld [vmem:[#allocation27_spill] sm:$0xff]  ;;  %v5234_v3 = vld [vmem:[#allocation4 + $0x90] sm:$0xff] }
 0x339   : > { %1890 = vmatpush.msra.mxu2 %v7027_v8  ;;  %1909 = vmatpush.msra.mxu3 %v7028_v53  ;;  %7083 = vst [vmem:[#allocation40_spill] sm:$0xff] %v5234_v3  ;;  %v7084_v8 = vld [vmem:[#allocation105_spill] sm:$0xff] }
 0x33a   : > { %1977 = vmatpush.msrb.mxu1 %v7029_v9  ;;  %1926 = vmatpush.msrb.mxu0 %v7030_v6  ;;  %v7085_v9 = vld [vmem:[#allocation104_spill] sm:$0xff]  ;;  %v7086_v6 = vld [vmem:[#allocation15_spill] sm:$0xff] }
 0x33b   : > { %1996 = vmatpush.msrb.mxu2 %v7031_v57  ;;  %1910 = vmatpush.msra.mxu3 %v7032_v21  ;;  %v7087_v57 = vld [vmem:[#allocation34_spill] sm:$0xff] }
 0x33c   : > { %1978 = vmatpush.msrb.mxu1 %v7033_v4  ;;  %1927 = vmatpush.msrb.mxu0 %v7034_v28  ;;  %v5241_v4 = vld [vmem:[#allocation4 + $0x78] sm:$0xff]  ;;  %v7089_v28 = vld [vmem:[#allocation44_spill] sm:$0xff] }
 0x33d   : > { %1997 = vmatpush.msrb.mxu2 %v7035_v14  ;;  %2016 = vmatpush.msrb.mxu3 %v7036_v48  ;;  %7088 = vst [vmem:[#allocation84_spill] sm:$0xff] %v5241_v4  ;;  %v7090_v14 = vld [vmem:[#allocation107_spill] sm:$0xff] }
 0x33e   : > { %1979 = vmatpush.msrb.mxu1 %v7037_v56  ;;  %1928 = vmatpush.msrb.mxu0 %v7038_v24  ;;  %v7091_v56 = vld [vmem:[#allocation106_spill] sm:$0xff] }
 0x33f   : > { %1998 = vmatpush.msrb.mxu2 %v7039_v18  ;;  %2017 = vmatpush.msrb.mxu3 %v7040_v26  ;;  %v5247_v18 = vld [vmem:[#allocation4 + $0x60] sm:$0xff] }
 0x340   : > { %1980 = vmatpush.msrb.mxu1 %v7041_v27  ;;  %1929 = vmatpush.msrb.mxu0 %v7042_v55  ;;  %7092 = vst [vmem:[#allocation36_spill] sm:$0xff] %v5247_v18  ;;  %v7093_v27 = vld [vmem:[#allocation16_spill] sm:$0xff] }
 0x341   : > { %1999 = vmatpush.msrb.mxu2 %v7043_v23  ;;  %2018 = vmatpush.msrb.mxu3 %v7044_v44  ;;  %v7094_v23 = vld [vmem:[#allocation108_spill] sm:$0xff] }
 0x342   : > { %1981 = vmatpush.msrb.mxu1 %v7045_v22  ;;  %1930 = vmatpush.msrb.mxu0 %v7046_v38  ;;  %v5252_v22 = vld [vmem:[#allocation4 + $0x48] sm:$0xff] }
 0x343   : > { %2000 = vmatpush.msrb.mxu2 %v7047_v12  ;;  %2019 = vmatpush.msrb.mxu3 %v7049_v33  ;;  %7095 = vst [vmem:[#allocation50_spill] sm:$0xff] %v5252_v22  ;;  %v7096_v12 = vld [vmem:[#allocation109_spill] sm:$0xff] }
 0x344   : > { %2084 = vmatpush.msra.mxu0 %v5180_v50  ;;  %1982 = vmatpush.msrb.mxu1 %v7048_v59  ;;  %v5256_v59 = vld [vmem:[#allocation4 + $0x128] sm:$0xff] }
 0x345   : > { %2001 = vmatpush.msrb.mxu2 %v7050_v34  ;;  %2020 = vmatpush.msrb.mxu3 %v7053_v37  ;;  %7097 = vst [vmem:[#allocation43_spill] sm:$0xff] %v5256_v59  ;;  %v7098_v34 = vld [vmem:[#allocation91_spill] sm:$0xff] }
 0x346   : > { %2085 = vmatpush.msra.mxu0 %v5186_v62  ;;  %1983 = vmatpush.msrb.mxu1 %v7052_v36  ;;  %v5260_v36 = vld [vmem:[#allocation4 + $0x110] sm:$0xff] }
 0x347   : > { %2002 = vmatpush.msrb.mxu2 %v7054_v32  ;;  %2021 = vmatpush.msrb.mxu3 %v7057_v35  ;;  %7099 = vst [vmem:[#allocation39_spill] sm:$0xff] %v5260_v36  ;;  %v7100_v32 = vld [vmem:[#allocation87_spill] sm:$0xff] }
 0x348   : > { %2086 = vmatpush.msra.mxu0 %v5192_v63  ;;  %1984 = vmatpush.msrb.mxu1 %v7056_v15  ;;  %v5264_v15 = vld [vmem:[#allocation4 + $0xf8] sm:$0xff] }
 0x349   : > { %2003 = vmatpush.msrb.mxu2 %v7058_v0  ;;  %2022 = vmatpush.msrb.mxu3 %v7061_v10  ;;  %7101 = vst [vmem:[#allocation52_spill] sm:$0xff] %v5264_v15  ;;  %v7102_v0 = vld [vmem:[#allocation89_spill] sm:$0xff] }
 0x34a   : > { %2087 = vmatpush.msra.mxu0 %v5198_v19  ;;  %1985 = vmatpush.msrb.mxu1 %v7060_v1  ;;  %v5268_v1 = vld [vmem:[#allocation4 + $0xe0] sm:$0xff] }
 0x34b   : > { %2004 = vmatpush.msrb.mxu2 %v7062_v30  ;;  %2023 = vmatpush.msrb.mxu3 %v7065_v11  ;;  %7103 = vst [vmem:[#allocation47_spill] sm:$0xff] %v5268_v1  ;;  %v5271_v30 = vld [vmem:[#allocation4 + $0xc8] sm:$0xff] }
 0x34c   : > { %2088 = vmatpush.msra.mxu0 %v5204_v20  ;;  %1986 = vmatpush.msrb.mxu1 %v7064_v13  ;;  %7104 = vst [vmem:[#allocation42_spill] sm:$0xff] %v5271_v30  ;;  %v7105_v13 = vld [vmem:[#allocation92_spill] sm:$0xff] }
 0x34d   : > { %2005 = vmatpush.msrb.mxu2 %v7066_v52  ;;  %2024 = vmatpush.msrb.mxu3 %v7069_v31  ;;  %v7106_v52 = vld [vmem:[#allocation25_spill] sm:$0xff] }
 0x34e   : > { %2089 = vmatpush.msra.mxu0 %v5210_v39  ;;  %1987 = vmatpush.msrb.mxu1 %v7068_v49 }
 0x34f   : > { %2006 = vmatpush.msrb.mxu2 %v7070_v41  ;;  %2025 = vmatpush.msrb.mxu3 %v7073_v2  ;;  %v7107_v41 = vld [vmem:[#allocation88_spill] sm:$0xff] }
 0x350   : > { %2090 = vmatpush.msra.mxu0 %v5216_v40  ;;  %1988 = vmatpush.msrb.mxu1 %v7072_v43 }
 0x351   : > { %2007 = vmatpush.msrb.mxu2 %v7074_v46  ;;  %2026 = vmatpush.msrb.mxu3 %v7077_v51 }
 0x352   : > { %2091 = vmatpush.msra.mxu0 %v5222_v17  ;;  %1989 = vmatpush.msrb.mxu1 %v7076_v25 }
 0x353   : > { %2008 = vmatpush.msrb.mxu2 %v7078_v60  ;;  %2027 = vmatpush.msrb.mxu3 %v7081_v42 }
 0x354   : > { %2092 = vmatpush.msra.mxu0 %v5228_v58  ;;  %1990 = vmatpush.msrb.mxu1 %v7080_v54 }
 0x355   : > { %2009 = vmatpush.msrb.mxu2 %v7082_v7  ;;  %2028 = vmatpush.msrb.mxu3 %v7085_v9 }
 0x356   : > { %2093 = vmatpush.msra.mxu0 %v5234_v3  ;;  %1991 = vmatpush.msrb.mxu1 %v7084_v8 }
 0x357   : > { %2010 = vmatpush.msrb.mxu2 %v7087_v57  ;;  %2029 = vmatpush.msrb.mxu3 %v7089_v28 }
 0x358   : > { %2104 = vmatpush.msra.mxu1 %v7086_v6  ;;  %2094 = vmatpush.msra.mxu0 %v5241_v4 }
 0x359   : > { %2011 = vmatpush.msrb.mxu2 %v7091_v56  ;;  %2030 = vmatpush.msrb.mxu3 %v7093_v27  ;;  %v7114_v27 = vld [vmem:[#allocation17_spill] sm:$0xff] }
 0x35a   : > { %2105 = vmatpush.msra.mxu1 %v7090_v14  ;;  %2095 = vmatpush.msra.mxu0 %v5247_v18  ;;  %v5284_v18 = vld [vmem:[#allocation2 + $0xc] sm:$0x7] }
 0x35b   : > { %2031 = vmatpush.msrb.mxu3 %v7096_v12 }
 0x35c   : > { %2106 = vmatpush.msra.mxu1 %v7094_v23  ;;  %2096 = vmatpush.msra.mxu0 %v5252_v22  ;;  %v7113_v23 = vld [vmem:[#allocation48_spill] sm:$0xff] }
 0x35e   : > { %2107 = vmatpush.msra.mxu1 %v5256_v59  ;;  %2097 = vmatpush.msra.mxu0 %v7098_v34  ;;  %v7108_v34 = vld [vmem:[#allocation93_spill] sm:$0xff] }
 0x360   : > { %2108 = vmatpush.msra.mxu1 %v5260_v36  ;;  %2098 = vmatpush.msra.mxu0 %v7100_v32  ;;  %v7109_v32 = vld [vmem:[#allocation20_spill] sm:$0xff] }
 0x361   : > { %v7112_v36 = vld [vmem:[#allocation28_spill] sm:$0xff] }
 0x362   : > { %2109 = vmatpush.msra.mxu1 %v5264_v15  ;;  %2099 = vmatpush.msra.mxu0 %v7102_v0  ;;  %v7110_v15 = vld [vmem:[#allocation90_spill] sm:$0xff] }
 0x363   : > { %v7111_v0 = vld [vmem:[#allocation94_spill] sm:$0xff] }
 0x364   : > { %2110 = vmatpush.msra.mxu1 %v5268_v1 }
 0x366   : > { %2111 = vmatpush.msra.mxu1 %v5271_v30 }
 0x368   : > { %2112 = vmatpush.msra.mxu1 %v7105_v13 }
 0x36a   : > { %2113 = vmatpush.msra.mxu1 %v7106_v52 }
 0x36c   : > { %2114 = vmatpush.msra.mxu1 %v7107_v41 }
 0x36e   : > { %2115 = vmatpush.msra.mxu1 %v7108_v34 }
 0x370   : > { %2116 = vmatpush.msra.mxu1 %v7109_v32 }
 0x372   : > { %2117 = vmatpush.msra.mxu1 %v7110_v15 }
 0x374   : > { %2118 = vmatpush.msra.mxu1 %v7111_v0 }
 0x376   : > { %2119 = vmatpush.msra.mxu1 %v7112_v36 }
 0x393   : > { %v1623_v1 = vpop.f32.mrf.mxu1 }
 0x399   : > { %v1643_v22 = vpop.f32.mrf.mxu2 }
 0x39a   : > { %v1663_v59 = vpop.f32.mrf.mxu3 }
 0x39d   : > { %v1724_v12 = vpop.f32.mrf.mxu0  ;;  %v1744_v30 = vpop.f32.mrf.mxu1 }
 0x39e   : > { %v1725_v13 = vadd.f32 %v1724_v12, %v7113_v23  ;;  %v1745_v52 = vadd.f32 %v1744_v30, %v7114_v27 }
 0x3a0   : > { %v1767_v41 = vadd.f32 %v1725_v13, %v1623_v1  ;;  %v1768_v14 = vadd.f32 %v1745_v52, %v1643_v22 }
 0x3a2   : > { %v3036_v34 = vmul.f32 -1.442695, %v1767_v41  ;;  %v3037_v28 = vmul.f32 -1.442695, %v1768_v14 }
 0x3a4   : > { %3148 = vpow2.f32 %v3036_v34  ;;  %v1832_v0 = vpop.f32.mrf.mxu3 }
 0x3a5   : > { %3150 = vpow2.f32 %v3037_v28  ;;  %v1852_v15 = vpop.f32.mrf.mxu0 }
 0x3a6   : > { %v1939_v32 = vrot.slane %v1852_v15, 7 }
 0x3a8   : > { %v1940_v36 = vsel %vm674_vm14, %v1832_v0, %v1939_v32 }
 0x3a9   : > { %v1942_v56 = vadd.f32 %v1940_v36, %v5284_v18 }
 0x3aa   : > { %v3149_v6 = vpop.eup %3148 }
 0x3ab   : > { %v3151_v12 = vpop.eup %3150  ;;  %v1775_v23 = vadd.f32 1.0, %v3149_v6  ;;  %v3038_v30 = vmul.f32 -1.442695, %v1942_v56  ;;  %v1764_v56 = vpop.f32.mrf.mxu2 }
 0x3ac   : > { %v1776_v27 = vadd.f32 1.0, %v3151_v12 }
 0x3ad   : > { %3152 = vrcp.f32 %v1775_v23  ;;  %v1788_v15 = vand.u32 2147483648, %v1775_v23  ;;  %v1786_v0 = vand.u32 2147483647, %v1775_v23  ;;  %vm1782_vm15 = vweird.f32 %v1775_v23 }
 0x3ae   : > { %3154 = vrcp.f32 %v1776_v27  ;;  %vm1797_vm3 = vweird.f32 %v1776_v27 }
 0x3af   : > { %3156 = vpow2.f32 %v3038_v30  ;;  %v1789_v12 = vor.u32 1.1754944e-38, %v1788_v15  ;;  %v5291_v30 = vld [vmem:[%s6100_s8] sm:$0x1]  ;;  %vm1787_vm1 = vcmp.eq.f32.partialorder %v1786_v0, 8.507059e+37  ;;  %v1801_v15 = vand.u32 2147483647, %v1776_v27 }
 0x3b1   : > { %vm1802_vm6 = vcmp.eq.f32.partialorder %v1801_v15, 8.507059e+37 }
 0x3b3   : > { %v3153_v14 = vpop.eup %3152 }
 0x3b4   : > { %v3155_v22 = vpop.eup %3154  ;;  %v1778_v28 = vmul.f32 %v3153_v14, %v1775_v23  ;;  %vm1783_vm13 = vweird.f32 %v3153_v14  ;;  %v1803_v23 = vand.u32 2147483648, %v1776_v27 }
 0x3b5   : > { %v3157_v1 = vpop.eup %3156  ;;  %v1793_v13 = vmul.f32 %v3155_v22, %v1776_v27  ;;  %vm1784_vm0 = vmor %vm1782_vm15, %vm1783_vm13  ;;  %vm1798_vm2 = vweird.f32 %v3155_v22 }
 0x3b6   : > { %v1779_v52 = vsub.f32 1.0, %v1778_v28  ;;  %v1946_v41 = vadd.f32 1.0, %v3157_v1  ;;  %v1807_v28 = vadd.f32 %v5291_v30, %v1663_v59  ;;  %vm1799_vm4 = vmor %vm1797_vm3, %vm1798_vm2  ;;  %v1804_v59 = vor.u32 1.1754944e-38, %v1803_v23  ;;  %v5318_v23 = vld [vmem:[#allocation8 + $0x158] sm:$0xff] }
 0x3b7   : > { %v1794_v34 = vsub.f32 1.0, %v1793_v13 }
 0x3b8   : > { %v1780_v32 = vmul.f32 %v3153_v14, %v1779_v52  ;;  %3158 = vrcp.f32 %v1946_v41  ;;  %v1958_v54 = vand.u32 2147483648, %v1946_v41  ;;  %v1956_v0 = vand.u32 2147483647, %v1946_v41 }
 0x3b9   : > { %v1795_v36 = vmul.f32 %v3155_v22, %v1794_v34  ;;  %v1765_v34 = vadd.f32 %v1764_v56, %v4487_v29  ;;  %vm1952_vm7 = vweird.f32 %v1946_v41 }
 0x3ba   : > { %v1781_v6 = vadd.f32 %v3153_v14, %v1780_v32  ;;  %v1959_v56 = vor.u32 1.1754944e-38, %v1958_v54  ;;  %vm1957_vm9 = vcmp.eq.f32.partialorder %v1956_v0, 8.507059e+37  ;;  %v5324_v0 = vld [vmem:[#allocation8 + $0x138] sm:$0xff] }
 0x3bb   : > { %v1796_v52 = vadd.f32 %v3155_v22, %v1795_v36  ;;  %v1872_v36 = vpop.f32.mrf.mxu1 }
 0x3bc   : > { %v1785_v1 = vsel %vm1784_vm0, %v3153_v14, %v1781_v6  ;;  %v1962_v27 = vadd.f32 %v5083_v45, %v1872_v36  ;;  %v5327_v36 = vld [vmem:[#allocation8 + $0x140] sm:$0xff] }
 0x3bd   : > { %v1790_v13 = vsel %vm1787_vm1, %v1789_v12, %v1785_v1  ;;  %v1800_v3 = vsel %vm1799_vm4, %v3155_v22, %v1796_v52 }
 0x3be   : > { %v3159_v4 = vpop.eup %3158  ;;  %v1808_v32 = vmul.f32 %v1807_v28, %v1790_v13  ;;  %v1805_v6 = vsel %vm1802_vm6, %v1804_v59, %v1800_v3  ;;  %v1965_v13 = vrot.slane %v5284_v18, 2  ;;  %v5303_v3 = vld [vmem:[#allocation4 + $0x178] sm:$0xff]  ;;  %v5312_v18 = vld [vmem:[#allocation4 + $0x160] sm:$0xff]  ;;  %v5321_v59 = vld [vmem:[#allocation4 + $0x148] sm:$0xff] }
 0x3bf   : > { %v1948_v8 = vmul.f32 %v3159_v4, %v1946_v41  ;;  %vm1953_vm5 = vweird.f32 %v3159_v4  ;;  %v1811_v1 = vsub.f32 1.0, %v1805_v6  ;;  %v1813_v52 = vmul.f32 %v1805_v6, %v5088_v5  ;;  %v5309_v5 = vld [vmem:[#allocation8 + $0x170] sm:$0xff] }
 0x3c0   : > { %v1809_v9 = vadd.f32 %v1808_v32, %v1765_v34  ;;  %vm1954_vm8 = vmor %vm1952_vm7, %vm1953_vm5  ;;  %v5315_v41 = vld [vmem:[#allocation8 + $0x150] sm:$0xff] }
 0x3c1   : > { %v1949_v57 = vsub.f32 1.0, %v1948_v8 }
 0x3c2   : > { %3160 = vtanh.f32 %v1809_v9 }
 0x3c3   : > { %v1950_v14 = vmul.f32 %v3159_v4, %v1949_v57 }
 0x3c5   : > { %v1951_v12 = vadd.f32 %v3159_v4, %v1950_v14 }
 0x3c7   : > { %v1955_v28 = vsel %vm1954_vm8, %v3159_v4, %v1951_v12  ;;  %v5306_v4 = vld [vmem:[#allocation8 + $0x168] sm:$0xff] }
 0x3c8   : > { %v3161_v8 = vpop.eup %3160  ;;  %v1960_v22 = vsel %vm1957_vm9, %v1959_v56, %v1955_v28  ;;  %v5331_v56 = vld [vmem:[#allocation4 + $0x130] sm:$0xff]  ;;  %v5334_v28 = vld [vmem:[#allocation8 + $0x120] sm:$0xff] }
 0x3c9   : > { %v1963_v9 = vmul.f32 %v1962_v27, %v1960_v22  ;;  %v1812_v57 = vmul.f32 %v3161_v8, %v1811_v1  ;;  %v1970_v54 = vrot.slane %v1960_v22, 1  ;;  %v5337_v27 = vld [vmem:[#allocation8 + $0x128] sm:$0xff]  ;;  %v5342_v8 = vld [vmem:[#allocation4 + $0x118] sm:$0xff] }
 0x3ca   : > { %v5345_v22 = vld [vmem:[#allocation8 + $0x108] sm:$0xff] }
 0x3cb   : > { %v1967_v34 = vadd.f32 %v1965_v13, %v1963_v9  ;;  %v5298_v32 = vadd.f32 %v1813_v52, %v1812_v57  ;;  %v1972_v15 = vsub.f32 1.0, %v1970_v54  ;;  %v1974_v12 = vmul.f32 %v1970_v54, %v5104_v16  ;;  %v5348_v16 = vld [vmem:[#allocation8 + $0x110] sm:$0xff]  ;;  %v5355_v9 = vld [vmem:[#allocation4 + $0x100] sm:$0xff]  ;;  %v5358_v13 = vld [vmem:[#allocation8 + $0x178] sm:$0xff] }
 0x3cc   : > { %v5361_v57 = vld [vmem:[#allocation8 + $0xf0] sm:$0xff]  ;;  %v5364_v52 = vld [vmem:[#allocation8 + $0xf8] sm:$0xff]  ;;  %v5370_v54 = vld [vmem:[#allocation8 + $0x160] sm:$0xff] }
 0x3cd   : > { %3162 = vtanh.f32 %v1967_v34  ;;  %1891 = vmatmul.f32.vlgmr.msra.gmra.mxu2 %v5298_v32  ;;  %1911 = vmatmul.f32.vlgmr.msra.gmra.mxu3 %v5298_v32  ;;  %7115 = vst [vmem:[#allocation58_spill] sm:$0xff] %v5364_v52  ;;  %v5367_v34 = vld [vmem:[#allocation4 + $0xe8] sm:$0xff] }
 0x3ce   : > { %1931 = vmatmul.f32.vlgmr.msrb.gmra.mxu0 %v5298_v32  ;;  %2124 = vmatpush.msra.mxu2 %v5303_v3  ;;  %7116 = vst [vmem:[#allocation51_spill] sm:$0xff] %v5370_v54 }
 0x3cf   : > { %2144 = vmatpush.msra.mxu3 %v5306_v4  ;;  %2164 = vmatpush.msrb.mxu0 %v5309_v5 }
 0x3d0   : > { %2125 = vmatpush.msra.mxu2 %v5312_v18 }
 0x3d1   : > { %2145 = vmatpush.msra.mxu3 %v5315_v41  ;;  %2165 = vmatpush.msrb.mxu0 %v5318_v23 }
 0x3d2   : > { %2126 = vmatpush.msra.mxu2 %v5321_v59 }
 0x3d3   : > { %v3163_v14 = vpop.eup %3162  ;;  %2146 = vmatpush.msra.mxu3 %v5324_v0  ;;  %2166 = vmatpush.msrb.mxu0 %v5327_v36 }
 0x3d4   : > { %v1973_v6 = vmul.f32 %v3163_v14, %v1972_v15  ;;  %2127 = vmatpush.msra.mxu2 %v5331_v56  ;;  %v5373_v15 = vld [vmem:[#allocation8 + $0xd8] sm:$0xff]  ;;  %v5376_v14 = vld [vmem:[#allocation8 + $0xe0] sm:$0xff] }
 0x3d5   : > { %2147 = vmatpush.msra.mxu3 %v5334_v28  ;;  %2167 = vmatpush.msrb.mxu0 %v5337_v27  ;;  %7117 = vst [vmem:[#allocation45_spill] sm:$0xff] %v5373_v15 }
 0x3d6   : > { %v5340_v1 = vadd.f32 %v1974_v12, %v1973_v6  ;;  %2128 = vmatpush.msra.mxu2 %v5342_v8  ;;  %7118 = vst [vmem:[#allocation95_spill] sm:$0xff] %v5376_v14  ;;  %v5379_v6 = vld [vmem:[#allocation4 + $0xd0] sm:$0xff]  ;;  %v5382_v12 = vld [vmem:[#allocation8 + $0x148] sm:$0xff] }
 0x3d7   : > { %2148 = vmatpush.msra.mxu3 %v5345_v22  ;;  %2168 = vmatpush.msrb.mxu0 %v5348_v16  ;;  %7119 = vst [vmem:[#allocation62_spill] sm:$0xff] %v5379_v6 }
 0x3d8   : > { %1992 = vmatmul.f32.vlgmr.msrb.gmra.mxu1 %v5340_v1  ;;  %2012 = vmatmul.f32.vlgmr.msrb.gmra.mxu2 %v5340_v1  ;;  %7120 = vst [vmem:[#allocation55_spill] sm:$0xff] %v5382_v12 }
 0x3d9   : > { %2032 = vmatmul.f32.vlgmr.msrb.gmra.mxu3 %v5340_v1  ;;  %2100 = vmatmul.f32.vlgmr.msra.gmra.mxu0 %v5340_v1 }
 0x3da   : > { %2129 = vmatpush.msra.mxu2 %v5355_v9  ;;  %2184 = vmatpush.msrb.mxu1 %v5358_v13 }
 0x3db   : > { %2149 = vmatpush.msra.mxu3 %v5361_v57  ;;  %2169 = vmatpush.msrb.mxu0 %v5364_v52  ;;  %v5385_v52 = vld [vmem:[#allocation8 + $0xc0] sm:$0xff] }
 0x3dc   : > { %2130 = vmatpush.msra.mxu2 %v5367_v34  ;;  %2185 = vmatpush.msrb.mxu1 %v5370_v54  ;;  %7121 = vst [vmem:[#allocation49_spill] sm:$0xff] %v5385_v52  ;;  %v5388_v54 = vld [vmem:[#allocation8 + $0xc8] sm:$0xff] }
 0x3dd   : > { %2150 = vmatpush.msra.mxu3 %v5373_v15  ;;  %2170 = vmatpush.msrb.mxu0 %v5376_v14  ;;  %7122 = vst [vmem:[#allocation53_spill] sm:$0xff] %v5388_v54  ;;  %v5391_v15 = vld [vmem:[#allocation4 + $0xb8] sm:$0xff]  ;;  %v5395_v14 = vld [vmem:[#allocation8 + $0x130] sm:$0xff] }
 0x3de   : > { %2131 = vmatpush.msra.mxu2 %v5379_v6  ;;  %2186 = vmatpush.msrb.mxu1 %v5382_v12  ;;  %7123 = vst [vmem:[#allocation66_spill] sm:$0xff] %v5391_v15  ;;  %v5398_v6 = vld [vmem:[#allocation8 + $0xa8] sm:$0xff]  ;;  %v5401_v12 = vld [vmem:[#allocation4 + $0xa0] sm:$0xff] }
 0x3df   : > { %2151 = vmatpush.msra.mxu3 %v5385_v52  ;;  %2171 = vmatpush.msrb.mxu0 %v5388_v54  ;;  %7124 = vst [vmem:[#allocation59_spill] sm:$0xff] %v5395_v14  ;;  %v5404_v52 = vld [vmem:[#allocation8 + $0xb0] sm:$0xff]  ;;  %v5407_v54 = vld [vmem:[#allocation8 + $0x118] sm:$0xff] }
 0x3e0   : > { %2132 = vmatpush.msra.mxu2 %v5391_v15  ;;  %2120 = vmatmul.f32.vlgmr.msra.gmra.mxu1 %v5340_v1  ;;  %7125 = vst [vmem:[#allocation54_spill] sm:$0xff] %v5398_v6  ;;  %v5410_v15 = vld [vmem:[#allocation8 + $0x90] sm:$0xff] }
 0x3e1   : > { %2187 = vmatpush.msrb.mxu1 %v5395_v14  ;;  %2152 = vmatpush.msra.mxu3 %v5398_v6  ;;  %7126 = vst [vmem:[#allocation70_spill] sm:$0xff] %v5401_v12  ;;  %v5413_v14 = vld [vmem:[#allocation4 + $0x88] sm:$0xff]  ;;  %v5416_v6 = vld [vmem:[#allocation8 + $0x98] sm:$0xff] }
 0x3e2   : > { %2133 = vmatpush.msra.mxu2 %v5401_v12  ;;  %7127 = vst [vmem:[#allocation56_spill] sm:$0xff] %v5404_v52  ;;  %2172 = vmatpush.msrb.mxu0 %v5404_v52  ;;  %v5419_v12 = vld [vmem:[#allocation8 + $0x100] sm:$0xff]  ;;  %v5422_v52 = vld [vmem:[#allocation8 + $0x78] sm:$0xff] }
 0x3e3   : > { %7128 = vst [vmem:[#allocation63_spill] sm:$0xff] %v5407_v54  ;;  %2188 = vmatpush.msrb.mxu1 %v5407_v54  ;;  %2153 = vmatpush.msra.mxu3 %v5410_v15  ;;  %v5425_v54 = vld [vmem:[#allocation4 + $0x70] sm:$0xff] }
 0x3e4   : > { %7129 = vst [vmem:[#allocation57_spill] sm:$0xff] %v5410_v15  ;;  %2134 = vmatpush.msra.mxu2 %v5413_v14  ;;  %2173 = vmatpush.msrb.mxu0 %v5416_v6  ;;  %v5428_v15 = vld [vmem:[#allocation8 + $0x80] sm:$0xff] }
 0x3e5   : > { %7130 = vst [vmem:[#allocation74_spill] sm:$0xff] %v5413_v14  ;;  %2189 = vmatpush.msrb.mxu1 %v5419_v12  ;;  %2154 = vmatpush.msra.mxu3 %v5422_v52  ;;  %v5431_v14 = vld [vmem:[#allocation8 + $0xe8] sm:$0xff] }
 0x3e6   : > { %7131 = vst [vmem:[#allocation60_spill] sm:$0xff] %v5416_v6  ;;  %2135 = vmatpush.msra.mxu2 %v5425_v54  ;;  %2174 = vmatpush.msrb.mxu0 %v5428_v15  ;;  %v5434_v6 = vld [vmem:[#allocation8 + $0x60] sm:$0xff] }
 0x3e7   : > { %7132 = vst [vmem:[#allocation67_spill] sm:$0xff] %v5419_v12  ;;  %2190 = vmatpush.msrb.mxu1 %v5431_v14  ;;  %2155 = vmatpush.msra.mxu3 %v5434_v6  ;;  %v5437_v12 = vld [vmem:[#allocation4 + $0x58] sm:$0xff] }
 0x3e8   : > { %7133 = vst [vmem:[#allocation61_spill] sm:$0xff] %v5422_v52  ;;  %2136 = vmatpush.msra.mxu2 %v5437_v12  ;;  %v5440_v52 = vld [vmem:[#allocation8 + $0x68] sm:$0xff] }
 0x3e9   : > { %7134 = vst [vmem:[#allocation78_spill] sm:$0xff] %v5425_v54  ;;  %2175 = vmatpush.msrb.mxu0 %v5440_v52  ;;  %v5443_v54 = vld [vmem:[#allocation8 + $0xd0] sm:$0xff] }
 0x3ea   : > { %7135 = vst [vmem:[#allocation18_spill] sm:$0xff] %v5428_v15  ;;  %2191 = vmatpush.msrb.mxu1 %v5443_v54  ;;  %v5446_v15 = vld [vmem:[#allocation8 + $0x48] sm:$0xff] }
 0x3eb   : > { %7136 = vst [vmem:[#allocation71_spill] sm:$0xff] %v5431_v14  ;;  %2156 = vmatpush.msra.mxu3 %v5446_v15  ;;  %v5449_v14 = vld [vmem:[#allocation4 + $0x40] sm:$0xff]  ;;  %2176 = vmatpush.msrb.mxu0 %v7019_v47  ;;  %v5469_v47 = vld [vmem:[#allocation4 + $0x10] sm:$0xff] }
 0x3ec   : > { %7137 = vst [vmem:[#allocation21_spill] sm:$0xff] %v5434_v6  ;;  %2137 = vmatpush.msra.mxu2 %v5449_v14  ;;  %v5453_v6 = vld [vmem:[#allocation8 + $0xb8] sm:$0xff] }
 0x3ed   : > { %7138 = vst [vmem:[#allocation65_spill] sm:$0xff] %v5437_v12  ;;  %2192 = vmatpush.msrb.mxu1 %v5453_v6  ;;  %v5456_v12 = vld [vmem:[#allocation8 + $0x30] sm:$0xff]  ;;  %2177 = vmatpush.msrb.mxu0 %v7023_v61  ;;  %v5477_v61 = vld [vmem:[#allocation6 + $0x168] sm:$0xff] }
 0x3ee   : > { %7139 = vst [vmem:[#allocation64_spill] sm:$0xff] %v5440_v52  ;;  %2157 = vmatpush.msra.mxu3 %v5456_v12  ;;  %v5459_v52 = vld [vmem:[#allocation4 + $0x28] sm:$0xff] }
 0x3ef   : > { %7140 = vst [vmem:[#allocation82_spill] sm:$0xff] %v5443_v54  ;;  %2138 = vmatpush.msra.mxu2 %v5459_v52  ;;  %2178 = vmatpush.msrb.mxu0 %v7028_v53  ;;  %v5489_v53 = vld [vmem:[#allocation6 + $0x150] sm:$0xff] }
 0x3f0   : > { %7141 = vst [vmem:[#allocation29_spill] sm:$0xff] %v5446_v15  ;;  %v5463_v15 = vld [vmem:[#allocation8 + $0xa0] sm:$0xff] }
 0x3f1   : > { %7142 = vst [vmem:[#allocation75_spill] sm:$0xff] %v5449_v14  ;;  %2193 = vmatpush.msrb.mxu1 %v5463_v15  ;;  %v5466_v14 = vld [vmem:[#allocation8 + $0x18] sm:$0xff]  ;;  %2139 = vmatpush.msra.mxu2 %v5469_v47 }
 0x3f2   : > { %7143 = vst [vmem:[#allocation23_spill] sm:$0xff] %v5453_v6  ;;  %2158 = vmatpush.msra.mxu3 %v5466_v14  ;;  %2140 = vmatmul.f32.vlgmr.msra.gmra.mxu2 %v5340_v1 }
 0x3f3   : > { %7144 = vst [vmem:[#allocation69_spill] sm:$0xff] %v5456_v12  ;;  %v5474_v12 = vld [vmem:[#allocation8 + $0x88] sm:$0xff]  ;;  %2245 = vmatpush.msrb.mxu2 %v5477_v61  ;;  %2179 = vmatpush.msrb.mxu0 %v7032_v21  ;;  %v5507_v21 = vld [vmem:[#allocation6 + $0x120] sm:$0xff] }
 0x3f4   : > { %7145 = vst [vmem:[#allocation26_spill] sm:$0xff] %v5459_v52  ;;  %2194 = vmatpush.msrb.mxu1 %v5474_v12 }
 0x3f5   : > { %7146 = vst [vmem:[#allocation86_spill] sm:$0xff] %v5463_v15  ;;  %v5480_v15 = vld [vmem:[#allocation8] sm:$0xff]  ;;  %2246 = vmatpush.msrb.mxu2 %v5489_v53  ;;  %2285 = vmatpush.msra.mxu0 %v7036_v48  ;;  %v5520_v48 = vld [vmem:[#allocation6 + $0x110] sm:$0xff] }
 0x3f6   : > { %7147 = vst [vmem:[#allocation79_spill] sm:$0xff] %v5466_v14  ;;  %2159 = vmatpush.msra.mxu3 %v5480_v15  ;;  %v5483_v14 = vld [vmem:[#allocation8 + $0x70] sm:$0xff] }
 0x3f7   : > { %7148 = vst [vmem:[#allocation72_spill] sm:$0xff] %v5469_v47  ;;  %2195 = vmatpush.msrb.mxu1 %v5483_v14  ;;  %v5486_v47 = vld [vmem:[#allocation6 + $0x170] sm:$0xff]  ;;  %2286 = vmatpush.msra.mxu0 %v7040_v26  ;;  %v5527_v26 = vld [vmem:[#allocation6 + $0xf8] sm:$0xff] }
 0x3f8   : > { %7149 = vst [vmem:[#allocation73_spill] sm:$0xff] %v5474_v12  ;;  %2265 = vmatpush.msrb.mxu3 %v5486_v47  ;;  %v5493_v12 = vld [vmem:[#allocation8 + $0x58] sm:$0xff] }
 0x3f9   : > { %7150 = vst [vmem:[#allocation83_spill] sm:$0xff] %v5477_v61  ;;  %2196 = vmatpush.msrb.mxu1 %v5493_v12  ;;  %v5496_v61 = vld [vmem:[#allocation6 + $0x158] sm:$0xff]  ;;  %2287 = vmatpush.msra.mxu0 %v7044_v44  ;;  %v5535_v44 = vld [vmem:[#allocation6 + $0xe0] sm:$0xff] }
 0x3fa   : > { %7151 = vst [vmem:[#allocation68_spill] sm:$0xff] %v5480_v15  ;;  %2266 = vmatpush.msrb.mxu3 %v5496_v61  ;;  %v5499_v15 = vld [vmem:[#allocation6 + $0x138] sm:$0xff] }
 0x3fb   : > { %7152 = vst [vmem:[#allocation77_spill] sm:$0xff] %v5483_v14  ;;  %2247 = vmatpush.msrb.mxu2 %v5499_v15  ;;  %2197 = vmatpush.msrb.mxu1 %v7038_v24  ;;  %v5523_v24 = vld [vmem:[#allocation6 + $0xf0] sm:$0xff] }
 0x3fc   : > { %7153 = vst [vmem:[#allocation81_spill] sm:$0xff] %v5486_v47  ;;  %v5504_v47 = vld [vmem:[#allocation6 + $0x140] sm:$0xff]  ;;  %2288 = vmatpush.msra.mxu0 %v7049_v33  ;;  %v5547_v33 = vld [vmem:[#allocation6 + $0xa8] sm:$0xff] }
 0x3fd   : > { %7154 = vst [vmem:[#allocation37_spill] sm:$0xff] %v5489_v53  ;;  %2267 = vmatpush.msrb.mxu3 %v5504_v47  ;;  %2248 = vmatpush.msrb.mxu2 %v5507_v21 }
 0x3fe   : > { %7155 = vst [vmem:[#allocation85_spill] sm:$0xff] %v5493_v12  ;;  %2198 = vmatpush.msrb.mxu1 %v7042_v55  ;;  %v5515_v12 = vld [vmem:[#allocation6 + $0x108] sm:$0xff]  ;;  %v5531_v55 = vld [vmem:[#allocation6 + $0xd8] sm:$0xff]  ;;  %2289 = vmatpush.msra.mxu0 %v7053_v37  ;;  %v5555_v37 = vld [vmem:[#allocation6 + $0x90] sm:$0xff] }
 0x3ff   : > { %7156 = vst [vmem:[#allocation96_spill] sm:$0xff] %v5496_v61  ;;  %v5512_v61 = vld [vmem:[#allocation6 + $0x128] sm:$0xff]  ;;  %2249 = vmatpush.msrb.mxu2 %v5515_v12 }
 0x400   : > { %7157 = vst [vmem:[#allocation32_spill] sm:$0xff] %v5499_v15  ;;  %2268 = vmatpush.msrb.mxu3 %v5512_v61  ;;  %2199 = vmatpush.msrb.mxu1 %v7046_v38  ;;  %v5539_v38 = vld [vmem:[#allocation6 + $0xc0] sm:$0xff] }
 0x401   : > { %7158 = vst [vmem:[#allocation97_spill] sm:$0xff] %v5504_v47  ;;  %2250 = vmatpush.msrb.mxu2 %v5523_v24  ;;  %2290 = vmatpush.msra.mxu0 %v7057_v35  ;;  %v5563_v35 = vld [vmem:[#allocation6 + $0x78] sm:$0xff] }
 0x402   : > { %7159 = vst [vmem:[#allocation98_spill] sm:$0xff] %v5507_v21  ;;  %2269 = vmatpush.msrb.mxu3 %v5520_v48  ;;  %2353 = vmatpush.msra.mxu1 %v5180_v50 }
 0x403   : > { %7160 = vst [vmem:[#allocation76_spill] sm:$0xff] %v5512_v61  ;;  %2251 = vmatpush.msrb.mxu2 %v5531_v55  ;;  %2291 = vmatpush.msra.mxu0 %v7061_v10  ;;  %v7175_v10 = vld [vmem:[#allocation103_spill] sm:$0xff] }
 0x404   : > { %7161 = vst [vmem:[#allocation99_spill] sm:$0xff] %v5515_v12  ;;  %2270 = vmatpush.msrb.mxu3 %v5527_v26  ;;  %2354 = vmatpush.msra.mxu1 %v5186_v62 }
 0x405   : > { %7162 = vst [vmem:[#allocation19_spill] sm:$0xff] %v5520_v48  ;;  %2252 = vmatpush.msrb.mxu2 %v5539_v38  ;;  %2292 = vmatpush.msra.mxu0 %v7065_v11  ;;  %v7176_v11 = vld [vmem:[#allocation40_spill] sm:$0xff] }
 0x406   : > { %7163 = vst [vmem:[#allocation11_spill] sm:$0xff] %v5523_v24  ;;  %2271 = vmatpush.msrb.mxu3 %v5535_v44  ;;  %2355 = vmatpush.msra.mxu1 %v5192_v63 }
 0x407   : > { %7164 = vst [vmem:[#allocation100_spill] sm:$0xff] %v5527_v26  ;;  %v5543_v26 = vld [vmem:[#allocation6 + $0xc8] sm:$0xff]  ;;  %2253 = vmatpush.msrb.mxu2 %v5547_v33  ;;  %2293 = vmatpush.msra.mxu0 %v7069_v31 }
 0x408   : > { %7165 = vst [vmem:[#allocation13_spill] sm:$0xff] %v5531_v55  ;;  %2272 = vmatpush.msrb.mxu3 %v5543_v26  ;;  %2356 = vmatpush.msra.mxu1 %v5198_v19  ;;  %v7178_v31 = vld [vmem:[#allocation104_spill] sm:$0xff] }
 0x409   : > { %7166 = vst [vmem:[#allocation22_spill] sm:$0xff] %v5535_v44  ;;  %v5551_v44 = vld [vmem:[#allocation6 + $0xb0] sm:$0xff]  ;;  %2254 = vmatpush.msrb.mxu2 %v5555_v37  ;;  %2294 = vmatpush.msra.mxu0 %v7073_v2  ;;  %v7180_v2 = vld [vmem:[#allocation84_spill] sm:$0xff] }
 0x40a   : > { %7167 = vst [vmem:[#allocation12_spill] sm:$0xff] %v5539_v38  ;;  %2273 = vmatpush.msrb.mxu3 %v5551_v44  ;;  %2357 = vmatpush.msra.mxu1 %v5204_v20 }
 0x40b   : > { %7168 = vst [vmem:[#allocation101_spill] sm:$0xff] %v5543_v26  ;;  %v5559_v26 = vld [vmem:[#allocation6 + $0x98] sm:$0xff]  ;;  %2255 = vmatpush.msrb.mxu2 %v5563_v35  ;;  %2295 = vmatpush.msra.mxu0 %v7077_v51  ;;  %v7183_v51 = vld [vmem:[#allocation36_spill] sm:$0xff] }
 0x40c   : > { %7169 = vst [vmem:[#allocation14_spill] sm:$0xff] %v5547_v33  ;;  %2274 = vmatpush.msrb.mxu3 %v5559_v26  ;;  %2358 = vmatpush.msra.mxu1 %v5210_v39 }
 0x40d   : > { %7170 = vst [vmem:[#allocation24_spill] sm:$0xff] %v5551_v44  ;;  %v5567_v44 = vld [vmem:[#allocation6 + $0x80] sm:$0xff]  ;;  %2256 = vmatpush.msrb.mxu2 %v7068_v49  ;;  %2296 = vmatpush.msra.mxu0 %v7081_v42  ;;  %v7177_v49 = vld [vmem:[#allocation34_spill] sm:$0xff] }
 0x40e   : > { %7171 = vst [vmem:[#allocation102_spill] sm:$0xff] %v5555_v37  ;;  %2275 = vmatpush.msrb.mxu3 %v5567_v44  ;;  %2359 = vmatpush.msra.mxu1 %v5216_v40  ;;  %v7185_v42 = vld [vmem:[#allocation107_spill] sm:$0xff] }
 0x40f   : > { %7172 = vst [vmem:[#allocation27_spill] sm:$0xff] %v5559_v26  ;;  %2257 = vmatpush.msrb.mxu2 %v7072_v43  ;;  %2297 = vmatpush.msra.mxu0 %v7178_v31  ;;  %v7179_v43 = vld [vmem:[#allocation105_spill] sm:$0xff] }
 0x410   : > { %7173 = vst [vmem:[#allocation91_spill] sm:$0xff] %v5563_v35  ;;  %2276 = vmatpush.msrb.mxu3 %v7074_v46  ;;  %2360 = vmatpush.msra.mxu1 %v5222_v17  ;;  %v7181_v46 = vld [vmem:[#allocation15_spill] sm:$0xff]  ;;  %v5597_v31 = vld [vmem:[#allocation4 + $0x30] sm:$0xff] }
 0x411   : > { %7174 = vst [vmem:[#allocation87_spill] sm:$0xff] %v5567_v44  ;;  %2258 = vmatpush.msrb.mxu2 %v7076_v25  ;;  %v7182_v25 = vld [vmem:[#allocation106_spill] sm:$0xff] }
 0x412   : > { %2277 = vmatpush.msrb.mxu3 %v7078_v60  ;;  %2361 = vmatpush.msra.mxu1 %v5228_v58  ;;  %v7184_v60 = vld [vmem:[#allocation44_spill] sm:$0xff]  ;;  %7189 = vst [vmem:[#allocation89_spill] sm:$0xff] %v5597_v31  ;;  %v5638_v26 = vld [vmem:[#allocation2 + $0xf] sm:$0x7] }
 0x413   : > { %2259 = vmatpush.msrb.mxu2 %v7175_v10  ;;  %2298 = vmatpush.msra.mxu0 %v7184_v60  ;;  %v7187_v10 = vld [vmem:[#allocation16_spill] sm:$0xff]  ;;  %v7193_v60 = vld [vmem:[#allocation39_spill] sm:$0xff] }
 0x414   : > { %2278 = vmatpush.msrb.mxu3 %v7082_v7  ;;  %2362 = vmatpush.msra.mxu1 %v7176_v11  ;;  %v7186_v7 = vld [vmem:[#allocation50_spill] sm:$0xff]  ;;  %v7207_v11 = vld [vmem:[#allocation17_spill] sm:$0xff] }
 0x415   : > { %2260 = vmatpush.msrb.mxu2 %v7179_v43  ;;  %2299 = vmatpush.msra.mxu0 %v7187_v10  ;;  %v7190_v43 = vld [vmem:[#allocation109_spill] sm:$0xff]  ;;  %v7195_v10 = vld [vmem:[#allocation52_spill] sm:$0xff] }
 0x416   : > { %2279 = vmatpush.msrb.mxu3 %v7177_v49  ;;  %2363 = vmatpush.msra.mxu1 %v7180_v2  ;;  %v7188_v49 = vld [vmem:[#allocation108_spill] sm:$0xff] }
 0x417   : > { %2373 = vmatpush.msra.mxu2 %v7181_v46  ;;  %2300 = vmatpush.msra.mxu0 %v7190_v43  ;;  %v7191_v46 = vld [vmem:[#allocation43_spill] sm:$0xff]  ;;  %v5615_v43 = vld [vmem:[#allocation4 + $0x98] sm:$0xff] }
 0x418   : > { %2280 = vmatpush.msrb.mxu3 %v7182_v25  ;;  %2364 = vmatpush.msra.mxu1 %v7183_v51  ;;  %v5602_v25 = vld [vmem:[#allocation4 + $0x18] sm:$0xff]  ;;  %7199 = vst [vmem:[#allocation93_spill] sm:$0xff] %v5615_v43 }
 0x419   : > { %2374 = vmatpush.msra.mxu2 %v7185_v42  ;;  %7192 = vst [vmem:[#allocation92_spill] sm:$0xff] %v5602_v25  ;;  %v5606_v42 = vld [vmem:[#allocation4] sm:$0xff] }
 0x41a   : > { %2365 = vmatpush.msra.mxu1 %v7186_v7  ;;  %7194 = vst [vmem:[#allocation25_spill] sm:$0xff] %v5606_v42  ;;  %v7197_v7 = vld [vmem:[#allocation42_spill] sm:$0xff] }
 0x41b   : > { %2375 = vmatpush.msra.mxu2 %v7188_v49  ;;  %v7196_v49 = vld [vmem:[#allocation47_spill] sm:$0xff] }
 0x41c   : > { %2366 = vmatpush.msra.mxu1 %v5597_v31  ;;  %v5612_v31 = vld [vmem:[#allocation4 + $0xb0] sm:$0xff] }
 0x41d   : > { %2376 = vmatpush.msra.mxu2 %v7191_v46  ;;  %7198 = vst [vmem:[#allocation88_spill] sm:$0xff] %v5612_v31 }
 0x41e   : > { %2367 = vmatpush.msra.mxu1 %v5602_v25  ;;  %v5618_v25 = vld [vmem:[#allocation4 + $0x80] sm:$0xff] }
 0x41f   : > { %2377 = vmatpush.msra.mxu2 %v7193_v60  ;;  %7200 = vst [vmem:[#allocation20_spill] sm:$0xff] %v5618_v25  ;;  %v5621_v60 = vld [vmem:[#allocation4 + $0x68] sm:$0xff] }
 0x420   : > { %2368 = vmatpush.msra.mxu1 %v5606_v42  ;;  %7201 = vst [vmem:[#allocation90_spill] sm:$0xff] %v5621_v60  ;;  %v5624_v42 = vld [vmem:[#allocation4 + $0x50] sm:$0xff] }
 0x421   : > { %2378 = vmatpush.msra.mxu2 %v7195_v10  ;;  %7202 = vst [vmem:[#allocation94_spill] sm:$0xff] %v5624_v42 }
 0x423   : > { %2379 = vmatpush.msra.mxu2 %v7196_v49 }
 0x425   : > { %2380 = vmatpush.msra.mxu2 %v7197_v7  ;;  %v5627_v7 = vld [vmem:[#allocation4 + $0x38] sm:$0xff] }
 0x426   : > { %7203 = vst [vmem:[#allocation28_spill] sm:$0xff] %v5627_v7 }
 0x427   : > { %2381 = vmatpush.msra.mxu2 %v5612_v31  ;;  %v5630_v31 = vld [vmem:[#allocation4 + $0x20] sm:$0xff] }
 0x428   : > { %7204 = vst [vmem:[#allocation103_spill] sm:$0xff] %v5630_v31 }
 0x429   : > { %2382 = vmatpush.msra.mxu2 %v5615_v43  ;;  %v5633_v43 = vld [vmem:[#allocation4 + $0x8] sm:$0xff] }
 0x42a   : > { %7205 = vst [vmem:[#allocation34_spill] sm:$0xff] %v5633_v43 }
 0x42b   : > { %2383 = vmatpush.msra.mxu2 %v5618_v25 }
 0x42d   : > { %2384 = vmatpush.msra.mxu2 %v5621_v60  ;;  %v7206_v60 = vld [vmem:[#allocation48_spill] sm:$0xff] }
 0x42f   : > { %2385 = vmatpush.msra.mxu2 %v5624_v42 }
 0x431   : > { %2386 = vmatpush.msra.mxu2 %v5627_v7 }
 0x433   : > { %2387 = vmatpush.msra.mxu2 %v5630_v31 }
 0x435   : > { %2388 = vmatpush.msra.mxu2 %v5633_v43 }
 0x44b   : > { %v1932_v49 = vpop.f32.mrf.mxu0 }
 0x450   : > { %v1892_v25 = vpop.f32.mrf.mxu2  ;;  %v1912_v7 = vpop.f32.mrf.mxu3 }
 0x455   : > { %v1993_v10 = vpop.f32.mrf.mxu1 }
 0x456   : > { %v1994_v46 = vadd.f32 %v1993_v10, %v7206_v60  ;;  %v2101_v31 = vpop.f32.mrf.mxu0 }
 0x458   : > { %v2036_v51 = vadd.f32 %v1994_v46, %v1892_v25 }
 0x45a   : > { %v3039_v2 = vmul.f32 -1.442695, %v2036_v51 }
 0x45b   : > { %v2013_v42 = vpop.f32.mrf.mxu2 }
 0x45c   : > { %3164 = vpow2.f32 %v3039_v2  ;;  %v2014_v58 = vadd.f32 %v2013_v42, %v7207_v11 }
 0x45d   : > { %v2121_v17 = vpop.f32.mrf.mxu1 }
 0x45e   : > { %v2037_v40 = vadd.f32 %v2014_v58, %v1912_v7  ;;  %v2208_v44 = vrot.slane %v2121_v17, 7 }
 0x460   : > { %v3040_v39 = vmul.f32 -1.442695, %v2037_v40  ;;  %v2209_v43 = vsel %vm674_vm14, %v2101_v31, %v2208_v44 }
 0x461   : > { %v2211_v35 = vadd.f32 %v2209_v43, %v5638_v26 }
 0x462   : > { %v3165_v20 = vpop.eup %3164  ;;  %3166 = vpow2.f32 %v3040_v39  ;;  %v2033_v39 = vpop.f32.mrf.mxu3 }
 0x463   : > { %v2044_v46 = vadd.f32 1.0, %v3165_v20  ;;  %v3041_v51 = vmul.f32 -1.442695, %v2211_v35 }
 0x465   : > { %3168 = vrcp.f32 %v2044_v46  ;;  %v2057_v10 = vand.u32 2147483648, %v2044_v46  ;;  %v2055_v44 = vand.u32 2147483647, %v2044_v46  ;;  %vm2051_vm11 = vweird.f32 %v2044_v46 }
 0x466   : > { %3170 = vpow2.f32 %v3041_v51  ;;  %v2076_v51 = vadd.f32 %v5291_v30, %v1932_v49 }
 0x467   : > { %v2058_v35 = vor.u32 1.1754944e-38, %v2057_v10  ;;  %vm2056_vm13 = vcmp.eq.f32.partialorder %v2055_v44, 8.507059e+37 }
 0x468   : > { %v3167_v2 = vpop.eup %3166 }
 0x469   : > { %v2045_v25 = vadd.f32 1.0, %v3167_v2 }
 0x46b   : > { %v3169_v42 = vpop.eup %3168  ;;  %3172 = vrcp.f32 %v2045_v25  ;;  %v2072_v19 = vand.u32 2147483648, %v2045_v25  ;;  %v2070_v38 = vand.u32 2147483647, %v2045_v25  ;;  %vm2066_vm0 = vweird.f32 %v2045_v25 }
 0x46c   : > { %v3171_v58 = vpop.eup %3170  ;;  %v2047_v17 = vmul.f32 %v3169_v42, %v2044_v46  ;;  %vm2052_vm10 = vweird.f32 %v3169_v42 }
 0x46d   : > { %v2215_v7 = vadd.f32 1.0, %v3171_v58  ;;  %vm2053_vm12 = vmor %vm2051_vm11, %vm2052_vm10  ;;  %v2034_v58 = vadd.f32 %v2033_v39, %v4487_v29  ;;  %v2073_v49 = vor.u32 1.1754944e-38, %v2072_v19  ;;  %vm2071_vm3 = vcmp.eq.f32.partialorder %v2070_v38, 8.507059e+37 }
 0x46e   : > { %v2048_v40 = vsub.f32 1.0, %v2047_v17 }
 0x46f   : > { %3174 = vrcp.f32 %v2215_v7  ;;  %v2225_v10 = vand.u32 2147483647, %v2215_v7  ;;  %v2227_v55 = vand.u32 2147483648, %v2215_v7  ;;  %vm2221_vm4 = vweird.f32 %v2215_v7 }
 0x470   : > { %v2049_v11 = vmul.f32 %v3169_v42, %v2048_v40 }
 0x471   : > { %v3173_v31 = vpop.eup %3172  ;;  %vm2226_vm6 = vcmp.eq.f32.partialorder %v2225_v10, 8.507059e+37  ;;  %v7213_v10 = vld [vmem:[#allocation95_spill] sm:$0xff] }
 0x472   : > { %v2062_v43 = vmul.f32 %v3173_v31, %v2045_v25  ;;  %v2050_v20 = vadd.f32 %v3169_v42, %v2049_v11  ;;  %vm2067_vm15 = vweird.f32 %v3173_v31 }
 0x473   : > { %vm2068_vm1 = vmor %vm2066_vm0, %vm2067_vm15 }
 0x474   : > { %v2063_v2 = vsub.f32 1.0, %v2062_v43  ;;  %v2054_v60 = vsel %vm2053_vm12, %v3169_v42, %v2050_v20  ;;  %v2228_v20 = vor.u32 1.1754944e-38, %v2227_v55 }
 0x475   : > { %v3175_v37 = vpop.eup %3174  ;;  %v2059_v17 = vsel %vm2056_vm13, %v2058_v35, %v2054_v60  ;;  %v2141_v43 = vpop.f32.mrf.mxu2 }
 0x476   : > { %v2077_v40 = vmul.f32 %v2076_v51, %v2059_v17  ;;  %v2217_v33 = vmul.f32 %v3175_v37, %v2215_v7  ;;  %v2064_v63 = vmul.f32 %v3173_v31, %v2063_v2  ;;  %vm2222_vm2 = vweird.f32 %v3175_v37  ;;  %v7209_v17 = vld [vmem:[#allocation58_spill] sm:$0xff] }
 0x477   : > { %vm2223_vm5 = vmor %vm2221_vm4, %vm2222_vm2 }
 0x478   : > { %v2078_v62 = vadd.f32 %v2077_v40, %v2034_v58  ;;  %v2218_v11 = vsub.f32 1.0, %v2217_v33  ;;  %v2065_v46 = vadd.f32 %v3173_v31, %v2064_v63  ;;  %v2231_v63 = vadd.f32 %v5083_v45, %v2141_v43  ;;  %v7210_v40 = vld [vmem:[#allocation62_spill] sm:$0xff] }
 0x479   : > { %v7217_v43 = vld [vmem:[#allocation70_spill] sm:$0xff] }
 0x47a   : > { %3176 = vtanh.f32 %v2078_v62  ;;  %v2219_v42 = vmul.f32 %v3175_v37, %v2218_v11  ;;  %v2069_v44 = vsel %vm2068_vm1, %v3173_v31, %v2065_v46  ;;  %v2234_v62 = vrot.slane %v5638_v26, 2  ;;  %v7211_v11 = vld [vmem:[#allocation45_spill] sm:$0xff]  ;;  %v7212_v46 = vld [vmem:[#allocation55_spill] sm:$0xff] }
 0x47b   : > { %v2074_v39 = vsel %vm2071_vm3, %v2073_v49, %v2069_v44  ;;  %v7214_v49 = vld [vmem:[#allocation66_spill] sm:$0xff]  ;;  %v7216_v44 = vld [vmem:[#allocation59_spill] sm:$0xff] }
 0x47c   : > { %v2220_v60 = vadd.f32 %v3175_v37, %v2219_v42  ;;  %v2080_v25 = vsub.f32 1.0, %v2074_v39  ;;  %v2082_v31 = vmul.f32 %v2074_v39, %v5298_v32  ;;  %v7215_v42 = vld [vmem:[#allocation49_spill] sm:$0xff]  ;;  %v7219_v39 = vld [vmem:[#allocation54_spill] sm:$0xff] }
 0x47e   : > { %v2224_v35 = vsel %vm2223_vm5, %v3175_v37, %v2220_v60  ;;  %v7218_v60 = vld [vmem:[#allocation53_spill] sm:$0xff] }
 0x47f   : > { %v2229_v33 = vsel %vm2226_vm6, %v2228_v20, %v2224_v35  ;;  %v7220_v20 = vld [vmem:[#allocation63_spill] sm:$0xff]  ;;  %v7221_v35 = vld [vmem:[#allocation74_spill] sm:$0xff] }
 0x480   : > { %v3177_v51 = vpop.eup %3176  ;;  %v2232_v2 = vmul.f32 %v2231_v63, %v2229_v33  ;;  %v2239_v7 = vrot.slane %v2229_v33, 1  ;;  %v7222_v63 = vld [vmem:[#allocation56_spill] sm:$0xff]  ;;  %v7223_v33 = vld [vmem:[#allocation57_spill] sm:$0xff] }
 0x481   : > { %v2081_v19 = vmul.f32 %v3177_v51, %v2080_v25  ;;  %v7224_v25 = vld [vmem:[#allocation67_spill] sm:$0xff]  ;;  %v7225_v51 = vld [vmem:[#allocation78_spill] sm:$0xff] }
 0x482   : > { %v2236_v58 = vadd.f32 %v2234_v62, %v2232_v2  ;;  %v2241_v45 = vsub.f32 1.0, %v2239_v7  ;;  %v2243_v55 = vmul.f32 %v2239_v7, %v5340_v1  ;;  %v7208_v1 = vld [vmem:[#allocation51_spill] sm:$0xff]  ;;  %v7226_v2 = vld [vmem:[#allocation60_spill] sm:$0xff]  ;;  %v7227_v62 = vld [vmem:[#allocation61_spill] sm:$0xff] }
 0x483   : > { %v5647_v38 = vadd.f32 %v2082_v31, %v2081_v19  ;;  %v7228_v19 = vld [vmem:[#allocation71_spill] sm:$0xff]  ;;  %v7229_v31 = vld [vmem:[#allocation65_spill] sm:$0xff] }
 0x484   : > { %3178 = vtanh.f32 %v2236_v58  ;;  %v7230_v58 = vld [vmem:[#allocation18_spill] sm:$0xff]  ;;  %v7231_v7 = vld [vmem:[#allocation21_spill] sm:$0xff] }
 0x485   : > { %2160 = vmatmul.f32.vlgmr.msra.gmra.mxu3 %v5647_v38  ;;  %2180 = vmatmul.f32.vlgmr.msrb.gmra.mxu0 %v5647_v38 }
 0x486   : > { %2200 = vmatmul.f32.vlgmr.msrb.gmra.mxu1 %v5647_v38  ;;  %2393 = vmatpush.msra.mxu3 %v5303_v3 }
 0x487   : > { %2413 = vmatpush.msrb.mxu0 %v5306_v4  ;;  %2433 = vmatpush.msrb.mxu1 %v5309_v5 }
 0x488   : > { %2394 = vmatpush.msra.mxu3 %v5312_v18 }
 0x489   : > { %2414 = vmatpush.msrb.mxu0 %v5315_v41  ;;  %2434 = vmatpush.msrb.mxu1 %v5318_v23 }
 0x48a   : > { %v3179_v32 = vpop.eup %3178  ;;  %2395 = vmatpush.msra.mxu3 %v5321_v59 }
 0x48b   : > { %v2242_v26 = vmul.f32 %v3179_v32, %v2241_v45  ;;  %2415 = vmatpush.msrb.mxu0 %v5324_v0  ;;  %2435 = vmatpush.msrb.mxu1 %v5327_v36  ;;  %v7232_v45 = vld [vmem:[#allocation75_spill] sm:$0xff]  ;;  %v7233_v32 = vld [vmem:[#allocation64_spill] sm:$0xff] }
 0x48c   : > { %2396 = vmatpush.msra.mxu3 %v5331_v56 }
 0x48d   : > { %v5663_v37 = vadd.f32 %v2243_v55, %v2242_v26  ;;  %2416 = vmatpush.msrb.mxu0 %v5334_v28  ;;  %2436 = vmatpush.msrb.mxu1 %v5337_v27  ;;  %v7234_v26 = vld [vmem:[#allocation29_spill] sm:$0xff] }
 0x48e   : > { %2397 = vmatpush.msra.mxu3 %v5342_v8  ;;  %v5709_v55 = vld [vmem:[#allocation8 + $0x50] sm:$0xff] }
 0x48f   : > { %2261 = vmatmul.f32.vlgmr.msrb.gmra.mxu2 %v5663_v37  ;;  %2281 = vmatmul.f32.vlgmr.msrb.gmra.mxu3 %v5663_v37  ;;  %7235 = vst [vmem:[#allocation104_spill] sm:$0xff] %v5709_v55 }
 0x490   : > { %2301 = vmatmul.f32.vlgmr.msra.gmra.mxu0 %v5663_v37  ;;  %2369 = vmatmul.f32.vlgmr.msra.gmra.mxu1 %v5663_v37 }
 0x491   : > { %2398 = vmatpush.msra.mxu3 %v5355_v9  ;;  %2417 = vmatpush.msrb.mxu0 %v5345_v22 }
 0x492   : > { %2453 = vmatpush.msrb.mxu2 %v5358_v13  ;;  %2437 = vmatpush.msrb.mxu1 %v5348_v16 }
 0x493   : > { %2399 = vmatpush.msra.mxu3 %v5367_v34  ;;  %2418 = vmatpush.msrb.mxu0 %v5361_v57 }
 0x494   : > { %2454 = vmatpush.msrb.mxu2 %v7208_v1  ;;  %2438 = vmatpush.msrb.mxu1 %v7209_v17 }
 0x495   : > { %2400 = vmatpush.msra.mxu3 %v7210_v40  ;;  %2419 = vmatpush.msrb.mxu0 %v7211_v11 }
 0x496   : > { %2455 = vmatpush.msrb.mxu2 %v7212_v46  ;;  %2439 = vmatpush.msrb.mxu1 %v7213_v10 }
 0x497   : > { %2401 = vmatpush.msra.mxu3 %v7214_v49  ;;  %2389 = vmatmul.f32.vlgmr.msra.gmra.mxu2 %v5663_v37 }
 0x498   : > { %2420 = vmatpush.msrb.mxu0 %v7215_v42  ;;  %2456 = vmatpush.msrb.mxu2 %v7216_v44 }
 0x499   : > { %2402 = vmatpush.msra.mxu3 %v7217_v43  ;;  %2440 = vmatpush.msrb.mxu1 %v7218_v60 }
 0x49a   : > { %2421 = vmatpush.msrb.mxu0 %v7219_v39  ;;  %2457 = vmatpush.msrb.mxu2 %v7220_v20 }
 0x49b   : > { %2403 = vmatpush.msra.mxu3 %v7221_v35  ;;  %2441 = vmatpush.msrb.mxu1 %v7222_v63 }
 0x49c   : > { %2422 = vmatpush.msrb.mxu0 %v7223_v33  ;;  %2458 = vmatpush.msrb.mxu2 %v7224_v25 }
 0x49d   : > { %2404 = vmatpush.msra.mxu3 %v7225_v51  ;;  %2442 = vmatpush.msrb.mxu1 %v7226_v2 }
 0x49e   : > { %2423 = vmatpush.msrb.mxu0 %v7227_v62  ;;  %2459 = vmatpush.msrb.mxu2 %v7228_v19  ;;  %v7236_v19 = vld [vmem:[#allocation69_spill] sm:$0xff] }
 0x49f   : > { %2405 = vmatpush.msra.mxu3 %v7229_v31  ;;  %2443 = vmatpush.msrb.mxu1 %v7230_v58  ;;  %v7237_v31 = vld [vmem:[#allocation86_spill] sm:$0xff] }
 0x4a0   : > { %2424 = vmatpush.msrb.mxu0 %v7231_v7  ;;  %2460 = vmatpush.msrb.mxu2 %v5443_v54  ;;  %v7238_v7 = vld [vmem:[#allocation72_spill] sm:$0xff]  ;;  %v5715_v54 = vld [vmem:[#allocation8 + $0x38] sm:$0xff] }
 0x4a1   : > { %2406 = vmatpush.msra.mxu3 %v7232_v45  ;;  %2444 = vmatpush.msrb.mxu1 %v7233_v32  ;;  %7239 = vst [vmem:[#allocation105_spill] sm:$0xff] %v5715_v54  ;;  %v7240_v45 = vld [vmem:[#allocation79_spill] sm:$0xff] }
 0x4a2   : > { %2425 = vmatpush.msrb.mxu0 %v7234_v26  ;;  %2461 = vmatpush.msrb.mxu2 %v5453_v6  ;;  %v7241_v6 = vld [vmem:[#allocation83_spill] sm:$0xff]  ;;  %v7243_v26 = vld [vmem:[#allocation68_spill] sm:$0xff] }
 0x4a3   : > { %2407 = vmatpush.msra.mxu3 %v5459_v52  ;;  %2445 = vmatpush.msrb.mxu1 %v5709_v55  ;;  %v7242_v52 = vld [vmem:[#allocation73_spill] sm:$0xff]  ;;  %v5723_v55 = vld [vmem:[#allocation8 + $0x20] sm:$0xff] }
 0x4a4   : > { %2426 = vmatpush.msrb.mxu0 %v7236_v19  ;;  %2462 = vmatpush.msrb.mxu2 %v7237_v31  ;;  %7244 = vst [vmem:[#allocation15_spill] sm:$0xff] %v5723_v55  ;;  %v7245_v31 = vld [vmem:[#allocation81_spill] sm:$0xff] }
 0x4a5   : > { %2408 = vmatpush.msra.mxu3 %v7238_v7  ;;  %2446 = vmatpush.msrb.mxu1 %v5715_v54  ;;  %v5729_v7 = vld [vmem:[#allocation8 + $0x8] sm:$0xff]  ;;  %v5870_v54 = vld [vmem:[#allocation2 + $0x12] sm:$0x7] }
 0x4a6   : > { %2409 = vmatmul.f32.vlgmr.msra.gmra.mxu3 %v5663_v37  ;;  %2427 = vmatpush.msrb.mxu0 %v7240_v45  ;;  %7246 = vst [vmem:[#allocation106_spill] sm:$0xff] %v5729_v7 }
 0x4a7   : > { %2514 = vmatpush.msrb.mxu3 %v7241_v6  ;;  %2463 = vmatpush.msrb.mxu2 %v7242_v52  ;;  %v7247_v6 = vld [vmem:[#allocation85_spill] sm:$0xff]  ;;  %v7248_v52 = vld [vmem:[#allocation96_spill] sm:$0xff] }
 0x4a8   : > { %2428 = vmatpush.msrb.mxu0 %v7243_v26  ;;  %2447 = vmatpush.msrb.mxu1 %v5723_v55  ;;  %v5735_v26 = vld [vmem:[#allocation6 + $0x178] sm:$0xff] }
 0x4a9   : > { %2515 = vmatpush.msrb.mxu3 %v5489_v53  ;;  %2464 = vmatpush.msrb.mxu2 %v5483_v14  ;;  %7249 = vst [vmem:[#allocation44_spill] sm:$0xff] %v5735_v26  ;;  %v5739_v53 = vld [vmem:[#allocation8 + $0x40] sm:$0xff] }
 0x4aa   : > { %2534 = vmatpush.msra.mxu0 %v7245_v31  ;;  %2448 = vmatpush.msrb.mxu1 %v5729_v7  ;;  %7250 = vst [vmem:[#allocation107_spill] sm:$0xff] %v5739_v53  ;;  %v5743_v14 = vld [vmem:[#allocation6 + $0x160] sm:$0xff]  ;;  %v7318_v31 = vld [vmem:[#allocation17_spill] sm:$0xff] }
 0x4ab   : > { %2516 = vmatpush.msrb.mxu3 %v5499_v15  ;;  %2465 = vmatpush.msrb.mxu2 %v7247_v6  ;;  %7251 = vst [vmem:[#allocation16_spill] sm:$0xff] %v5743_v14  ;;  %v5747_v6 = vld [vmem:[#allocation8 + $0x28] sm:$0xff] }
 0x4ac   : > { %2535 = vmatpush.msra.mxu0 %v7248_v52  ;;  %2554 = vmatpush.msra.mxu1 %v5735_v26  ;;  %7252 = vst [vmem:[#allocation108_spill] sm:$0xff] %v5747_v6  ;;  %v5751_v15 = vld [vmem:[#allocation6 + $0x148] sm:$0xff] }
 0x4ad   : > { %2517 = vmatpush.msrb.mxu3 %v5507_v21  ;;  %2466 = vmatpush.msrb.mxu2 %v5739_v53  ;;  %7253 = vst [vmem:[#allocation109_spill] sm:$0xff] %v5751_v15  ;;  %v5755_v53 = vld [vmem:[#allocation8 + $0x10] sm:$0xff]  ;;  %v7317_v26 = vld [vmem:[#allocation48_spill] sm:$0xff] }
 0x4ae   : > { %2536 = vmatpush.msra.mxu0 %v5504_v47  ;;  %2555 = vmatpush.msra.mxu1 %v5743_v14  ;;  %7254 = vst [vmem:[#allocation51_spill] sm:$0xff] %v5755_v53  ;;  %v5761_v21 = vld [vmem:[#allocation6 + $0x130] sm:$0xff] }
 0x4af   : > { %2518 = vmatpush.msrb.mxu3 %v5515_v12  ;;  %2467 = vmatpush.msrb.mxu2 %v5747_v6  ;;  %v7255_v12 = vld [vmem:[#allocation13_spill] sm:$0xff]  ;;  %7256 = vst [vmem:[#allocation58_spill] sm:$0xff] %v5761_v21  ;;  %v7257_v6 = vld [vmem:[#allocation100_spill] sm:$0xff] }
 0x4b0   : > { %2537 = vmatpush.msra.mxu0 %v5512_v61  ;;  %2556 = vmatpush.msra.mxu1 %v5751_v15  ;;  %v7258_v61 = vld [vmem:[#allocation35_spill] sm:$0xff]  ;;  %v7259_v15 = vld [vmem:[#allocation12_spill] sm:$0xff]  ;;  %v7306_v47 = vld [vmem:[#allocation25_spill] sm:$0xff] }
 0x4b1   : > { %2519 = vmatpush.msrb.mxu3 %v5523_v24  ;;  %2468 = vmatpush.msrb.mxu2 %v5755_v53  ;;  %v5767_v24 = vld [vmem:[#allocation6 + $0x118] sm:$0xff]  ;;  %v7310_v14 = vld [vmem:[#allocation93_spill] sm:$0xff] }
 0x4b2   : > { %2538 = vmatpush.msra.mxu0 %v5520_v48  ;;  %2557 = vmatpush.msra.mxu1 %v5761_v21  ;;  %7260 = vst [vmem:[#allocation62_spill] sm:$0xff] %v5767_v24  ;;  %v7261_v53 = vld [vmem:[#allocation22_spill] sm:$0xff]  ;;  %v7262_v48 = vld [vmem:[#allocation31_spill] sm:$0xff]  ;;  %v7265_v21 = vld [vmem:[#allocation101_spill] sm:$0xff] }
 0x4b3   : > { %2622 = vmatpush.msra.mxu2 %v5180_v50  ;;  %2520 = vmatpush.msrb.mxu3 %v7255_v12  ;;  %v7263_v50 = vld [vmem:[#allocation14_spill] sm:$0xff]  ;;  %v5773_v12 = vld [vmem:[#allocation6 + $0x100] sm:$0xff] }
 0x4b4   : > { %2539 = vmatpush.msra.mxu0 %v7257_v6  ;;  %2558 = vmatpush.msra.mxu1 %v5767_v24  ;;  %7264 = vst [vmem:[#allocation45_spill] sm:$0xff] %v5773_v12  ;;  %v7266_v6 = vld [vmem:[#allocation38_spill] sm:$0xff]  ;;  %v7269_v24 = vld [vmem:[#allocation24_spill] sm:$0xff] }
 0x4b5   : > { %2623 = vmatpush.msra.mxu2 %v7258_v61  ;;  %2521 = vmatpush.msrb.mxu3 %v7259_v15  ;;  %v7267_v61 = vld [vmem:[#allocation102_spill] sm:$0xff]  ;;  %v5779_v15 = vld [vmem:[#allocation6 + $0xe8] sm:$0xff] }
 0x4b6   : > { %2540 = vmatpush.msra.mxu0 %v7261_v53  ;;  %2559 = vmatpush.msra.mxu1 %v5773_v12  ;;  %7268 = vst [vmem:[#allocation55_spill] sm:$0xff] %v5779_v15  ;;  %v7270_v53 = vld [vmem:[#allocation33_spill] sm:$0xff]  ;;  %v7273_v12 = vld [vmem:[#allocation27_spill] sm:$0xff] }
 0x4b7   : > { %2624 = vmatpush.msra.mxu2 %v7262_v48  ;;  %2522 = vmatpush.msrb.mxu3 %v7263_v50  ;;  %v7271_v48 = vld [vmem:[#allocation91_spill] sm:$0xff]  ;;  %v5785_v50 = vld [vmem:[#allocation6 + $0xd0] sm:$0xff] }
 0x4b8   : > { %2541 = vmatpush.msra.mxu0 %v7265_v21  ;;  %2560 = vmatpush.msra.mxu1 %v5779_v15  ;;  %7272 = vst [vmem:[#allocation95_spill] sm:$0xff] %v5785_v50  ;;  %v7274_v21 = vld [vmem:[#allocation41_spill] sm:$0xff]  ;;  %v7303_v15 = vld [vmem:[#allocation39_spill] sm:$0xff] }
 0x4b9   : > { %2625 = vmatpush.msra.mxu2 %v7266_v6  ;;  %2523 = vmatpush.msrb.mxu3 %v7267_v61  ;;  %v5790_v6 = vld [vmem:[#allocation6 + $0x60] sm:$0xff]  ;;  %v5793_v61 = vld [vmem:[#allocation6 + $0xb8] sm:$0xff] }
 0x4ba   : > { %2542 = vmatpush.msra.mxu0 %v7269_v24  ;;  %2561 = vmatpush.msra.mxu1 %v5785_v50  ;;  %7275 = vst [vmem:[#allocation66_spill] sm:$0xff] %v5790_v6  ;;  %v7277_v24 = vld [vmem:[#allocation87_spill] sm:$0xff] }
 0x4bb   : > { %2626 = vmatpush.msra.mxu2 %v7270_v53  ;;  %2524 = vmatpush.msrb.mxu3 %v7271_v48  ;;  %7276 = vst [vmem:[#allocation49_spill] sm:$0xff] %v5793_v61  ;;  %v7278_v53 = vld [vmem:[#allocation80_spill] sm:$0xff]  ;;  %v5801_v50 = vld [vmem:[#allocation6 + $0xa0] sm:$0xff] }
 0x4bc   : > { %2543 = vmatpush.msra.mxu0 %v7273_v12  ;;  %2562 = vmatpush.msra.mxu1 %v5793_v61  ;;  %v5798_v48 = vld [vmem:[#allocation6 + $0x48] sm:$0xff]  ;;  %7280 = vst [vmem:[#allocation70_spill] sm:$0xff] %v5801_v50  ;;  %v5808_v12 = vld [vmem:[#allocation6 + $0x30] sm:$0xff]  ;;  %v5838_v61 = vld [vmem:[#allocation6 + $0x40] sm:$0xff] }
 0x4bd   : > { %2627 = vmatpush.msra.mxu2 %v7274_v21  ;;  %2525 = vmatpush.msrb.mxu3 %v5790_v6  ;;  %7279 = vst [vmem:[#allocation59_spill] sm:$0xff] %v5798_v48  ;;  %v5804_v21 = vld [vmem:[#allocation6 + $0x68] sm:$0xff]  ;;  %v7282_v6 = vld [vmem:[#allocation30_spill] sm:$0xff] }
 0x4be   : > { %2544 = vmatpush.msra.mxu0 %v7277_v24  ;;  %2563 = vmatpush.msra.mxu1 %v5801_v50  ;;  %7281 = vst [vmem:[#allocation53_spill] sm:$0xff] %v5804_v21  ;;  %v5811_v24 = vld [vmem:[#allocation6 + $0x88] sm:$0xff]  ;;  %v5818_v50 = vld [vmem:[#allocation6 + $0x18] sm:$0xff] }
 0x4bf   : > { %2628 = vmatpush.msra.mxu2 %v7278_v53  ;;  %2526 = vmatpush.msrb.mxu3 %v5798_v48  ;;  %7283 = vst [vmem:[#allocation54_spill] sm:$0xff] %v5808_v12  ;;  %v5814_v53 = vld [vmem:[#allocation6 + $0x50] sm:$0xff]  ;;  %v7286_v48 = vld [vmem:[#allocation46_spill] sm:$0xff] }
 0x4c0   : > { %2545 = vmatpush.msra.mxu0 %v5804_v21  ;;  %7284 = vst [vmem:[#allocation56_spill] sm:$0xff] %v5811_v24  ;;  %2564 = vmatpush.msra.mxu1 %v5811_v24  ;;  %v5821_v21 = vld [vmem:[#allocation6 + $0x70] sm:$0xff]  ;;  %v5828_v24 = vld [vmem:[#allocation6] sm:$0xff] }
 0x4c1   : > { %2629 = vmatpush.msra.mxu2 %v7282_v6  ;;  %2527 = vmatpush.msrb.mxu3 %v5808_v12  ;;  %7285 = vst [vmem:[#allocation57_spill] sm:$0xff] %v5814_v53  ;;  %v5824_v6 = vld [vmem:[#allocation6 + $0x38] sm:$0xff]  ;;  %v7290_v12 = vld [vmem:[#allocation40_spill] sm:$0xff] }
 0x4c2   : > { %2546 = vmatpush.msra.mxu0 %v5814_v53  ;;  %7287 = vst [vmem:[#allocation60_spill] sm:$0xff] %v5818_v50  ;;  %2565 = vmatpush.msra.mxu1 %v5821_v21  ;;  %v5831_v53 = vld [vmem:[#allocation6 + $0x58] sm:$0xff] }
 0x4c3   : > { %2630 = vmatpush.msra.mxu2 %v7286_v48  ;;  %2528 = vmatpush.msrb.mxu3 %v5818_v50  ;;  %7288 = vst [vmem:[#allocation35_spill] sm:$0xff] %v5821_v21  ;;  %v3507_v48 = vld [vmem:[#allocation4 + $0x170] sm:$0xff]  ;;  %v5834_v50 = vld [vmem:[#allocation6 + $0x20] sm:$0xff]  ;;  %v7294_v21 = vld [vmem:[#allocation84_spill] sm:$0xff] }
 0x4c4   : > { %7289 = vst [vmem:[#allocation31_spill] sm:$0xff] %v5824_v6  ;;  %2547 = vmatpush.msra.mxu0 %v5824_v6  ;;  %2566 = vmatpush.msra.mxu1 %v5831_v53  ;;  %v5841_v6 = vld [vmem:[#allocation6 + $0x8] sm:$0xff] }
 0x4c5   : > { %2631 = vmatpush.msra.mxu2 %v7290_v12  ;;  %7291 = vst [vmem:[#allocation38_spill] sm:$0xff] %v5828_v24  ;;  %2529 = vmatpush.msrb.mxu3 %v5828_v24  ;;  %v3510_v12 = vld [vmem:[#allocation4 + $0x158] sm:$0xff]  ;;  %v7297_v24 = vld [vmem:[#allocation36_spill] sm:$0xff] }
 0x4c6   : > { %7292 = vst [vmem:[#allocation33_spill] sm:$0xff] %v5831_v53  ;;  %2548 = vmatpush.msra.mxu0 %v5834_v50  ;;  %2567 = vmatpush.msra.mxu1 %v5838_v61  ;;  %v5845_v53 = vld [vmem:[#allocation6 + $0x28] sm:$0xff] }
 0x4c7   : > { %2642 = vmatpush.msra.mxu3 %v3507_v48  ;;  %7293 = vst [vmem:[#allocation41_spill] sm:$0xff] %v5834_v50  ;;  %2632 = vmatpush.msra.mxu2 %v7294_v21  ;;  %v3513_v48 = vld [vmem:[#allocation4 + $0x140] sm:$0xff]  ;;  %v7299_v50 = vld [vmem:[#allocation50_spill] sm:$0xff]  ;;  %v5849_v21 = vld [vmem:[#allocation6 + $0x10] sm:$0xff] }
 0x4c8   : > { %7295 = vst [vmem:[#allocation80_spill] sm:$0xff] %v5838_v61  ;;  %2549 = vmatpush.msra.mxu0 %v5841_v6  ;;  %2568 = vmatpush.msra.mxu1 %v5845_v53  ;;  %v7301_v61 = vld [vmem:[#allocation43_spill] sm:$0xff] }
 0x4c9   : > { %2643 = vmatpush.msra.mxu3 %v3510_v12  ;;  %7296 = vst [vmem:[#allocation30_spill] sm:$0xff] %v5841_v6  ;;  %2633 = vmatpush.msra.mxu2 %v7297_v24  ;;  %v7302_v12 = vld [vmem:[#allocation89_spill] sm:$0xff]  ;;  %v7304_v6 = vld [vmem:[#allocation92_spill] sm:$0xff] }
 0x4ca   : > { %7298 = vst [vmem:[#allocation46_spill] sm:$0xff] %v5845_v53  ;;  %2569 = vmatpush.msra.mxu1 %v5849_v21  ;;  %v7305_v24 = vld [vmem:[#allocation52_spill] sm:$0xff]  ;;  %v7307_v53 = vld [vmem:[#allocation47_spill] sm:$0xff] }
 0x4cb   : > { %2644 = vmatpush.msra.mxu3 %v3513_v48  ;;  %2634 = vmatpush.msra.mxu2 %v7299_v50  ;;  %7300 = vst [vmem:[#allocation40_spill] sm:$0xff] %v5849_v21  ;;  %v7308_v48 = vld [vmem:[#allocation42_spill] sm:$0xff]  ;;  %v7309_v50 = vld [vmem:[#allocation88_spill] sm:$0xff] }
 0x4cc   : > { %v7311_v21 = vld [vmem:[#allocation20_spill] sm:$0xff] }
 0x4cd   : > { %2645 = vmatpush.msra.mxu3 %v7301_v61  ;;  %2635 = vmatpush.msra.mxu2 %v7302_v12  ;;  %v7312_v61 = vld [vmem:[#allocation90_spill] sm:$0xff] }
 0x4ce   : > { %v7313_v12 = vld [vmem:[#allocation94_spill] sm:$0xff] }
 0x4cf   : > { %2646 = vmatpush.msra.mxu3 %v7303_v15  ;;  %2636 = vmatpush.msra.mxu2 %v7304_v6  ;;  %v7314_v15 = vld [vmem:[#allocation28_spill] sm:$0xff]  ;;  %v7315_v6 = vld [vmem:[#allocation103_spill] sm:$0xff] }
 0x4d1   : > { %2647 = vmatpush.msra.mxu3 %v7305_v24  ;;  %2637 = vmatpush.msra.mxu2 %v7306_v47  ;;  %v7316_v24 = vld [vmem:[#allocation34_spill] sm:$0xff] }
 0x4d3   : > { %2648 = vmatpush.msra.mxu3 %v7307_v53 }
 0x4d5   : > { %2649 = vmatpush.msra.mxu3 %v7308_v48 }
 0x4d7   : > { %2650 = vmatpush.msra.mxu3 %v7309_v50 }
 0x4d9   : > { %2651 = vmatpush.msra.mxu3 %v7310_v14 }
 0x4db   : > { %2652 = vmatpush.msra.mxu3 %v7311_v21 }
 0x4dd   : > { %2653 = vmatpush.msra.mxu3 %v7312_v61 }
 0x4df   : > { %2654 = vmatpush.msra.mxu3 %v7313_v12 }
 0x4e1   : > { %2655 = vmatpush.msra.mxu3 %v7314_v15 }
 0x4e3   : > { %2656 = vmatpush.msra.mxu3 %v7315_v6 }
 0x4e5   : > { %2657 = vmatpush.msra.mxu3 %v7316_v24 }
 0x502   : > { %v2181_v7 = vpop.f32.mrf.mxu0 }
 0x503   : > { %v2201_v53 = vpop.f32.mrf.mxu1 }
 0x508   : > { %v2161_v47 = vpop.f32.mrf.mxu3 }
 0x50d   : > { %v2370_v6 = vpop.f32.mrf.mxu1 }
 0x512   : > { %v2262_v52 = vpop.f32.mrf.mxu2  ;;  %v2282_v48 = vpop.f32.mrf.mxu3 }
 0x513   : > { %v2263_v50 = vadd.f32 %v2262_v52, %v7317_v26  ;;  %v2283_v14 = vadd.f32 %v2282_v48, %v7318_v31 }
 0x515   : > { %v2305_v21 = vadd.f32 %v2263_v50, %v2161_v47  ;;  %v2306_v55 = vadd.f32 %v2283_v14, %v2181_v7 }
 0x517   : > { %v3042_v61 = vmul.f32 -1.442695, %v2305_v21  ;;  %v3043_v45 = vmul.f32 -1.442695, %v2306_v55 }
 0x519   : > { %3180 = vpow2.f32 %v3042_v61 }
 0x51a   : > { %3182 = vpow2.f32 %v3043_v45  ;;  %v2390_v12 = vpop.f32.mrf.mxu2 }
 0x51b   : > { %v2477_v15 = vrot.slane %v2390_v12, 7 }
 0x51d   : > { %v2478_v24 = vsel %vm674_vm14, %v2370_v6, %v2477_v15 }
 0x51e   : > { %v2480_v19 = vadd.f32 %v2478_v24, %v5870_v54 }
 0x51f   : > { %v3181_v32 = vpop.eup %3180 }
 0x520   : > { %v3183_v52 = vpop.eup %3182  ;;  %v2313_v26 = vadd.f32 1.0, %v3181_v32  ;;  %v3044_v48 = vmul.f32 -1.442695, %v2480_v19  ;;  %v2302_v19 = vpop.f32.mrf.mxu0 }
 0x521   : > { %v2314_v31 = vadd.f32 1.0, %v3183_v52 }
 0x522   : > { %3184 = vrcp.f32 %v2313_v26  ;;  %v2326_v61 = vand.u32 2147483648, %v2313_v26  ;;  %v2324_v6 = vand.u32 2147483647, %v2313_v26  ;;  %vm2320_vm8 = vweird.f32 %v2313_v26 }
 0x523   : > { %3186 = vrcp.f32 %v2314_v31  ;;  %vm2335_vm12 = vweird.f32 %v2314_v31 }
 0x524   : > { %3188 = vpow2.f32 %v3044_v48  ;;  %v2327_v52 = vor.u32 1.1754944e-38, %v2326_v61  ;;  %v2345_v48 = vadd.f32 %v5291_v30, %v2201_v53  ;;  %vm2325_vm10 = vcmp.eq.f32.partialorder %v2324_v6, 8.507059e+37 }
 0x528   : > { %v3185_v7 = vpop.eup %3184 }
 0x529   : > { %v3187_v55 = vpop.eup %3186  ;;  %v2316_v45 = vmul.f32 %v3185_v7, %v2313_v26  ;;  %vm2321_vm7 = vweird.f32 %v3185_v7  ;;  %v2410_v53 = vpop.f32.mrf.mxu3 }
 0x52a   : > { %v3189_v47 = vpop.eup %3188  ;;  %v2331_v50 = vmul.f32 %v3187_v55, %v2314_v31  ;;  %vm2322_vm9 = vmor %vm2320_vm8, %vm2321_vm7  ;;  %vm2336_vm11 = vweird.f32 %v3187_v55 }
 0x52b   : > { %v2317_v14 = vsub.f32 1.0, %v2316_v45  ;;  %v2484_v21 = vadd.f32 1.0, %v3189_v47  ;;  %v2303_v47 = vadd.f32 %v2302_v19, %v4487_v29  ;;  %vm2337_vm13 = vmor %vm2335_vm12, %vm2336_vm11 }
 0x52c   : > { %v2332_v12 = vsub.f32 1.0, %v2331_v50  ;;  %v2341_v50 = vand.u32 2147483648, %v2314_v31 }
 0x52d   : > { %v2318_v15 = vmul.f32 %v3185_v7, %v2317_v14  ;;  %3190 = vrcp.f32 %v2484_v21  ;;  %v2496_v61 = vand.u32 2147483648, %v2484_v21  ;;  %vm2490_vm1 = vweird.f32 %v2484_v21 }
 0x52e   : > { %v2333_v24 = vmul.f32 %v3187_v55, %v2332_v12  ;;  %v2339_v12 = vand.u32 2147483647, %v2314_v31  ;;  %v2342_v35 = vor.u32 1.1754944e-38, %v2341_v50  ;;  %v7352_v50 = vld [vmem:[#allocation97_spill] sm:$0xff] }
 0x52f   : > { %v2319_v32 = vadd.f32 %v3185_v7, %v2318_v15 }
 0x530   : > { %v2334_v58 = vadd.f32 %v3187_v55, %v2333_v24  ;;  %vm2340_vm0 = vcmp.eq.f32.partialorder %v2339_v12, 8.507059e+37  ;;  %v7354_v12 = vld [vmem:[#allocation98_spill] sm:$0xff] }
 0x531   : > { %v2323_v25 = vsel %vm2322_vm9, %v3185_v7, %v2319_v32 }
 0x532   : > { %v2328_v51 = vsel %vm2325_vm10, %v2327_v52, %v2323_v25  ;;  %v2338_v20 = vsel %vm2337_vm13, %v3187_v55, %v2334_v58  ;;  %v2494_v25 = vand.u32 2147483647, %v2484_v21  ;;  %v2503_v52 = vrot.slane %v5870_v54, 2 }
 0x533   : > { %v3191_v45 = vpop.eup %3190  ;;  %v2346_v14 = vmul.f32 %v2345_v48, %v2328_v51  ;;  %v2343_v7 = vsel %vm2340_vm0, %v2342_v35, %v2338_v20  ;;  %v2497_v51 = vor.u32 1.1754944e-38, %v2496_v61  ;;  %v7357_v61 = vld [vmem:[#allocation58_spill] sm:$0xff] }
 0x534   : > { %v2486_v62 = vmul.f32 %v3191_v45, %v2484_v21  ;;  %vm2491_vm15 = vweird.f32 %v3191_v45  ;;  %vm2495_vm3 = vcmp.eq.f32.partialorder %v2494_v25, 8.507059e+37  ;;  %v2349_v58 = vsub.f32 1.0, %v2343_v7  ;;  %v7359_v25 = vld [vmem:[#allocation107_spill] sm:$0xff] }
 0x535   : > { %v2347_v26 = vadd.f32 %v2346_v14, %v2303_v47  ;;  %vm2492_vm2 = vmor %vm2490_vm1, %vm2491_vm15  ;;  %v2351_v35 = vmul.f32 %v2343_v7, %v5647_v38  ;;  %v7353_v14 = vld [vmem:[#allocation109_spill] sm:$0xff]  ;;  %v7361_v7 = vld [vmem:[#allocation62_spill] sm:$0xff] }
 0x536   : > { %v2487_v15 = vsub.f32 1.0, %v2486_v62  ;;  %v5879_v62 = vld [vmem:[%s6096_s4] sm:$0x1] }
 0x537   : > { %3192 = vtanh.f32 %v2347_v26  ;;  %v2500_v31 = vadd.f32 %v5879_v62, %v2410_v53  ;;  %v7355_v26 = vld [vmem:[#allocation85_spill] sm:$0xff]  ;;  %v7360_v53 = vld [vmem:[#allocation19_spill] sm:$0xff] }
 0x538   : > { %v2488_v30 = vmul.f32 %v3191_v45, %v2487_v15  ;;  %v7356_v15 = vld [vmem:[#allocation76_spill] sm:$0xff] }
 0x53a   : > { %v2489_v6 = vadd.f32 %v3191_v45, %v2488_v30  ;;  %v7358_v30 = vld [vmem:[#allocation99_spill] sm:$0xff] }
 0x53c   : > { %v2493_v24 = vsel %vm2492_vm2, %v3191_v45, %v2489_v6  ;;  %v7362_v6 = vld [vmem:[#allocation11_spill] sm:$0xff] }
 0x53d   : > { %v3193_v55 = vpop.eup %3192  ;;  %v2498_v32 = vsel %vm2495_vm3, %v2497_v51, %v2493_v24  ;;  %v7363_v51 = vld [vmem:[#allocation108_spill] sm:$0xff] }
 0x53e   : > { %v2501_v19 = vmul.f32 %v2500_v31, %v2498_v32  ;;  %v2350_v20 = vmul.f32 %v3193_v55, %v2349_v58  ;;  %v2508_v45 = vrot.slane %v2498_v32, 1  ;;  %v7364_v24 = vld [vmem:[#allocation100_spill] sm:$0xff]  ;;  %v7365_v31 = vld [vmem:[#allocation45_spill] sm:$0xff]  ;;  %v7367_v55 = vld [vmem:[#allocation51_spill] sm:$0xff] }
 0x53f   : > { %v7366_v58 = vld [vmem:[#allocation13_spill] sm:$0xff]  ;;  %v7368_v32 = vld [vmem:[#allocation22_spill] sm:$0xff] }
 0x540   : > { %v2505_v21 = vadd.f32 %v2503_v52, %v2501_v19  ;;  %v5884_v48 = vadd.f32 %v2351_v35, %v2350_v20  ;;  %v2510_v54 = vsub.f32 1.0, %v2508_v45  ;;  %v7369_v19 = vld [vmem:[#allocation55_spill] sm:$0xff]  ;;  %v7370_v52 = vld [vmem:[#allocation12_spill] sm:$0xff]  ;;  %v7371_v20 = vld [vmem:[#allocation101_spill] sm:$0xff] }
 0x541   : > { %v7372_v35 = vld [vmem:[#allocation95_spill] sm:$0xff] }
 0x542   : > { %3194 = vtanh.f32 %v2505_v21  ;;  %2429 = vmatmul.f32.vlgmr.msrb.gmra.mxu0 %v5884_v48  ;;  %2449 = vmatmul.f32.vlgmr.msrb.gmra.mxu1 %v5884_v48  ;;  %v7373_v21 = vld [vmem:[#allocation14_spill] sm:$0xff] }
 0x543   : > { %2469 = vmatmul.f32.vlgmr.msrb.gmra.mxu2 %v5884_v48  ;;  %2662 = vmatpush.msrb.mxu0 %v5303_v3  ;;  %v2512_v3 = vmul.f32 %v2508_v45, %v5663_v37  ;;  %v7336_v37 = vld [vmem:[#allocation23_spill] sm:$0xff]  ;;  %v7374_v45 = vld [vmem:[#allocation24_spill] sm:$0xff] }
 0x544   : > { %2682 = vmatpush.msrb.mxu1 %v5306_v4  ;;  %2702 = vmatpush.msrb.mxu2 %v5309_v5  ;;  %v7319_v5 = vld [vmem:[#allocation74_spill] sm:$0xff] }
 0x545   : > { %2663 = vmatpush.msrb.mxu0 %v5312_v18  ;;  %v7320_v18 = vld [vmem:[#allocation63_spill] sm:$0xff] }
 0x546   : > { %2683 = vmatpush.msrb.mxu1 %v5315_v41  ;;  %2703 = vmatpush.msrb.mxu2 %v5318_v23  ;;  %v7321_v41 = vld [vmem:[#allocation61_spill] sm:$0xff]  ;;  %v7322_v23 = vld [vmem:[#allocation18_spill] sm:$0xff] }
 0x547   : > { %2664 = vmatpush.msrb.mxu0 %v5321_v59  ;;  %v7323_v59 = vld [vmem:[#allocation78_spill] sm:$0xff] }
 0x548   : > { %v3195_v38 = vpop.eup %3194  ;;  %2684 = vmatpush.msrb.mxu1 %v5324_v0  ;;  %2704 = vmatpush.msrb.mxu2 %v5327_v36  ;;  %v7324_v0 = vld [vmem:[#allocation67_spill] sm:$0xff]  ;;  %v7325_v36 = vld [vmem:[#allocation21_spill] sm:$0xff] }
 0x549   : > { %v2511_v47 = vmul.f32 %v3195_v38, %v2510_v54  ;;  %2665 = vmatpush.msrb.mxu0 %v5331_v56  ;;  %v7326_v56 = vld [vmem:[#allocation64_spill] sm:$0xff]  ;;  %v7375_v54 = vld [vmem:[#allocation49_spill] sm:$0xff]  ;;  %v7376_v38 = vld [vmem:[#allocation102_spill] sm:$0xff] }
 0x54a   : > { %2685 = vmatpush.msrb.mxu1 %v5334_v28  ;;  %2705 = vmatpush.msrb.mxu2 %v5337_v27  ;;  %v7327_v28 = vld [vmem:[#allocation65_spill] sm:$0xff]  ;;  %v7328_v27 = vld [vmem:[#allocation71_spill] sm:$0xff] }
 0x54b   : > { %v5902_v4 = vadd.f32 %v2512_v3, %v2511_v47  ;;  %2666 = vmatpush.msrb.mxu0 %v5342_v8  ;;  %v7329_v8 = vld [vmem:[#allocation29_spill] sm:$0xff]  ;;  %v7377_v47 = vld [vmem:[#allocation27_spill] sm:$0xff]  ;;  %v7378_v3 = vld [vmem:[#allocation70_spill] sm:$0xff] }
 0x54c   : > { %2686 = vmatpush.msrb.mxu1 %v5345_v22  ;;  %2706 = vmatpush.msrb.mxu2 %v5348_v16  ;;  %v7330_v22 = vld [vmem:[#allocation104_spill] sm:$0xff]  ;;  %v7331_v16 = vld [vmem:[#allocation75_spill] sm:$0xff] }
 0x54d   : > { %2530 = vmatmul.f32.vlgmr.msrb.gmra.mxu3 %v5902_v4  ;;  %2550 = vmatmul.f32.vlgmr.msra.gmra.mxu0 %v5902_v4 }
 0x54e   : > { %2570 = vmatmul.f32.vlgmr.msra.gmra.mxu1 %v5902_v4  ;;  %2638 = vmatmul.f32.vlgmr.msra.gmra.mxu2 %v5902_v4 }
 0x54f   : > { %2667 = vmatpush.msrb.mxu0 %v5355_v9  ;;  %2687 = vmatpush.msrb.mxu1 %v5361_v57  ;;  %v7332_v9 = vld [vmem:[#allocation82_spill] sm:$0xff]  ;;  %v7334_v57 = vld [vmem:[#allocation105_spill] sm:$0xff] }
 0x550   : > { %2707 = vmatpush.msrb.mxu2 %v7209_v17  ;;  %2722 = vmatpush.msrb.mxu3 %v5358_v13  ;;  %v7333_v13 = vld [vmem:[#allocation69_spill] sm:$0xff]  ;;  %v7338_v17 = vld [vmem:[#allocation15_spill] sm:$0xff] }
 0x551   : > { %2668 = vmatpush.msrb.mxu0 %v5367_v34  ;;  %2688 = vmatpush.msrb.mxu1 %v7211_v11  ;;  %v7335_v34 = vld [vmem:[#allocation26_spill] sm:$0xff] }
 0x552   : > { %2708 = vmatpush.msrb.mxu2 %v7213_v10  ;;  %2723 = vmatpush.msrb.mxu3 %v7208_v1  ;;  %v7337_v1 = vld [vmem:[#allocation79_spill] sm:$0xff]  ;;  %v7340_v11 = vld [vmem:[#allocation86_spill] sm:$0xff] }
 0x553   : > { %2669 = vmatpush.msrb.mxu0 %v7210_v40  ;;  %2689 = vmatpush.msrb.mxu1 %v7215_v42  ;;  %v7339_v40 = vld [vmem:[#allocation72_spill] sm:$0xff]  ;;  %v7342_v10 = vld [vmem:[#allocation106_spill] sm:$0xff]  ;;  %v7344_v42 = vld [vmem:[#allocation81_spill] sm:$0xff] }
 0x554   : > { %2709 = vmatpush.msrb.mxu2 %v7218_v60  ;;  %2724 = vmatpush.msrb.mxu3 %v7212_v46  ;;  %v7341_v46 = vld [vmem:[#allocation68_spill] sm:$0xff]  ;;  %v7347_v60 = vld [vmem:[#allocation73_spill] sm:$0xff] }
 0x555   : > { %2670 = vmatpush.msrb.mxu0 %v7214_v49  ;;  %2658 = vmatmul.f32.vlgmr.msra.gmra.mxu3 %v5902_v4  ;;  %v7343_v49 = vld [vmem:[#allocation83_spill] sm:$0xff] }
 0x556   : > { %2690 = vmatpush.msrb.mxu1 %v7219_v39  ;;  %2710 = vmatpush.msrb.mxu2 %v7222_v63  ;;  %v7348_v39 = vld [vmem:[#allocation96_spill] sm:$0xff] }
 0x557   : > { %2671 = vmatpush.msrb.mxu0 %v7217_v43  ;;  %2725 = vmatpush.msrb.mxu3 %v7216_v44  ;;  %v7345_v44 = vld [vmem:[#allocation44_spill] sm:$0xff]  ;;  %v7346_v43 = vld [vmem:[#allocation37_spill] sm:$0xff] }
 0x558   : > { %2691 = vmatpush.msrb.mxu1 %v7223_v33  ;;  %2711 = vmatpush.msrb.mxu2 %v7226_v2  ;;  %v7349_v63 = vld [vmem:[#allocation16_spill] sm:$0xff]  ;;  %v7351_v2 = vld [vmem:[#allocation77_spill] sm:$0xff] }
 0x559   : > { %2672 = vmatpush.msrb.mxu0 %v7319_v5  ;;  %2726 = vmatpush.msrb.mxu3 %v7320_v18  ;;  %v7350_v33 = vld [vmem:[#allocation32_spill] sm:$0xff]  ;;  %v7379_v5 = vld [vmem:[#allocation91_spill] sm:$0xff] }
 0x55a   : > { %2692 = vmatpush.msrb.mxu1 %v7321_v41  ;;  %2712 = vmatpush.msrb.mxu2 %v7322_v23  ;;  %v7380_v18 = vld [vmem:[#allocation87_spill] sm:$0xff]  ;;  %v7381_v41 = vld [vmem:[#allocation56_spill] sm:$0xff]  ;;  %v7382_v23 = vld [vmem:[#allocation66_spill] sm:$0xff] }
 0x55b   : > { %2673 = vmatpush.msrb.mxu0 %v7323_v59  ;;  %2727 = vmatpush.msrb.mxu3 %v7324_v0  ;;  %v7383_v59 = vld [vmem:[#allocation53_spill] sm:$0xff]  ;;  %v7384_v0 = vld [vmem:[#allocation35_spill] sm:$0xff] }
 0x55c   : > { %2693 = vmatpush.msrb.mxu1 %v7325_v36  ;;  %2713 = vmatpush.msrb.mxu2 %v7326_v56  ;;  %v7385_v36 = vld [vmem:[#allocation59_spill] sm:$0xff]  ;;  %v7386_v56 = vld [vmem:[#allocation57_spill] sm:$0xff] }
 0x55d   : > { %2674 = vmatpush.msrb.mxu0 %v7327_v28  ;;  %2728 = vmatpush.msrb.mxu3 %v7328_v27  ;;  %v7387_v28 = vld [vmem:[#allocation33_spill] sm:$0xff]  ;;  %v7388_v27 = vld [vmem:[#allocation54_spill] sm:$0xff] }
 0x55e   : > { %2694 = vmatpush.msrb.mxu1 %v7329_v8  ;;  %2714 = vmatpush.msrb.mxu2 %v7330_v22  ;;  %v7389_v8 = vld [vmem:[#allocation31_spill] sm:$0xff]  ;;  %v7390_v22 = vld [vmem:[#allocation80_spill] sm:$0xff] }
 0x55f   : > { %2675 = vmatpush.msrb.mxu0 %v7331_v16  ;;  %2729 = vmatpush.msrb.mxu3 %v7332_v9  ;;  %v7391_v16 = vld [vmem:[#allocation60_spill] sm:$0xff]  ;;  %v7392_v9 = vld [vmem:[#allocation41_spill] sm:$0xff] }
 0x560   : > { %2695 = vmatpush.msrb.mxu1 %v7333_v13  ;;  %2715 = vmatpush.msrb.mxu2 %v7334_v57  ;;  %v7393_v13 = vld [vmem:[#allocation46_spill] sm:$0xff] }
 0x561   : > { %2676 = vmatpush.msrb.mxu0 %v7335_v34  ;;  %2730 = vmatpush.msrb.mxu3 %v7336_v37  ;;  %v7394_v57 = vld [vmem:[#allocation38_spill] sm:$0xff]  ;;  %v7396_v37 = vld [vmem:[#allocation40_spill] sm:$0xff] }
 0x562   : > { %2696 = vmatpush.msrb.mxu1 %v7337_v1  ;;  %2716 = vmatpush.msrb.mxu2 %v7338_v17  ;;  %v7395_v34 = vld [vmem:[#allocation30_spill] sm:$0xff] }
 0x563   : > { %2677 = vmatpush.msrb.mxu0 %v7339_v40  ;;  %2731 = vmatpush.msrb.mxu3 %v7340_v11  ;;  %v7397_v40 = vld [vmem:[#allocation17_spill] sm:$0xff] }
 0x564   : > { %2678 = vmatmul.f32.vlgmr.msrb.gmra.mxu0 %v5902_v4  ;;  %2697 = vmatpush.msrb.mxu1 %v7341_v46 }
 0x565   : > { %2717 = vmatpush.msrb.mxu2 %v7342_v10  ;;  %2783 = vmatpush.msra.mxu0 %v7343_v49 }
 0x566   : > { %2803 = vmatpush.msra.mxu1 %v7344_v42  ;;  %2732 = vmatpush.msrb.mxu3 %v7347_v60 }
 0x567   : > { %2823 = vmatpush.msra.mxu2 %v7345_v44  ;;  %2784 = vmatpush.msra.mxu0 %v7346_v43  ;;  %v7398_v43 = vld [vmem:[#allocation48_spill] sm:$0xff] }
 0x568   : > { %2804 = vmatpush.msra.mxu1 %v7348_v39  ;;  %2733 = vmatpush.msrb.mxu3 %v7351_v2 }
 0x569   : > { %2824 = vmatpush.msra.mxu2 %v7349_v63  ;;  %2785 = vmatpush.msra.mxu0 %v7350_v33 }
 0x56a   : > { %2805 = vmatpush.msra.mxu1 %v7352_v50  ;;  %2734 = vmatpush.msrb.mxu3 %v7355_v26  ;;  %v6012_v26 = vld [vmem:[#allocation2 + $0x15] sm:$0x7] }
 0x56b   : > { %2825 = vmatpush.msra.mxu2 %v7353_v14  ;;  %2786 = vmatpush.msra.mxu0 %v7354_v12 }
 0x56c   : > { %2806 = vmatpush.msra.mxu1 %v7356_v15  ;;  %2735 = vmatpush.msrb.mxu3 %v7359_v25 }
 0x56d   : > { %2826 = vmatpush.msra.mxu2 %v7357_v61  ;;  %2787 = vmatpush.msra.mxu0 %v7358_v30 }
 0x56e   : > { %2807 = vmatpush.msra.mxu1 %v7360_v53  ;;  %2736 = vmatpush.msrb.mxu3 %v7363_v51 }
 0x56f   : > { %2827 = vmatpush.msra.mxu2 %v7361_v7  ;;  %2788 = vmatpush.msra.mxu0 %v7362_v6 }
 0x570   : > { %2808 = vmatpush.msra.mxu1 %v7364_v24  ;;  %2737 = vmatpush.msrb.mxu3 %v7367_v55 }
 0x571   : > { %2828 = vmatpush.msra.mxu2 %v7365_v31  ;;  %2789 = vmatpush.msra.mxu0 %v7366_v58 }
 0x572   : > { %2809 = vmatpush.msra.mxu1 %v7368_v32 }
 0x573   : > { %2829 = vmatpush.msra.mxu2 %v7369_v19  ;;  %2790 = vmatpush.msra.mxu0 %v7370_v52 }
 0x574   : > { %2810 = vmatpush.msra.mxu1 %v7371_v20 }
 0x575   : > { %2830 = vmatpush.msra.mxu2 %v7372_v35  ;;  %2791 = vmatpush.msra.mxu0 %v7373_v21 }
 0x576   : > { %2811 = vmatpush.msra.mxu1 %v7374_v45 }
 0x577   : > { %2831 = vmatpush.msra.mxu2 %v7375_v54  ;;  %2792 = vmatpush.msra.mxu0 %v7376_v38  ;;  %v6019_v38 = vld [vmem:[%s6100_s8] sm:$0x1] }
 0x578   : > { %2812 = vmatpush.msra.mxu1 %v7377_v47 }
 0x579   : > { %2832 = vmatpush.msra.mxu2 %v7378_v3  ;;  %2793 = vmatpush.msra.mxu0 %v7379_v5 }
 0x57a   : > { %2813 = vmatpush.msra.mxu1 %v7380_v18 }
 0x57b   : > { %2833 = vmatpush.msra.mxu2 %v7381_v41  ;;  %2794 = vmatpush.msra.mxu0 %v7382_v23 }
 0x57c   : > { %2814 = vmatpush.msra.mxu1 %v7383_v59 }
 0x57d   : > { %2834 = vmatpush.msra.mxu2 %v7384_v0  ;;  %2795 = vmatpush.msra.mxu0 %v7385_v36 }
 0x57e   : > { %2815 = vmatpush.msra.mxu1 %v7386_v56 }
 0x57f   : > { %2835 = vmatpush.msra.mxu2 %v7387_v28  ;;  %2796 = vmatpush.msra.mxu0 %v7388_v27 }
 0x580   : > { %2816 = vmatpush.msra.mxu1 %v7389_v8 }
 0x581   : > { %2836 = vmatpush.msra.mxu2 %v7390_v22  ;;  %2797 = vmatpush.msra.mxu0 %v7391_v16 }
 0x582   : > { %2817 = vmatpush.msra.mxu1 %v7392_v9 }
 0x583   : > { %2837 = vmatpush.msra.mxu2 %v7393_v13  ;;  %2798 = vmatpush.msra.mxu0 %v7394_v57 }
 0x584   : > { %2818 = vmatpush.msra.mxu1 %v7395_v34 }
 0x585   : > { %2838 = vmatpush.msra.mxu2 %v7396_v37 }
 0x5bf   : > { %v2430_v1 = vpop.f32.mrf.mxu0  ;;  %v2450_v46 = vpop.f32.mrf.mxu1 }
 0x5c6   : > { %v2470_v42 = vpop.f32.mrf.mxu2 }
 0x5c7   : > { %v2614_v47 = vadd.f32 %v6019_v38, %v2470_v42 }
 0x5ca   : > { %v2551_v17 = vpop.f32.mrf.mxu0 }
 0x5cb   : > { %v2552_v11 = vadd.f32 %v2551_v17, %v7397_v40  ;;  %v2571_v45 = vpop.f32.mrf.mxu1 }
 0x5cc   : > { %v2572_v59 = vadd.f32 %v2571_v45, %v4487_v29  ;;  %v2894_v45 = vld [vmem:[%s6101_s9 + $0x18] sm:$0xff] }
 0x5cd   : > { %v2575_v10 = vadd.f32 %v2552_v11, %v2450_v46 }
 0x5cf   : > { %v3046_v49 = vmul.f32 -1.442695, %v2575_v10 }
 0x5d0   : > { %v2531_v44 = vpop.f32.mrf.mxu3 }
 0x5d1   : > { %3196 = vpow2.f32 %v3046_v49  ;;  %v2532_v60 = vadd.f32 %v2531_v44, %v7398_v43  ;;  %v2639_v12 = vpop.f32.mrf.mxu2  ;;  %v2772_v44 = vrot.slane %v6012_v26, 2 }
 0x5d3   : > { %v2574_v39 = vadd.f32 %v2532_v60, %v2430_v1 }
 0x5d5   : > { %v3045_v63 = vmul.f32 -1.442695, %v2574_v39 }
 0x5d7   : > { %v3197_v33 = vpop.eup %3196  ;;  %3198 = vpow2.f32 %v3045_v63 }
 0x5d8   : > { %v2583_v2 = vadd.f32 1.0, %v3197_v33  ;;  %v2659_v50 = vpop.f32.mrf.mxu3 }
 0x5d9   : > { %v2746_v14 = vrot.slane %v2659_v50, 7 }
 0x5da   : > { %3200 = vrcp.f32 %v2583_v2  ;;  %v2610_v23 = vand.u32 2147483648, %v2583_v2  ;;  %vm2604_vm8 = vweird.f32 %v2583_v2  ;;  %v2608_v56 = vand.u32 2147483647, %v2583_v2 }
 0x5db   : > { %v2747_v15 = vsel %vm674_vm14, %v2639_v12, %v2746_v14 }
 0x5dc   : > { %v2749_v61 = vadd.f32 %v2747_v15, %v6012_v26  ;;  %v2611_v16 = vor.u32 1.1754944e-38, %v2610_v23  ;;  %vm2609_vm11 = vcmp.eq.f32.partialorder %v2608_v56, 8.507059e+37  ;;  %v2905_v15 = vld [vmem:[%s6101_s9 + $0x70] sm:$0xff] }
 0x5dd   : > { %v3199_v30 = vpop.eup %3198 }
 0x5de   : > { %v2582_v25 = vadd.f32 1.0, %v3199_v30  ;;  %v3047_v53 = vmul.f32 -1.442695, %v2749_v61  ;;  %v2904_v61 = vld [vmem:[%s6101_s9 + $0x68] sm:$0xff] }
 0x5e0   : > { %3202 = vrcp.f32 %v2582_v25  ;;  %v3201_v7 = vpop.eup %3200  ;;  %v2595_v19 = vand.u32 2147483648, %v2582_v25  ;;  %v2593_v20 = vand.u32 2147483647, %v2582_v25  ;;  %vm2589_vm14 = vweird.f32 %v2582_v25 }
 0x5e1   : > { %3204 = vpow2.f32 %v3047_v53  ;;  %v2600_v6 = vmul.f32 %v3201_v7, %v2583_v2  ;;  %vm2605_vm7 = vweird.f32 %v3201_v7  ;;  %v2679_v57 = vpop.f32.mrf.mxu0  ;;  %v2901_v53 = vld [vmem:[%s6101_s9 + $0x50] sm:$0xff] }
 0x5e2   : > { %v2596_v54 = vor.u32 1.1754944e-38, %v2595_v19  ;;  %vm2594_vm6 = vcmp.eq.f32.partialorder %v2593_v20, 8.507059e+37  ;;  %vm2606_vm9 = vmor %vm2604_vm8, %vm2605_vm7  ;;  %v2769_v11 = vadd.f32 %v5879_v62, %v2679_v57  ;;  %v2897_v20 = vld [vmem:[%s6101_s9 + $0x30] sm:$0xff]  ;;  %vm2928_vm7 = vcmask 0  }
 0x5e3   : > { %v2601_v58 = vsub.f32 1.0, %v2600_v6  ;;  %v2899_v6 = vld [vmem:[%s6101_s9 + $0x40] sm:$0xff] }
 0x5e5   : > { %v2602_v35 = vmul.f32 %v3201_v7, %v2601_v58 }
 0x5e6   : > { %v3203_v51 = vpop.eup %3202 }
 0x5e7   : > { %v3205_v24 = vpop.eup %3204  ;;  %v2585_v31 = vmul.f32 %v3203_v51, %v2582_v25  ;;  %vm2590_vm4 = vweird.f32 %v3203_v51  ;;  %v2603_v41 = vadd.f32 %v3201_v7, %v2602_v35  ;;  %v2902_v25 = vld [vmem:[%s6101_s9 + $0x58] sm:$0xff] }
 0x5e8   : > { %v2753_v55 = vadd.f32 1.0, %v3205_v24  ;;  %vm2591_vm5 = vmor %vm2589_vm14, %vm2590_vm4 }
 0x5e9   : > { %v2586_v32 = vsub.f32 1.0, %v2585_v31  ;;  %v2607_v22 = vsel %vm2606_vm9, %v3201_v7, %v2603_v41  ;;  %v2900_v7 = vld [vmem:[%s6101_s9 + $0x48] sm:$0xff] }
 0x5ea   : > { %3206 = vrcp.f32 %v2753_v55  ;;  %v2765_v8 = vand.u32 2147483648, %v2753_v55  ;;  %v2763_v13 = vand.u32 2147483647, %v2753_v55  ;;  %vm2759_vm12 = vweird.f32 %v2753_v55 }
 0x5eb   : > { %v2587_v52 = vmul.f32 %v3203_v51, %v2586_v32  ;;  %v2612_v37 = vsel %vm2609_vm11, %v2611_v16, %v2607_v22 }
 0x5ec   : > { %v2766_v1 = vor.u32 1.1754944e-38, %v2765_v8  ;;  %vm2764_vm15 = vcmp.eq.f32.partialorder %v2763_v13, 8.507059e+37  ;;  %v2618_v10 = vsub.f32 1.0, %v2612_v37  ;;  %v2620_v39 = vmul.f32 %v2612_v37, %v5884_v48  ;;  %v2906_v48 = vld [vmem:[%s6101_s9 + $0x78] sm:$0xff] }
 0x5ed   : > { %v2588_v21 = vadd.f32 %v3203_v51, %v2587_v52  ;;  %2908 = vmatpush.msra.mxu3 %v2906_v48 }
 0x5ef   : > { %v2592_v3 = vsel %vm2591_vm5, %v3203_v51, %v2588_v21  ;;  %2909 = vmatpush.msra.mxu3 %v2905_v15 }
 0x5f0   : > { %v3207_v5 = vpop.eup %3206  ;;  %v2597_v18 = vsel %vm2594_vm6, %v2596_v54, %v2592_v3  ;;  %v2893_v54 = vld [vmem:[%s6101_s9 + $0x10] sm:$0xff] }
 0x5f1   : > { %v2755_v0 = vmul.f32 %v3207_v5, %v2753_v55  ;;  %v2615_v36 = vmul.f32 %v2614_v47, %v2597_v18  ;;  %vm2760_vm10 = vweird.f32 %v3207_v5  ;;  %2910 = vmatpush.msra.mxu3 %v2904_v61  ;;  %v2898_v55 = vld [vmem:[%s6101_s9 + $0x38] sm:$0xff]  ;;  %v2892_v47 = vld [vmem:[%s6101_s9 + $0x8] sm:$0xff] }
 0x5f2   : > { %vm2761_vm13 = vmor %vm2759_vm12, %vm2760_vm10 }
 0x5f3   : > { %v2756_v28 = vsub.f32 1.0, %v2755_v0  ;;  %v2616_v27 = vadd.f32 %v2615_v36, %v2572_v59 }
 0x5f5   : > { %v2757_v9 = vmul.f32 %v3207_v5, %v2756_v28  ;;  %3208 = vtanh.f32 %v2616_v27 }
 0x5f7   : > { %v2758_v34 = vadd.f32 %v3207_v5, %v2757_v9 }
 0x5f9   : > { %v2762_v17 = vsel %vm2761_vm13, %v3207_v5, %v2758_v34  ;;  %v2891_v5 = vld [vmem:[%s6101_s9] sm:$0xff] }
 0x5fa   : > { %v2767_v46 = vsel %vm2764_vm15, %v2766_v1, %v2762_v17 }
 0x5fb   : > { %v3209_v49 = vpop.eup %3208  ;;  %v2770_v42 = vmul.f32 %v2769_v11, %v2767_v46  ;;  %v2777_v2 = vrot.slane %v2767_v46, 1 }
 0x5fc   : > { %v2619_v60 = vmul.f32 %v3209_v49, %v2618_v10 }
 0x5fd   : > { %v2774_v63 = vadd.f32 %v2772_v44, %v2770_v42  ;;  %v2779_v62 = vsub.f32 1.0, %v2777_v2  ;;  %v2781_v12 = vmul.f32 %v2777_v2, %v5902_v4  ;;  %v2903_v4 = vld [vmem:[%s6101_s9 + $0x60] sm:$0xff] }
 0x5fe   : > { %v6026_v33 = vadd.f32 %v2620_v39, %v2619_v60  ;;  %2911 = vmatpush.msra.mxu3 %v2903_v4 }
 0x5ff   : > { %3210 = vtanh.f32 %v2774_v63 }
 0x600   : > { %2698 = vmatmul.f32.vlgmr.msrb.gmra.mxu1 %v6026_v33  ;;  %2718 = vmatmul.f32.vlgmr.msrb.gmra.mxu2 %v6026_v33 }
 0x601   : > { %2738 = vmatmul.f32.vlgmr.msrb.gmra.mxu3 %v6026_v33 }
 0x602   : > { %2912 = vmatpush.msra.mxu3 %v2902_v25 }
 0x604   : > { %2913 = vmatpush.msra.mxu3 %v2901_v53 }
 0x605   : > { %v3211_v50 = vpop.eup %3210 }
 0x606   : > { %v2780_v14 = vmul.f32 %v3211_v50, %v2779_v62  ;;  %2914 = vmatpush.msra.mxu3 %v2900_v7 }
 0x608   : > { %v2782_v26 = vadd.f32 %v2781_v12, %v2780_v14  ;;  %2915 = vmatpush.msra.mxu3 %v2899_v6 }
 0x60a   : > { %2799 = vmatmul.f32.vlgmr.msra.gmra.mxu0 %v2782_v26  ;;  %2819 = vmatmul.f32.vlgmr.msra.gmra.mxu1 %v2782_v26 }
 0x60b   : > { %2839 = vmatmul.f32.vlgmr.msra.gmra.mxu2 %v2782_v26  ;;  %2916 = vmatpush.msra.mxu3 %v2898_v55 }
 0x60d   : > { %2917 = vmatpush.msra.mxu3 %v2897_v20 }
 0x67d   : > { %v2699_v30 = vpop.f32.mrf.mxu1 }
 0x683   : > { %v2719_v32 = vpop.f32.mrf.mxu2 }
 0x684   : > { %v2739_v9 = vpop.f32.mrf.mxu3 }
 0x685   : > { %v2883_v1 = vadd.f32 %v6019_v38, %v2739_v9 }
 0x687   : > { %v2800_v51 = vpop.f32.mrf.mxu0  ;;  %v2820_v24 = vpop.f32.mrf.mxu1 }
 0x688   : > { %v2801_v31 = vadd.f32 %v2800_v51, %v7398_v43  ;;  %v2821_v58 = vadd.f32 %v2820_v24, %v7397_v40  ;;  %v2896_v43 = vld [vmem:[%s6101_s9 + $0x28] sm:$0xff]  ;;  %v2895_v40 = vld [vmem:[%s6101_s9 + $0x20] sm:$0xff] }
 0x689   : > { %2918 = vmatpush.msra.mxu3 %v2896_v43 }
 0x68a   : > { %v2843_v19 = vadd.f32 %v2801_v31, %v2699_v30  ;;  %v2844_v52 = vadd.f32 %v2821_v58, %v2719_v32 }
 0x68b   : > { %2919 = vmatpush.msra.mxu3 %v2895_v40 }
 0x68c   : > { %v3048_v35 = vmul.f32 -1.442695, %v2843_v19  ;;  %v3049_v21 = vmul.f32 -1.442695, %v2844_v52 }
 0x68d   : > { %2920 = vmatpush.msra.mxu3 %v2894_v45 }
 0x68e   : > { %3212 = vpow2.f32 %v3048_v35  ;;  %v2840_v34 = vpop.f32.mrf.mxu2 }
 0x68f   : > { %3214 = vpow2.f32 %v3049_v21  ;;  %2921 = vmatpush.msra.mxu3 %v2893_v54  ;;  %v2841_v10 = vadd.f32 %v2840_v34, %v4487_v29  ;;  %v2907_v29 = vld [vmem:[#allocation3] sm:$0x1] }
 0x691   : > { %2922 = vmatpush.msra.mxu3 %v2892_v47 }
 0x693   : > { %2923 = vmatpush.msra.mxu3 %v2891_v5 }
 0x694   : > { %v3213_v3 = vpop.eup %3212 }
 0x695   : > { %v3215_v18 = vpop.eup %3214  ;;  %v2851_v41 = vadd.f32 1.0, %v3213_v3 }
 0x696   : > { %v2852_v23 = vadd.f32 1.0, %v3215_v18 }
 0x697   : > { %3216 = vrcp.f32 %v2851_v41  ;;  %v2864_v8 = vand.u32 2147483648, %v2851_v41  ;;  %v2862_v16 = vand.u32 2147483647, %v2851_v41  ;;  %vm2858_vm1 = vweird.f32 %v2851_v41 }
 0x698   : > { %3218 = vrcp.f32 %v2852_v23  ;;  %v2879_v42 = vand.u32 2147483648, %v2852_v23  ;;  %vm2873_vm14 = vweird.f32 %v2852_v23  ;;  %v2877_v44 = vand.u32 2147483647, %v2852_v23 }
 0x699   : > { %v2865_v37 = vor.u32 1.1754944e-38, %v2864_v8  ;;  %vm2863_vm3 = vcmp.eq.f32.partialorder %v2862_v16, 8.507059e+37 }
 0x69a   : > { %v2880_v63 = vor.u32 1.1754944e-38, %v2879_v42  ;;  %vm2878_vm6 = vcmp.eq.f32.partialorder %v2877_v44, 8.507059e+37 }
 0x69d   : > { %v3217_v59 = vpop.eup %3216 }
 0x69e   : > { %v3219_v0 = vpop.eup %3218  ;;  %v2854_v36 = vmul.f32 %v3217_v59, %v2851_v41  ;;  %vm2859_vm0 = vweird.f32 %v3217_v59 }
 0x69f   : > { %v2869_v56 = vmul.f32 %v3219_v0, %v2852_v23  ;;  %vm2860_vm2 = vmor %vm2858_vm1, %vm2859_vm0  ;;  %vm2874_vm4 = vweird.f32 %v3219_v0 }
 0x6a0   : > { %v2855_v28 = vsub.f32 1.0, %v2854_v36  ;;  %vm2875_vm5 = vmor %vm2873_vm14, %vm2874_vm4 }
 0x6a1   : > { %v2870_v27 = vsub.f32 1.0, %v2869_v56 }
 0x6a2   : > { %v2856_v22 = vmul.f32 %v3217_v59, %v2855_v28 }
 0x6a3   : > { %v2871_v13 = vmul.f32 %v3219_v0, %v2870_v27 }
 0x6a4   : > { %v2857_v57 = vadd.f32 %v3217_v59, %v2856_v22 }
 0x6a5   : > { %v2872_v46 = vadd.f32 %v3219_v0, %v2871_v13 }
 0x6a6   : > { %v2861_v17 = vsel %vm2860_vm2, %v3217_v59, %v2857_v57 }
 0x6a7   : > { %v2866_v11 = vsel %vm2863_vm3, %v2865_v37, %v2861_v17  ;;  %v2876_v39 = vsel %vm2875_vm5, %v3219_v0, %v2872_v46 }
 0x6a8   : > { %v2884_v49 = vmul.f32 %v2883_v1, %v2866_v11  ;;  %v2881_v2 = vsel %vm2878_vm6, %v2880_v63, %v2876_v39 }
 0x6a9   : > { %v2887_v38 = vsub.f32 1.0, %v2881_v2  ;;  %v2889_v14 = vmul.f32 %v2881_v2, %v6026_v33 }
 0x6aa   : > { %v2885_v60 = vadd.f32 %v2884_v49, %v2841_v10 }
 0x6ac   : > { %3220 = vtanh.f32 %v2885_v60 }
 0x6b2   : > { %v3221_v62 = vpop.eup %3220 }
 0x6b3   : > { %v2888_v50 = vmul.f32 %v3221_v62, %v2887_v38 }
 0x6b5   : > { %v2890_v12 = vadd.f32 %v2889_v14, %v2888_v50 }
 0x6b7   : > { %2924 = vmatmul.f32.vlgmr.msra.gmra.mxu3 %v2890_v12 }
 0x73a   : > { %v2925_v26 = vpop.f32.mrf.mxu3 }
 0x73b   : > { %v2926_v48 = vadd.f32 %v2925_v26, %v2907_v29 }
 0x73d   : > { %2929 = vst.msk [vmem:[%s431_s24] sm:$0x1] %vm2928_vm7, %v2926_v48 }
 0x73e PF: > { %s25_s19 = sadd.s32 1, %s3621_s19  }
 0x73f   : > { %p22_p7 = scmp.ge.s32.totalorder %s25_s19, 4  }
 0x741   :  { %24 = sbr.rel (!%p22_p7) target bundleno = 5 (0x5), region = 115 }
 0x746   :  { %2947 = vsyncpa [#allocation5], 1 }
 0x747   :  { %2949 = vsyncpa [#allocation5 + $0x1], 1 }
 0x748   :  { %2950 = vsyncpa [#allocation7], 1 }

</bundles_post_ra>
